<compile_context>
chip_gen: v6e
topology: v6e:2x2x1
jax: 0.10.0
libtpu: 0.0.40
codegen_flags: <defaults>
</compile_context>

<pallas_src>
import functools
import math

import jax
import jax.numpy as jnp
from jax.experimental import pallas as pl
from jax.experimental.pallas import tpu as pltpu

BN_EPS = 1e-5
HIDDEN = 2048  # hardcoded in the PyTorch module


def _cdiv(a, b):
    return (a + b - 1) // b


# ------------------------------- kernel ------------------------------------

def _bn_tanh(y, bn_pack):
    """tanh(BN_train(y + bias)).  y: (B, D) f32, bn_pack rows = [bias, gamma, beta]."""
    bias = bn_pack[0:1, :]
    gamma = bn_pack[1:2, :]
    beta = bn_pack[2:3, :]
    y = y + bias
    mean = jnp.mean(y, axis=0, keepdims=True)
    centered = y - mean
    var = jnp.mean(centered * centered, axis=0, keepdims=True)
    # Fold BN into one affine on `centered`; rsqrt/tanh go to the EUP slot.
    scale = gamma * jax.lax.rsqrt(var + BN_EPS)
    return jnp.tanh(centered * scale + beta)


def _layer(x_f32, w_bf16, bn_pack):
    """tanh(BN_train(x @ W + b)) for the small (resident-weight) layers."""
    y = jnp.dot(x_f32.astype(jnp.bfloat16), w_bf16,
                preferred_element_type=jnp.float32)
    return _bn_tanh(y, bn_pack)


def _fused_kernel(kcnt_ref,                        # scalar prefetch (SMEM)
                  x_ref, w1_ref, w2_ref, w3_ref,   # inputs
                  p1_ref, p2_ref, p3_ref,
                  o_ref,                           # output
                  h1_acc):                         # VMEM f32 scratch (B, HIDDEN)
    i = pl.program_id(0)           # branch (0 = img, 1 = text)
    k = pl.program_id(1)           # layer-1 K tile
    nk = pl.num_programs(1)

    @pl.when(k == 0)
    def _():
        h1_acc[...] = jnp.zeros_like(h1_acc)

    # Accumulate this K tile of layer 1.  For the text branch's padded tail
    # tiles the clamped index_map re-presents an already-resident tile (no
    # DMA) and this gate skips the (would-be duplicate) accumulation.
    @pl.when(k < kcnt_ref[i])
    def _():
        h1_acc[...] += jnp.dot(x_ref[0], w1_ref[0],
                               preferred_element_type=jnp.float32)

    # Finalize: BN+tanh for layer 1, then layers 2 and 3 (weights resident).
    @pl.when(k == nk - 1)
    def _():
        h1 = _bn_tanh(h1_acc[...], p1_ref[0])
        h2 = _layer(h1, w2_ref[0], p2_ref[0])
        h3 = _layer(h2, w3_ref[0], p3_ref[0])
        o_ref[0] = h3


def _vmem_limit_bytes(B, tk, hid, mid, hsh):
    """Scoped-VMEM request derived from the block sizes (+ headroom)."""
    bf, f4 = 2, 4
    per_step = (B * tk * bf              # x tile (bf16)
                + tk * hid * bf          # W1 tile (bf16)
                + hid * mid * bf         # W2 (bf16)
                + mid * hsh * bf         # W3 (bf16)
                + 8 * (hid + mid + hsh) * f4   # bn packs, sublane-padded
                + B * hsh * f4)          # output tile
    need = 2 * per_step + B * hid * f4 + (4 << 20)   # double buffers + scratch + slack
    return int(min(max(need, 16 << 20), 64 << 20))


def _stu_nn_pallas(kcnt, x, w1, w2, w3, p1, p2, p3, *, tk):
    """kcnt: (2,) i32; x: (2, B, din_pad) bf16; w*: (2, Din_l, Dout_l) bf16;
    p*: (2, 3, Dout_l) f32."""
    nb, B, din_pad = x.shape
    hid = w1.shape[2]
    mid = w2.shape[2]
    hsh = w3.shape[2]
    assert din_pad % tk == 0
    kt = din_pad // tk

    # K-dependent maps clamp to the branch's real K extent so skipped steps
    # re-use the resident tile (no DMA).
    def x_map(i, k, kcnt):
        return (i, 0, jnp.minimum(k, kcnt[i] - 1))

    def w1_map(i, k, kcnt):
        return (i, jnp.minimum(k, kcnt[i] - 1), 0)

    def branch_map(i, k, kcnt):
        return (i, 0, 0)

    return pl.pallas_call(
        _fused_kernel,
        out_shape=jax.ShapeDtypeStruct((nb, B, hsh), jnp.float32),
        grid_spec=pltpu.PrefetchScalarGridSpec(
            num_scalar_prefetch=1,
            grid=(nb, kt),
            in_specs=[
                pl.BlockSpec((1, B, tk), x_map),        # x K tile
                pl.BlockSpec((1, tk, hid), w1_map),     # W1 K tile
                pl.BlockSpec((1, hid, mid), branch_map),  # W2 (resident over K)
                pl.BlockSpec((1, mid, hsh), branch_map),  # W3
                pl.BlockSpec((1, 3, hid), branch_map),    # [b,g,beta] L1
                pl.BlockSpec((1, 3, mid), branch_map),    # [b,g,beta] L2
                pl.BlockSpec((1, 3, hsh), branch_map),    # [b,g,beta] L3
            ],
            out_specs=pl.BlockSpec((1, B, hsh), branch_map),
            scratch_shapes=[pltpu.VMEM((B, hid), jnp.float32)],
        ),
        compiler_params=pltpu.CompilerParams(
            dimension_semantics=("parallel", "arbitrary"),
            vmem_limit_bytes=_vmem_limit_bytes(B, tk, hid, mid, hsh),
        ),
    )(kcnt, x, w1, w2, w3, p1, p2, p3)


# ----------------------------- parameter setup -----------------------------

def _init_linear(key, d_in, d_out):
    """PyTorch-style uniform(-1/sqrt(fan_in), 1/sqrt(fan_in)); BN gamma=1, beta=0.

    Weights stored as (Din, Dout) (transposed from PyTorch's (out, in)) so the
    kernel computes x @ W + b.
    """
    kw, kb = jax.random.split(key)
    bound = 1.0 / math.sqrt(d_in)
    w = jax.random.uniform(kw, (d_in, d_out), jnp.float32, -bound, bound)
    b = jax.random.uniform(kb, (d_out,), jnp.float32, -bound, bound)
    gamma = jnp.ones((d_out,), jnp.float32)
    beta = jnp.zeros((d_out,), jnp.float32)
    return dict(w=w, b=b, gamma=gamma, beta=beta)


def init_stu_nn_params(key, img_input_dim, text_input_dim, minus_one_dim,
                       hash_dim):
    keys = jax.random.split(key, 6)
    return {
        "img_l1": _init_linear(keys[0], img_input_dim, HIDDEN),
        "img_l2": _init_linear(keys[1], HIDDEN, minus_one_dim),
        "txt_l1": _init_linear(keys[2], text_input_dim, HIDDEN),
        "txt_l2": _init_linear(keys[3], HIDDEN, minus_one_dim),
        "hash_img": _init_linear(keys[4], minus_one_dim, hash_dim),
        "hash_txt": _init_linear(keys[5], minus_one_dim, hash_dim),
    }


def pack_params(params, img_input_dim, text_input_dim, *, tk):
    """Stack the two branches; weights -> bf16; bias/gamma/beta packed into one
    (3, Dout) f32 array per layer.  W1 is padded (in HBM only) up to a common
    multiple of TK -- the padded rows are never DMA'd thanks to kcnt."""
    kt = max(_cdiv(img_input_dim, tk), _cdiv(text_input_dim, tk))
    din_pad = kt * tk

    def pad_rows(w):
        return jnp.pad(w, ((0, din_pad - w.shape[0]), (0, 0)))

    def bn_pack(p):
        return jnp.stack([p["b"], p["gamma"], p["beta"]])  # (3, Dout)

    w1 = jnp.stack([pad_rows(params["img_l1"]["w"]),
                    pad_rows(params["txt_l1"]["w"])]).astype(jnp.bfloat16)
    w2 = jnp.stack([params["img_l2"]["w"],
                    params["txt_l2"]["w"]]).astype(jnp.bfloat16)
    w3 = jnp.stack([params["hash_img"]["w"],
                    params["hash_txt"]["w"]]).astype(jnp.bfloat16)
    p1 = jnp.stack([bn_pack(params["img_l1"]), bn_pack(params["txt_l1"])])
    p2 = jnp.stack([bn_pack(params["img_l2"]), bn_pack(params["txt_l2"])])
    p3 = jnp.stack([bn_pack(params["hash_img"]), bn_pack(params["hash_txt"])])
    kcnt = jnp.array([_cdiv(img_input_dim, tk), _cdiv(text_input_dim, tk)],
                     jnp.int32)
    return dict(w1=w1, w2=w2, w3=w3, p1=p1, p2=p2, p3=p3, kcnt=kcnt)


# ------------------------------- forward -----------------------------------

@functools.partial(jax.jit, static_argnames=("tk",))
def stu_nn_forward(packed, feature_img, feature_text, *, tk):
    din_pad = packed["w1"].shape[1]

    def pad_cast(x):
        # zero-pad the feature axis up to the common padded K extent and cast
        # to bf16 once here (halves the x DMA; layer-1 operand was bf16 anyway).
        return jnp.pad(x, ((0, 0), (0, din_pad - x.shape[1]))).astype(jnp.bfloat16)

    x = jnp.stack([pad_cast(feature_img), pad_cast(feature_text)])  # (2, B, din_pad)
    out = _stu_nn_pallas(packed["kcnt"], x,
                         packed["w1"], packed["w2"], packed["w3"],
                         packed["p1"], packed["p2"], packed["p3"], tk=tk)
    return out[0], out[1]


# ------------------------------- reference ---------------------------------

def _ref_layer(x, w, b, gamma, beta):
    # Same numerics as the kernel: bf16 operands, f32 accumulation, f32 BN/tanh.
    y = jnp.dot(x.astype(jnp.bfloat16), w.astype(jnp.bfloat16),
                preferred_element_type=jnp.float32) + b
    mean = jnp.mean(y, axis=0, keepdims=True)
    var = jnp.mean((y - mean) ** 2, axis=0, keepdims=True)
    y_hat = (y - mean) / jnp.sqrt(var + BN_EPS)
    return jnp.tanh(y_hat * gamma + beta)


def _ref_branch(x, p1, p2, p3):
    h = _ref_layer(x, p1["w"], p1["b"], p1["gamma"], p1["beta"])
    h = _ref_layer(h, p2["w"], p2["b"], p2["gamma"], p2["beta"])
    h = _ref_layer(h, p3["w"], p3["b"], p3["gamma"], p3["beta"])
    return h


def stu_nn_ref(params, feature_img, feature_text):
    v1 = _ref_branch(feature_img, params["img_l1"], params["img_l2"],
                     params["hash_img"])
    v2 = _ref_branch(feature_text, params["txt_l1"], params["txt_l2"],
                     params["hash_txt"])
    return v1, v2


if __name__ == "__main__":
    # Small-but-consistent shapes (the 2048 hidden is hardcoded in the module).
    # TXT_DIM deliberately not a multiple of TK: exercises both the padded
    # tail-of-tile and the skipped K step for the text branch.
    B = 8
    IMG_DIM = 512
    TXT_DIM = 200
    MINUS_ONE_DIM = 256
    HASH_DIM = 128
    TK = 256   # at production dims (4096/1024) use TK=512-1024

    key = jax.random.PRNGKey(0)
    k_params, k_img, k_txt = jax.random.split(key, 3)

    params = init_stu_nn_params(k_params, IMG_DIM, TXT_DIM, MINUS_ONE_DIM,
                                HASH_DIM)
    packed = pack_params(params, IMG_DIM, TXT_DIM, tk=TK)

    feature_img = jax.random.normal(k_img, (B, IMG_DIM), jnp.float32)
    feature_text = jax.random.normal(k_txt, (B, TXT_DIM), jnp.float32)

    view1, view2 = stu_nn_forward(packed, feature_img, feature_text, tk=TK)
    jax.block_until_ready((view1, view2))

    # sanity check against pure-JAX reference with matching bf16-weight numerics
    r1, r2 = stu_nn_ref(params, feature_img, feature_text)
    assert view1.shape == (B, HASH_DIM) and view2.shape == (B, HASH_DIM)
    err1 = float(jnp.max(jnp.abs(view1 - r1)))
    err2 = float(jnp.max(jnp.abs(view2 - r2)))
    assert err1 < 2e-3 and err2 < 2e-3, (err1, err2)

    print("KERNEL_OK")
</pallas_src>

<mosaic_0001>
module attributes {stable_mosaic.version = 11 : i64} {
  func.func @_fused_kernel(%arg0: i32, %arg1: i32, %arg2: memref<2xi32, #tpu.memory_space<smem>>, %arg3: memref<1x8x256xbf16, #tpu.memory_space<vmem>>, %arg4: memref<1x256x2048xbf16, #tpu.memory_space<vmem>>, %arg5: memref<1x2048x256xbf16, #tpu.memory_space<vmem>>, %arg6: memref<1x256x128xbf16, #tpu.memory_space<vmem>>, %arg7: memref<1x3x2048xf32, #tpu.memory_space<vmem>>, %arg8: memref<1x3x256xf32, #tpu.memory_space<vmem>>, %arg9: memref<1x3x128xf32, #tpu.memory_space<vmem>>, %arg10: memref<1x8x128xf32, #tpu.memory_space<vmem>>, %arg11: memref<8x2048xf32, #tpu.memory_space<vmem>>) attributes {dimension_semantics = [#tpu.dimension_semantics<parallel>, #tpu.dimension_semantics<arbitrary>], iteration_bounds = array<i64: 2, 2>, scalar_prefetch = 1 : i64, scratch_operands = 1 : i64, tpu.core_type = #tpu.core_type<tc>, window_params = [{transform_indices = @transform_0, window_bounds = array<i64: 1, 8, 256>}, {transform_indices = @transform_1, window_bounds = array<i64: 1, 256, 2048>}, {transform_indices = @transform_2, window_bounds = array<i64: 1, 2048, 256>}, {transform_indices = @transform_3, window_bounds = array<i64: 1, 256, 128>}, {transform_indices = @transform_4, window_bounds = array<i64: 1, 3, 2048>}, {transform_indices = @transform_5, window_bounds = array<i64: 1, 3, 256>}, {transform_indices = @transform_6, window_bounds = array<i64: 1, 3, 128>}, {transform_indices = @transform_7, window_bounds = array<i64: 1, 8, 128>}]} {
    %c0_i32 = arith.constant 0 : i32
    %0 = arith.cmpi eq, %arg1, %c0_i32 : i32
    %1 = arith.extui %0 : i1 to i32
    %c0_i32_0 = arith.constant 0 : i32
    %2 = arith.cmpi ne, %1, %c0_i32_0 : i32
    scf.if %2 {
      %cst = arith.constant 0.000000e+00 : f32
      %11 = vector.broadcast %cst : f32 to vector<8x2048xf32>
      %c0 = arith.constant 0 : index
      %c0_3 = arith.constant 0 : index
      %12 = vector.load %arg11[%c0, %c0_3] : memref<8x2048xf32, #tpu.memory_space<vmem>>, vector<8x2048xf32>
      tpu.vector_store %arg11[%c0, %c0_3], %11 {strides = array<i32>} : memref<8x2048xf32, #tpu.memory_space<vmem>>, vector<8x2048xf32>,
    } else {
    }
    %3 = arith.index_cast %arg0 : i32 to index
    %4 = memref.load %arg2[%3] : memref<2xi32, #tpu.memory_space<smem>>
    %5 = arith.cmpi slt, %arg1, %4 : i32
    %6 = arith.extui %5 : i1 to i32
    %c0_i32_1 = arith.constant 0 : i32
    %7 = arith.cmpi ne, %6, %c0_i32_1 : i32
    scf.if %7 {
      %c0 = arith.constant 0 : index
      %c0_3 = arith.constant 0 : index
      %11 = vector.load %arg11[%c0, %c0_3] : memref<8x2048xf32, #tpu.memory_space<vmem>>, vector<8x2048xf32>
      %c0_4 = arith.constant 0 : index
      %c0_5 = arith.constant 0 : index
      %c0_6 = arith.constant 0 : index
      %12 = vector.load %arg3[%c0_4, %c0_5, %c0_6] : memref<1x8x256xbf16, #tpu.memory_space<vmem>>, vector<1x8x256xbf16>
      %13 = vector.shape_cast %12 : vector<1x8x256xbf16> to vector<8x256xbf16>
      %c0_7 = arith.constant 0 : index
      %c0_8 = arith.constant 0 : index
      %c0_9 = arith.constant 0 : index
      %14 = vector.load %arg4[%c0_7, %c0_8, %c0_9] : memref<1x256x2048xbf16, #tpu.memory_space<vmem>>, vector<1x256x2048xbf16>
      %15 = vector.shape_cast %14 : vector<1x256x2048xbf16> to vector<256x2048xbf16>
      %cst = arith.constant dense<0.000000e+00> : vector<8x2048xf32>
      %16 = tpu.matmul %13, %15, %cst {dimension_numbers = #tpu.dot_dimension_numbers<[1], [0], [0], [1], [0, 0, 1, 1], [], []>} : vector<8x256xbf16>, vector<256x2048xbf16>, vector<8x2048xf32> -> vector<8x2048xf32>
      %17 = arith.addf %11, %16 : vector<8x2048xf32>
      %c0_10 = arith.constant 0 : index
      %c0_11 = arith.constant 0 : index
      %18 = vector.load %arg11[%c0_10, %c0_11] : memref<8x2048xf32, #tpu.memory_space<vmem>>, vector<8x2048xf32>
      tpu.vector_store %arg11[%c0_10, %c0_11], %17 {strides = array<i32>} : memref<8x2048xf32, #tpu.memory_space<vmem>>, vector<8x2048xf32>,
    } else {
    }
    %c1_i32 = arith.constant 1 : i32
    %8 = arith.cmpi eq, %arg1, %c1_i32 : i32
    %9 = arith.extui %8 : i1 to i32
    %c0_i32_2 = arith.constant 0 : i32
    %10 = arith.cmpi ne, %9, %c0_i32_2 : i32
    scf.if %10 {
      %c0 = arith.constant 0 : index
      %c0_3 = arith.constant 0 : index
      %11 = vector.load %arg11[%c0, %c0_3] : memref<8x2048xf32, #tpu.memory_space<vmem>>, vector<8x2048xf32>
      %c0_4 = arith.constant 0 : index
      %c0_5 = arith.constant 0 : index
      %c0_6 = arith.constant 0 : index
      %12 = vector.load %arg7[%c0_4, %c0_5, %c0_6] : memref<1x3x2048xf32, #tpu.memory_space<vmem>>, vector<1x3x2048xf32>
      %13 = vector.shape_cast %12 : vector<1x3x2048xf32> to vector<3x2048xf32>
      %14 = vector.extract_strided_slice %13 {offsets = [0, 0], sizes = [1, 2048], strides = [1, 1]} : vector<3x2048xf32> to vector<1x2048xf32>
      %15 = vector.extract_strided_slice %13 {offsets = [1, 0], sizes = [1, 2048], strides = [1, 1]} : vector<3x2048xf32> to vector<1x2048xf32>
      %16 = vector.extract_strided_slice %13 {offsets = [2, 0], sizes = [1, 2048], strides = [1, 1]} : vector<3x2048xf32> to vector<1x2048xf32>
      %17 = vector.broadcast %14 : vector<1x2048xf32> to vector<8x2048xf32>
      %18 = arith.addf %11, %17 : vector<8x2048xf32>
      %cst = arith.constant dense<0.000000e+00> : vector<2048xf32>
      %19 = vector.multi_reduction <add>, %18, %cst [0] : vector<8x2048xf32> to vector<2048xf32>
      %20 = vector.shape_cast %19 : vector<2048xf32> to vector<1x2048xf32>
      %cst_7 = arith.constant 8.000000e+00 : f32
      %21 = vector.broadcast %cst_7 : f32 to vector<1x2048xf32>
      %22 = arith.divf %20, %21 : vector<1x2048xf32>
      %23 = vector.broadcast %22 : vector<1x2048xf32> to vector<8x2048xf32>
      %24 = arith.subf %18, %23 : vector<8x2048xf32>
      %25 = arith.mulf %24, %24 : vector<8x2048xf32>
      %cst_8 = arith.constant dense<0.000000e+00> : vector<2048xf32>
      %26 = vector.multi_reduction <add>, %25, %cst_8 [0] : vector<8x2048xf32> to vector<2048xf32>
      %27 = vector.shape_cast %26 : vector<2048xf32> to vector<1x2048xf32>
      %cst_9 = arith.constant 8.000000e+00 : f32
      %28 = vector.broadcast %cst_9 : f32 to vector<1x2048xf32>
      %29 = arith.divf %27, %28 : vector<1x2048xf32>
      %cst_10 = arith.constant 9.99999974E-6 : f32
      %30 = vector.broadcast %cst_10 : f32 to vector<1x2048xf32>
      %31 = arith.addf %29, %30 : vector<1x2048xf32>
      %32 = math.rsqrt %31 : vector<1x2048xf32>
      %33 = arith.mulf %15, %32 : vector<1x2048xf32>
      %34 = vector.broadcast %33 : vector<1x2048xf32> to vector<8x2048xf32>
      %35 = arith.mulf %24, %34 : vector<8x2048xf32>
      %36 = vector.broadcast %16 : vector<1x2048xf32> to vector<8x2048xf32>
      %37 = arith.addf %35, %36 : vector<8x2048xf32>
      %38 = math.tanh %37 : vector<8x2048xf32>
      %c0_11 = arith.constant 0 : index
      %c0_12 = arith.constant 0 : index
      %c0_13 = arith.constant 0 : index
      %39 = vector.load %arg5[%c0_11, %c0_12, %c0_13] : memref<1x2048x256xbf16, #tpu.memory_space<vmem>>, vector<1x2048x256xbf16>
      %40 = vector.shape_cast %39 : vector<1x2048x256xbf16> to vector<2048x256xbf16>
      %c0_14 = arith.constant 0 : index
      %c0_15 = arith.constant 0 : index
      %c0_16 = arith.constant 0 : index
      %41 = vector.load %arg8[%c0_14, %c0_15, %c0_16] : memref<1x3x256xf32, #tpu.memory_space<vmem>>, vector<1x3x256xf32>
      %42 = vector.shape_cast %41 : vector<1x3x256xf32> to vector<3x256xf32>
      %43 = arith.truncf %38 : vector<8x2048xf32> to vector<8x2048xbf16>
      %cst_17 = arith.constant dense<0.000000e+00> : vector<8x256xf32>
      %44 = tpu.matmul %43, %40, %cst_17 {dimension_numbers = #tpu.dot_dimension_numbers<[1], [0], [0], [1], [0, 0, 1, 1], [], []>} : vector<8x2048xbf16>, vector<2048x256xbf16>, vector<8x256xf32> -> vector<8x256xf32>
      %45 = vector.extract_strided_slice %42 {offsets = [0, 0], sizes = [1, 256], strides = [1, 1]} : vector<3x256xf32> to vector<1x256xf32>
      %46 = vector.extract_strided_slice %42 {offsets = [1, 0], sizes = [1, 256], strides = [1, 1]} : vector<3x256xf32> to vector<1x256xf32>
      %47 = vector.extract_strided_slice %42 {offsets = [2, 0], sizes = [1, 256], strides = [1, 1]} : vector<3x256xf32> to vector<1x256xf32>
      %48 = vector.broadcast %45 : vector<1x256xf32> to vector<8x256xf32>
      %49 = arith.addf %44, %48 : vector<8x256xf32>
      %cst_18 = arith.constant dense<0.000000e+00> : vector<256xf32>
      %50 = vector.multi_reduction <add>, %49, %cst_18 [0] : vector<8x256xf32> to vector<256xf32>
      %51 = vector.shape_cast %50 : vector<256xf32> to vector<1x256xf32>
      %cst_19 = arith.constant 8.000000e+00 : f32
      %52 = vector.broadcast %cst_19 : f32 to vector<1x256xf32>
      %53 = arith.divf %51, %52 : vector<1x256xf32>
      %54 = vector.broadcast %53 : vector<1x256xf32> to vector<8x256xf32>
      %55 = arith.subf %49, %54 : vector<8x256xf32>
      %56 = arith.mulf %55, %55 : vector<8x256xf32>
      %cst_20 = arith.constant dense<0.000000e+00> : vector<256xf32>
      %57 = vector.multi_reduction <add>, %56, %cst_20 [0] : vector<8x256xf32> to vector<256xf32>
      %58 = vector.shape_cast %57 : vector<256xf32> to vector<1x256xf32>
      %cst_21 = arith.constant 8.000000e+00 : f32
      %59 = vector.broadcast %cst_21 : f32 to vector<1x256xf32>
      %60 = arith.divf %58, %59 : vector<1x256xf32>
      %cst_22 = arith.constant 9.99999974E-6 : f32
      %61 = vector.broadcast %cst_22 : f32 to vector<1x256xf32>
      %62 = arith.addf %60, %61 : vector<1x256xf32>
      %63 = math.rsqrt %62 : vector<1x256xf32>
      %64 = arith.mulf %46, %63 : vector<1x256xf32>
      %65 = vector.broadcast %64 : vector<1x256xf32> to vector<8x256xf32>
      %66 = arith.mulf %55, %65 : vector<8x256xf32>
      %67 = vector.broadcast %47 : vector<1x256xf32> to vector<8x256xf32>
      %68 = arith.addf %66, %67 : vector<8x256xf32>
      %69 = math.tanh %68 : vector<8x256xf32>
      %c0_23 = arith.constant 0 : index
      %c0_24 = arith.constant 0 : index
      %c0_25 = arith.constant 0 : index
      %70 = vector.load %arg6[%c0_23, %c0_24, %c0_25] : memref<1x256x128xbf16, #tpu.memory_space<vmem>>, vector<1x256x128xbf16>
      %71 = vector.shape_cast %70 : vector<1x256x128xbf16> to vector<256x128xbf16>
      %c0_26 = arith.constant 0 : index
      %c0_27 = arith.constant 0 : index
      %c0_28 = arith.constant 0 : index
      %72 = vector.load %arg9[%c0_26, %c0_27, %c0_28] : memref<1x3x128xf32, #tpu.memory_space<vmem>>, vector<1x3x128xf32>
      %73 = vector.shape_cast %72 : vector<1x3x128xf32> to vector<3x128xf32>
      %74 = arith.truncf %69 : vector<8x256xf32> to vector<8x256xbf16>
      %cst_29 = arith.constant dense<0.000000e+00> : vector<8x128xf32>
      %75 = tpu.matmul %74, %71, %cst_29 {dimension_numbers = #tpu.dot_dimension_numbers<[1], [0], [0], [1], [0, 0, 1, 1], [], []>} : vector<8x256xbf16>, vector<256x128xbf16>, vector<8x128xf32> -> vector<8x128xf32>
      %76 = vector.extract_strided_slice %73 {offsets = [0, 0], sizes = [1, 128], strides = [1, 1]} : vector<3x128xf32> to vector<1x128xf32>
      %77 = vector.extract_strided_slice %73 {offsets = [1, 0], sizes = [1, 128], strides = [1, 1]} : vector<3x128xf32> to vector<1x128xf32>
      %78 = vector.extract_strided_slice %73 {offsets = [2, 0], sizes = [1, 128], strides = [1, 1]} : vector<3x128xf32> to vector<1x128xf32>
      %79 = vector.broadcast %76 : vector<1x128xf32> to vector<8x128xf32>
      %80 = arith.addf %75, %79 : vector<8x128xf32>
      %cst_30 = arith.constant dense<0.000000e+00> : vector<128xf32>
      %81 = vector.multi_reduction <add>, %80, %cst_30 [0] : vector<8x128xf32> to vector<128xf32>
      %82 = vector.shape_cast %81 : vector<128xf32> to vector<1x128xf32>
      %cst_31 = arith.constant 8.000000e+00 : f32
      %83 = vector.broadcast %cst_31 : f32 to vector<1x128xf32>
      %84 = arith.divf %82, %83 : vector<1x128xf32>
      %85 = vector.broadcast %84 : vector<1x128xf32> to vector<8x128xf32>
      %86 = arith.subf %80, %85 : vector<8x128xf32>
      %87 = arith.mulf %86, %86 : vector<8x128xf32>
      %cst_32 = arith.constant dense<0.000000e+00> : vector<128xf32>
      %88 = vector.multi_reduction <add>, %87, %cst_32 [0] : vector<8x128xf32> to vector<128xf32>
      %89 = vector.shape_cast %88 : vector<128xf32> to vector<1x128xf32>
      %cst_33 = arith.constant 8.000000e+00 : f32
      %90 = vector.broadcast %cst_33 : f32 to vector<1x128xf32>
      %91 = arith.divf %89, %90 : vector<1x128xf32>
      %cst_34 = arith.constant 9.99999974E-6 : f32
      %92 = vector.broadcast %cst_34 : f32 to vector<1x128xf32>
      %93 = arith.addf %91, %92 : vector<1x128xf32>
      %94 = math.rsqrt %93 : vector<1x128xf32>
      %95 = arith.mulf %77, %94 : vector<1x128xf32>
      %96 = vector.broadcast %95 : vector<1x128xf32> to vector<8x128xf32>
      %97 = arith.mulf %86, %96 : vector<8x128xf32>
      %98 = vector.broadcast %78 : vector<1x128xf32> to vector<8x128xf32>
      %99 = arith.addf %97, %98 : vector<8x128xf32>
      %100 = math.tanh %99 : vector<8x128xf32>
      %c0_35 = arith.constant 0 : index
      %c0_36 = arith.constant 0 : index
      %c0_37 = arith.constant 0 : index
      %101 = vector.load %arg10[%c0_35, %c0_36, %c0_37] : memref<1x8x128xf32, #tpu.memory_space<vmem>>, vector<1x8x128xf32>
      %102 = vector.shape_cast %101 : vector<1x8x128xf32> to vector<8x128xf32>
      %103 = vector.shape_cast %100 : vector<8x128xf32> to vector<1x8x128xf32>
      tpu.vector_store %arg10[%c0_35, %c0_36, %c0_37], %103 {strides = array<i32>} : memref<1x8x128xf32, #tpu.memory_space<vmem>>, vector<1x8x128xf32>,
    } else {
    }
    return
  }
  func.func @transform_0(%arg0: i32, %arg1: i32, %arg2: memref<2xi32, #tpu.memory_space<smem>>) -> (i32, i32, i32) {
    %0 = arith.index_cast %arg0 : i32 to index
    %1 = memref.load %arg2[%0] : memref<2xi32, #tpu.memory_space<smem>>
    %c1_i32 = arith.constant 1 : i32
    %2 = arith.subi %1, %c1_i32 : i32
    %3 = arith.minsi %arg1, %2 : i32
    %c0_i32 = arith.constant 0 : i32
    %c0_i32_0 = arith.constant 0 : i32
    return %arg0, %c0_i32, %3 : i32, i32, i32
  }
  func.func @transform_1(%arg0: i32, %arg1: i32, %arg2: memref<2xi32, #tpu.memory_space<smem>>) -> (i32, i32, i32) {
    %0 = arith.index_cast %arg0 : i32 to index
    %1 = memref.load %arg2[%0] : memref<2xi32, #tpu.memory_space<smem>>
    %c1_i32 = arith.constant 1 : i32
    %2 = arith.subi %1, %c1_i32 : i32
    %3 = arith.minsi %arg1, %2 : i32
    %c0_i32 = arith.constant 0 : i32
    %c0_i32_0 = arith.constant 0 : i32
    return %arg0, %3, %c0_i32 : i32, i32, i32
  }
  func.func @transform_2(%arg0: i32, %arg1: i32, %arg2: memref<2xi32, #tpu.memory_space<smem>>) -> (i32, i32, i32) {
    %c0_i32 = arith.constant 0 : i32
    %c0_i32_0 = arith.constant 0 : i32
    %c0_i32_1 = arith.constant 0 : i32
    return %arg0, %c0_i32, %c0_i32_0 : i32, i32, i32
  }
  func.func @transform_3(%arg0: i32, %arg1: i32, %arg2: memref<2xi32, #tpu.memory_space<smem>>) -> (i32, i32, i32) {
    %c0_i32 = arith.constant 0 : i32
    %c0_i32_0 = arith.constant 0 : i32
    %c0_i32_1 = arith.constant 0 : i32
    return %arg0, %c0_i32, %c0_i32_0 : i32, i32, i32
  }
  func.func @transform_4(%arg0: i32, %arg1: i32, %arg2: memref<2xi32, #tpu.memory_space<smem>>) -> (i32, i32, i32) {
    %c0_i32 = arith.constant 0 : i32
    %c0_i32_0 = arith.constant 0 : i32
    %c0_i32_1 = arith.constant 0 : i32
    return %arg0, %c0_i32, %c0_i32_0 : i32, i32, i32
  }
  func.func @transform_5(%arg0: i32, %arg1: i32, %arg2: memref<2xi32, #tpu.memory_space<smem>>) -> (i32, i32, i32) {
    %c0_i32 = arith.constant 0 : i32
    %c0_i32_0 = arith.constant 0 : i32
    %c0_i32_1 = arith.constant 0 : i32
    return %arg0, %c0_i32, %c0_i32_0 : i32, i32, i32
  }
  func.func @transform_6(%arg0: i32, %arg1: i32, %arg2: memref<2xi32, #tpu.memory_space<smem>>) -> (i32, i32, i32) {
    %c0_i32 = arith.constant 0 : i32
    %c0_i32_0 = arith.constant 0 : i32
    %c0_i32_1 = arith.constant 0 : i32
    return %arg0, %c0_i32, %c0_i32_0 : i32, i32, i32
  }
  func.func @transform_7(%arg0: i32, %arg1: i32, %arg2: memref<2xi32, #tpu.memory_space<smem>>) -> (i32, i32, i32) {
    %c0_i32 = arith.constant 0 : i32
    %c0_i32_0 = arith.constant 0 : i32
    %c0_i32_1 = arith.constant 0 : i32
    return %arg0, %c0_i32, %c0_i32_0 : i32, i32, i32
  }
}

</mosaic_0001>

<bundles_post_ra>
// kernel: stu_nn_forward.1
= control target key start
LH: loop header
LB: loop body
LE: loop exit
PB: predicated region body
PF: predicated region fallthrough
CT: control target
= control target key end

     0   :  { %s7104_s27 = smov [#allocation4]   ;;  %s8369_s0 = inlined_call_operand.hbm [shape: s32[2], index: 0, kind: input, shape index: {}]   ;;  %s8370_s1 = inlined_call_operand.vmem [shape: bf16[2,8,512], index: 1, kind: input, shape index: {}]   ;;  %s8371_s2 = inlined_call_operand.hbm [shape: bf16[2,512,2048], index: 2, kind: input, shape index: {}]   ;;  %s8372_s3 = inlined_call_operand.hbm [shape: bf16[2,2048,256], index: 3, kind: input, shape index: {}]   ;;  %s8373_s4 = inlined_call_operand.hbm [shape: bf16[2,256,128], index: 4, kind: input, shape index: {}]   ;;  %s8374_s5 = inlined_call_operand.vmem [shape: f32[2,3,2048], index: 5, kind: input, shape index: {}]   ;;  %s8375_s6 = inlined_call_operand.vmem [shape: f32[2,3,256], index: 6, kind: input, shape index: {}]   ;;  %s8376_s7 = inlined_call_operand.vmem [shape: f32[2,3,128], index: 7, kind: input, shape index: {}]   ;;  %s8377_s8 = inlined_call_operand.vmem [shape: f32[2,8,128], index: 8, kind: output, shape index: {}]  }
   0x1   :  { %8391 = sst [smem:[#allocation24_spill]] %s8370_s1 }
   0x2   :  { %8392 = sst [smem:[#allocation25_spill]] %s8371_s2 }
   0x3   :  { %8393 = sst [smem:[#allocation26_spill]] %s8372_s3 }
   0x4   :  { %8394 = sst [smem:[#allocation27_spill]] %s8373_s4 }
   0x5   :  { %8395 = sst [smem:[#allocation28_spill]] %s8374_s5 }
   0x6   :  { %8396 = sst [smem:[#allocation29_spill]] %s8375_s6 }
   0x7   :  { %8397 = sst [smem:[#allocation30_spill]] %s8376_s7 }
   0x8   :  { %8398 = sst [smem:[#allocation31_spill]] %s8377_s8 }
   0x9   :  { %14 = dma.hbm_to_smem %s8369_s0, 16, %s7104_s27, [#allocation3] }
   0xa   :  { %7050 = dma.done.wait [#allocation3], 16 }
   0xb   :  { %7051 = vsyncadd [#allocation3], 4294967280 }
   0xc   :  { %16 = sfence }
   0xd   :  { %17 = vsyncpa [#allocation6], 0 }
   0xe   :  { %19 = vsyncpa [#allocation6 + $0x1], 0 }
   0xf   :  { %20 = vsyncpa [#allocation8], 0 }
  0x10   :  { %22 = vsyncpa [#allocation8 + $0x1], 0  ;;  %s7162_s30 = smov 0   ;;  %s7164_s9 = smov 0  }
  0x11   :  { %s7166_s10 = smov 0   ;;  %s7168_s11 = smov 0  }
  0x12   :  { %s7170_s12 = smov 0   ;;  %s7172_s13 = smov 0  }
  0x13   :  { %s7174_s0 = smov 0   ;;  %s7176_s14 = smov 0  }
  0x14   :  { %s7178_s15 = smov 0   ;;  %s7180_s16 = smov 0  }
  0x15   :  { %s7182_s17 = smov 0  }
  0x16 LB: > { %8399 = sst [smem:[#allocation15_spill]] %s7086_s0  ;;  %s8378_s18 = sadd.s32 4294967295, %s7102_s17   ;;  %s7102_s17 = sphi %s7182_s17, %s28_s17   ;;  %s7098_s16 = sphi %s7180_s16, %s8440_s16   ;;  %s7094_s15 = sphi %s7178_s15, %s8439_s15   ;;  %s7090_s14 = sphi %s7176_s14, %s8438_s14   ;;  %s7086_s0 = sphi %s7174_s0, %s8437_s0   ;;  %s7082_s13 = sphi %s7172_s13, %s8446_s13   ;;  %s7078_s12 = sphi %s7170_s12, %s8445_s12   ;;  %s7074_s11 = sphi %s7168_s11, %s8444_s11   ;;  %s7070_s10 = sphi %s7166_s10, %s8443_s10   ;;  %s7066_s9 = sphi %s7164_s9, %s8442_s9   ;;  %s7062_s30 = sphi %s7162_s30, %s8441_s30  }
  0x17   : > { %8400 = sst [smem:[#allocation16_spill]] %s7090_s14  ;;  %p101_p0 = scmp.eq.s32.totalorder %s7102_s17, 0 }
  0x18   : > { %8401 = sst [smem:[#allocation17_spill]] %s7094_s15  ;;  %p7219_p1 = scmp.eq.s32.totalorder %s8378_s18, 0 }
  0x19   : > { %8402 = sst [smem:[#allocation18_spill]] %s7098_s16  ;;  %p126_p2 = scmp.ne.s32.totalorder %s7070_s10, %s7066_s9 }
  0x1a   : > { %p132_p3 = scmp.ne.s32.totalorder %s7066_s9, %s7062_s30  ;;  %p6340_p4 = scmp.lt.s32.totalorder %s7102_s17, 4 }
  0x1b   : > { %p128_p5 = por %p126_p2, %p101_p0  ;;  %s335_s21 = sand.u32 1, %s7102_s17  }
  0x1c   : > { %p7231_p6 = por %p132_p3, %p7219_p1  ;;  %s8379_s22 = sand.u32 1, %s7070_s10  }
  0x1d   : > { %s5738_s23 = sshll.u32 %s8379_s22, 11  ;;  %s6294_s24 = sshll.u32 %s7098_s16, 15 }
  0x1e   : > { %s8404_s20 = scalar_select %p7231_p6, 1, 0 }
  0x1f   : > { %s8406_s3 = sld [smem:[#allocation26_spill]]  ;;  %s339_s28 = scalar_lea.vmem [#allocation7], %s5738_s23 }
  0x20   : > { %8405 = sst [smem:[#allocation19_spill]] %s8404_s20  ;;  %s346_s29 = sshll.u32 %s339_s28, 4  ;;  %s347_s29 = int_to_ptr.vmem [resolvable:$true] %s346_s29 }
  0x21   : > { %p7245_p7 = pnand %p6340_p4, %p128_p5  ;;  %s7249_s18 = scalar_lea.sflag [#allocation8], %s335_s21 }
  0x22   : > { %s6935_s22 = scalar_lea.vmem %s347_s29, 32768  ;;  %s7105_s23 = smov [#allocation7]  }
  0x23   : > { %p6924_p8 = pneg %p7245_p7  ;;  %p6936_p9 = scmp.ne.s32.totalorder %s347_s29, %s6935_s22 }
  0x25   : > { %s345_s27 = scalar_lea.hbm %s8406_s3, %s6294_s24  ;;  %p6938_p10 = pnand %p6936_p9, %p6924_p8 }
  0x26   : > { %s6940_s24 = sshll.u32 %s7105_s23, 4  ;;  %s6941_s24 = int_to_ptr.vmem [resolvable:$false] %s6940_s24 }
  0x27   : > { %p6939_p11 = pneg %p6938_p10  ;;  %s6942_s25 = scalar_lea.vmem %s6941_s24, 65536 }
  0x28   : > { %p6943_p12 = scmp.lt.s32.totalorder %s347_s29, %s6941_s24  ;;  %p6944_p13 = scmp.lt.s32.totalorder %s6942_s25, %s6935_s22 }
  0x2a   : > { %p6945_p2 = por %p6944_p13, %p6943_p12 }
  0x2c   : > { %p6946_p3 = pnand %p6945_p2, %p6939_p11 }
  0x2e   : > { %6949 = shalt.err (!%p6946_p3)
}
  0x2f   : > { %s7106_s26 = smov 128   ;;  %s7107_s21 = smov 8  }
  0x30   : > { %6336 = dma.hbm_to_vmem [thread:$0]  (!%p7245_p7), %s345_s27, 32768, %s347_s29, %s7249_s18, %s7106_s26, %s7106_s26, %s7107_s21  }
  0x31   : > { %p5744_p5 = scmp.ge.s32.totalorder %s7102_s17, 1  ;;  %p398_p9 = scmp.lt.s32.totalorder %s7102_s17, 5 }
  0x32   : > { %s37_s28 = sadd.s32 1, %s7094_s15  ;;  %s40_s23 = sadd.s32 1, %s7098_s16 }
  0x33   : > { %p7261_p10 = pnand %p5744_p5, %p398_p9  ;;  %p38_p11 = scmp.ge.s32.totalorder %s37_s28, 2 }
  0x34   : > { %s80_s24 = sld [smem:[#allocation4 + %s7098_s16]]  ;;  %p100_p12 = scmp.ne.s32.totalorder %s7082_s13, %s7078_s12 }
  0x35   : > { %s8408_s22 = scalar_select %p7261_p10, 1, 0 }
  0x36   : > { %s8448_s28 = smov (%p38_p11, %s37_s28), 0  ;;  %s8450_s23 = smov (!%p38_p11, %s40_s23), %s7098_s16 }
  0x37   : > { %8409 = sst [smem:[#allocation20_spill]] %s8448_s28  ;;  %p106_p13 = scmp.ne.s32.totalorder %s7078_s12, %s7074_s11 }
  0x38   : > { %p42_p2 = scmp.ge.s32.totalorder %s8450_s23, 2  ;;  %s8410_s27 = sand.u32 1, %s7070_s10  }
  0x39   : > { %s5741_s29 = sshll.u32 %s8410_s27, 7  ;;  %p7279_p3 = por %p7219_p1, %p106_p13 }
  0x3a   : > { %s8452_s23 = smov (%p42_p2, %s8450_s23), 0  ;;  %s5728_s26 = sadd.s32 4294967295, %s80_s24 }
  0x3b   : > { %s8411_s25 = scalar_select %p7279_p3, 1, 0 }
  0x3c   : > { %8412 = sst [smem:[#allocation21_spill]] %s8452_s23  ;;  %p7287_p5 = por %p101_p0, %p100_p12 }
  0x3d   : > { %p82_p1 = scmp.lt.s32.totalorder %s7094_s15, %s5728_s26  ;;  %s84_s19 = sld [smem:[#allocation4 + %s8452_s23]] }
  0x3e   : > { %s119_s21 = sadd.s32 1, %s7070_s10  ;;  %s88_s27 = ssub.s32 %s7098_s16, %s8452_s23 }
  0x3f   : > { %s83_s3 = scalar_select %p82_p1, %s7094_s15, %s5728_s26 }
  0x40   : > { %p117_p9 = scmp.eq.s32.totalorder %s88_s27, 0  ;;  %s360_s8 = scalar_lea.vmem [#allocation9], %s5741_s29 }
  0x41   : > { %s6320_s24 = scalar_select %p7287_p5, [#allocation4], [#allocation10] }
  0x42   : > { %s7300_s1 = scalar_select %p117_p9, %s7070_s10, %s119_s21  }
  0x43   : > { %s367_s7 = sshll.u32 %s360_s8, 4  ;;  %s5729_s6 = sadd.s32 4294967295, %s84_s19  ;;  %s368_s7 = int_to_ptr.vmem [resolvable:$true] %s367_s7 }
  0x44   : > { %8414 = sst [smem:[#allocation22_spill]] %s7300_s1  ;;  %p86_p0 = scmp.lt.s32.totalorder %s8448_s28, %s5729_s6 }
  0x45   : > { %s8386_s5 = sand.u32 1, %s7082_s13   ;;  %s8454_s24 = smov (!%p6340_p4, %s6320_s24), [#allocation11] }
  0x46   : > { %s6321_s0 = scalar_select %p7287_p5, %s7098_s16, 0 }
  0x47   : > { %s87_s23 = scalar_select %p86_p0, %s8448_s28, %s5729_s6 }
  0x48   : > { %s93_s14 = sadd.s32 1, %s7082_s13  ;;  %p7315_p11 = pnand %p6340_p4, %p7287_p5 }
  0x49   : > { %s89_s26 = ssub.s32 %s83_s3, %s87_s23  ;;  %s5732_s8 = sshll.u32 %s8386_s5, 11 }
  0x4a   : > { %s90_s20 = sor.u32 %s89_s26, %s88_s27  ;;  %s8456_s0 = smov (!%p6340_p4, %s6321_s0), 0 }
  0x4b   : > { %p91_p12 = scmp.eq.s32.totalorder %s90_s20, 0  ;;  %s312_s6 = sld [smem:[%s8454_s24 + %s8456_s0]] }
  0x4c   : > { %s6295_s19 = sshll.u32 %s7098_s16, 11  ;;  %s8417_s4 = sld [smem:[#allocation27_spill]] }
  0x4d   : > { %s7324_s29 = scalar_select %p91_p12, %s7082_s13, %s93_s14  }
  0x4e   : > { %s6963_s23 = scalar_lea.vmem %s368_s7, 2048  ;;  %s7108_s20 = smov [#allocation9]  }
  0x4f   : > { %8416 = sst [smem:[#allocation23_spill]] %s7324_s29  ;;  %p6964_p13 = scmp.ne.s32.totalorder %s368_s7, %s6963_s23 }
  0x50   : > { %s6968_s11 = sshll.u32 %s7108_s20, 4  ;;  %s6969_s11 = int_to_ptr.vmem [resolvable:$false] %s6968_s11 }
  0x51   : > { %p6966_p2 = pnand %p6964_p13, %p6924_p8  ;;  %s6970_s27 = scalar_lea.vmem %s6969_s11, 4096 }
  0x52   : > { %s366_s3 = scalar_lea.hbm %s8417_s4, %s6295_s19  ;;  %p6971_p4 = scmp.lt.s32.totalorder %s368_s7, %s6969_s11 }
  0x53   : > { %p6967_p5 = pneg %p6966_p2  ;;  %p6972_p1 = scmp.lt.s32.totalorder %s6970_s27, %s6963_s23 }
  0x55   : > { %p6973_p9 = por %p6972_p1, %p6971_p4 }
  0x57   : > { %p6974_p0 = pnand %p6973_p9, %p6967_p5 }
  0x59   : > { %6977 = shalt.err (!%p6974_p0)
}
  0x5a   : > { %s7109_s0 = smov 64   ;;  %s7110_s1 = smov 4  }
  0x5b   : > { %6339 = dma.hbm_to_vmem [thread:$0]  (!%p7245_p7), %s366_s3, 2048, %s368_s7, %s7249_s18, %s7109_s0, %s7109_s0, %s7110_s1  }
  0x5c   : > { %s5733_s14 = sadd.s32 4294967295, %s312_s6  ;;  %s5736_s28 = sshll.u32 %s7098_s16, 10 }
  0x5d   : > { %p314_p8 = scmp.lt.s32.totalorder %s7094_s15, %s5733_s14  ;;  %s311_s24 = scalar_lea.vmem [#allocation5], %s5732_s8 }
  0x5e   : > { %s325_s26 = sshll.u32 %s311_s24, 4  ;;  %s8418_s2 = sld [smem:[#allocation25_spill]]  ;;  %s7341_s26 = int_to_ptr.vmem [resolvable:$true] %s325_s26 }
  0x5f   : > { %s315_s19 = scalar_select %p314_p8, %s7094_s15, %s5733_s14 }
  0x60   : > { %s8419_s30 = sand.u32 1, %s7082_s13   ;;  %p6980_p12 = pneg %p7315_p11 }
  0x61   : > { %s6293_s23 = sshll.u32 %s315_s19, 9  ;;  %s7350_s7 = scalar_lea.sflag [#allocation6], %s8419_s30 }
  0x62   : > { %s322_s20 = sadd.s32 %s6293_s23, %s5736_s28 }
  0x63   : > { %s5737_s11 = sshll.u32 %s322_s20, 6 }
  0x64   : > { %s7346_s4 = scalar_lea.hbm %s8418_s2, %s5737_s11  ;;  %s6983_s3 = scalar_lea.hbm %s8418_s2, 131072 }
  0x65   : > { %s6978_s18 = scalar_lea.hbm %s7346_s4, 32768  ;;  %p6984_p5 = scmp.lt.s32.totalorder %s7346_s4, %s8418_s2 }
  0x66   : > { %p6979_p7 = scmp.ne.s32.totalorder %s7346_s4, %s6978_s18  ;;  %p6985_p4 = scmp.lt.s32.totalorder %s6983_s3, %s6978_s18 }
  0x68   : > { %p6981_p13 = pnand %p6980_p12, %p6979_p7  ;;  %p6986_p1 = por %p6985_p4, %p6984_p5 }
  0x6a   : > { %p6982_p2 = pneg %p6981_p13 }
  0x6c   : > { %p6987_p9 = pnand %p6986_p1, %p6982_p2 }
  0x6e   : > { %6990 = shalt.err (!%p6987_p9)
}
  0x6f   : > { %s6991_s14 = scalar_lea.vmem %s7341_s26, 32768  ;;  %s7111_s28 = smov [#allocation5]  }
  0x70   : > { %p6992_p0 = scmp.ne.s32.totalorder %s7341_s26, %s6991_s14  ;;  %s6996_s24 = sshll.u32 %s7111_s28, 4  ;;  %s6997_s24 = int_to_ptr.vmem [resolvable:$false] %s6996_s24 }
  0x71   : > { %s6998_s19 = scalar_lea.vmem %s6997_s24, 65536  ;;  %p6999_p13 = scmp.lt.s32.totalorder %s7341_s26, %s6997_s24 }
  0x72   : > { %p6994_p8 = pnand %p6992_p0, %p6980_p12  ;;  %p7000_p6 = scmp.lt.s32.totalorder %s6998_s19, %s6991_s14 }
  0x74   : > { %p6995_p7 = pneg %p6994_p8  ;;  %p7001_p3 = por %p7000_p6, %p6999_p13 }
  0x76   : > { %p7002_p10 = pnand %p7001_p3, %p6995_p7 }
  0x78   : > { %7005 = shalt.err (!%p7002_p10)
}
  0x79   : > { %s7112_s23 = smov 1024   ;;  %p8420_p12 = scmp.ne.s32.totalorder %s8408_s22, 0 }
  0x7a   : > { %6333 = dma.hbm_to_vmem [thread:$0]  (!%p7315_p11), %s7346_s4, 32768, %s7341_s26, %s7350_s7, %s7112_s23, %s7112_s23, %s7109_s0  }
  0x7b   : > { %402 = sbr.rel (%p8420_p12) target bundleno = 1517 (0x5ed), region = 48  ;;  %s404_s20 = sand.u32 (!%p8420_p12), 1, %s7078_s12  }
  0x7c   : > { %s5745_s11 = sshll.u32 (!%p8420_p12), %s404_s20, 11  ;;  %s405_s27 = scalar_lea.sflag (!%p8420_p12), [#allocation6], %s404_s20 }
  0x7d   : > { %s7375_s30 = scalar_lea.vmem (!%p8420_p12), [#allocation5], %s5745_s11  ;;  %p8421_p6 = scmp.ne.s32.totalorder (!%p8420_p12), %s8411_s25, 0 }
  0x80   : > { %7053 = dma.done.wait (%p8421_p6), %s405_s27, 32768  }
  0x81   : > { %7055 = vsyncadd (%p8421_p6), %s405_s27, 4294934528  ;;  %s8422_s21 = sadd.s32 4294967295, %s7102_s17   ;;  %s8423_s18 = sld [smem:[#allocation19_spill]] }
  0x82   : > { %s413_s4 = sand.u32 1, %s8422_s21   ;;  %s415_s0 = sand.u32 1, %s7066_s9  }
  0x83   : > { %s5746_s22 = sshll.u32 %s415_s0, 11  ;;  %s414_s26 = scalar_lea.sflag [#allocation8], %s413_s4 }
  0x84   : > { %s7384_s7 = scalar_lea.vmem [#allocation7], %s5746_s22 }
  0x87   : > { %p8424_p10 = scmp.ne.s32.totalorder %s8423_s18, 0 }
  0x89   : > { %7057 = dma.done.wait (%p8424_p10), %s414_s26, 34816  }
  0x8a   : > { %7059 = vsyncadd (%p8424_p10), %s414_s26, 4294932480  ;;  %s8425_s8 = sld [smem:[#allocation16_spill]]  ;;  %s5747_s6 = sshll.u32 %s415_s0, 7 }
  0x8b   : > { %s8426_s25 = sld [smem:[#allocation15_spill]]  ;;  %s7420_s18 = scalar_lea.vmem [#allocation9], %s5747_s6 }
  0x8c   : > { %s8427_s24 = sld [smem:[#allocation28_spill]] }
  0x8d   : > { %s8428_s27 = sld [smem:[#allocation29_spill]] }
  0x8e   : > { %s8429_s22 = sld [smem:[#allocation30_spill]] }
  0x8f   : > { %s8430_s15 = sld [smem:[#allocation31_spill]] }
  0x90   : > { %p498_p3 = scmp.lt.s32.totalorder %s8425_s8, 1  ;;  %s493_s3 = sld [smem:[#allocation4 + %s8425_s8]] }
  0x91   : > { %s8431_s11 = sld [smem:[#allocation24_spill]]  ;;  %p5758_p5 = scmp.ne.s32.totalorder %s8426_s25, 0 }
  0x92   : > { %s8458_s8 = smov (!%p498_p3, %s8425_s8), 1 }
  0x93   : > { %s5750_s1 = sshll.u32 %s8458_s8, 2  ;;  %s6296_s5 = sshll.u32 %s8458_s8, 6 }
  0x94   : > { %s7396_s19 = scalar_lea.vmem %s8427_s24, %s6296_s5  ;;  %s6297_s23 = sshll.u32 %s8458_s8, 3 }
  0x95   : > { %s7401_s21 = scalar_lea.vmem %s8428_s27, %s6297_s23  ;;  %s7406_s26 = scalar_lea.vmem %s8429_s22, %s5750_s1 }
  0x96   : > { %s5748_s0 = sadd.s32 4294967295, %s493_s3  ;;  %s7411_s29 = scalar_lea.vmem %s8430_s15, %s6297_s23 }
  0x97   : > { %p495_p11 = scmp.lt.s32.totalorder %s8426_s25, %s5748_s0 }
  0x99   : > { %s496_s5 = scalar_select %p495_p11, %s8426_s25, %s5748_s0 }
  0x9b   : > { %s5749_s14 = sshll.u32 %s496_s5, 1 }
  0x9c   : > { %p500_p2 = scmp.lt.s32.totalorder %s5749_s14, 3 }
  0x9d   : > { %538 = sbr.rel (%p5758_p5) target bundleno = 171 (0xab), region = 64 }
  0x9e   : > { %s8460_s14 = smov (!%p500_p2, %s5749_s14), 3 }
  0x9f   : > { %s503_s8 = sadd.s32 %s5750_s1, %s8460_s14 }
  0xa0   : > { %s5751_s28 = sshll.u32 %s503_s8, 2 }
  0xa1   : > { %s7418_s27 = scalar_lea.vmem %s8431_s11, %s5751_s28 }
  0xa2   : > { %v7113_v0 = vmov 0.0  }
  0xa3   : > { %539 = vst [vmem:[#allocation2 + $0x30] sm:$0xff] %v7113_v0  ;;  %540 = vst [vmem:[#allocation2] sm:$0xff] %v7113_v0 }
  0xa4   : > { %541 = vst [vmem:[#allocation2 + $0x58] sm:$0xff] %v7113_v0  ;;  %542 = vst [vmem:[#allocation2 + $0x18] sm:$0xff] %v7113_v0 }
  0xa5   : > { %543 = vst [vmem:[#allocation2 + $0x50] sm:$0xff] %v7113_v0  ;;  %544 = vst [vmem:[#allocation2 + $0x68] sm:$0xff] %v7113_v0 }
  0xa6   : > { %545 = vst [vmem:[#allocation2 + $0x8] sm:$0xff] %v7113_v0  ;;  %546 = vst [vmem:[#allocation2 + $0x48] sm:$0xff] %v7113_v0 }
  0xa7   : > { %547 = vst [vmem:[#allocation2 + $0x40] sm:$0xff] %v7113_v0  ;;  %548 = vst [vmem:[#allocation2 + $0x20] sm:$0xff] %v7113_v0 }
  0xa8   : > { %549 = vst [vmem:[#allocation2 + $0x10] sm:$0xff] %v7113_v0  ;;  %550 = vst [vmem:[#allocation2 + $0x38] sm:$0xff] %v7113_v0 }
  0xa9   : > { %551 = vst [vmem:[#allocation2 + $0x60] sm:$0xff] %v7113_v0  ;;  %552 = vst [vmem:[#allocation2 + $0x70] sm:$0xff] %v7113_v0 }
  0xaa   : > { %553 = vst [vmem:[#allocation2 + $0x78] sm:$0xff] %v7113_v0  ;;  %554 = vst [vmem:[#allocation2 + $0x28] sm:$0xff] %v7113_v0 }
  0xab PF: > { %s8432_s2 = sld [smem:[#allocation16_spill]] }
  0xac   : > { %s8433_s16 = sld [smem:[#allocation15_spill]] }
  0xb1   : > { %s555_s15 = sld [smem:[#allocation4 + %s8432_s2]] }
  0xb7   : > { %p5759_p4 = scmp.ge.s32.totalorder %s8433_s16, %s555_s15 }
  0xb9   : > { %559 = sbr.rel (%p5759_p4) target bundleno = 649 (0x289), region = 68 }
  0xbe   : > { %v689_v1 = vld [vmem:[%s7375_s30 + $0x380] sm:$0xff]  ;;  %v690_v3 = vld [vmem:[%s7375_s30 + $0x388] sm:$0xff] }
  0xbf   : > { %v697_v2 = vld [vmem:[%s7375_s30 + $0x3c0] sm:$0xff]  ;;  %v698_v5 = vld [vmem:[%s7375_s30 + $0x3c8] sm:$0xff] }
  0xc0   : > { %v5875_v4 = vcombine.high %v689_v1, %v697_v2  ;;  %v5874_v6 = vcombine.low %v689_v1, %v697_v2  ;;  %v673_v7 = vld [vmem:[%s7375_s30 + $0x300] sm:$0xff]  ;;  %v5877_v9 = vcombine.high %v690_v3, %v698_v5  ;;  %v5876_v10 = vcombine.low %v690_v3, %v698_v5  ;;  %v674_v12 = vld [vmem:[%s7375_s30 + $0x308] sm:$0xff] }
  0xc1   : > { %v681_v8 = vld [vmem:[%s7375_s30 + $0x340] sm:$0xff]  ;;  %v682_v13 = vld [vmem:[%s7375_s30 + $0x348] sm:$0xff] }
  0xc2   : > { %v5859_v11 = vcombine.high %v673_v7, %v681_v8  ;;  %v657_v14 = vld [vmem:[%s7375_s30 + $0x280] sm:$0xff]  ;;  %2120 = vmatprep.subr.bf16.mxu0 %v5875_v4  ;;  %v5861_v15 = vcombine.high %v674_v12, %v682_v13  ;;  %v658_v17 = vld [vmem:[%s7375_s30 + $0x288] sm:$0xff]  ;;  %2161 = vmatprep.subr.bf16.mxu1 %v5877_v9  ;;  %v5858_v19 = vcombine.low %v673_v7, %v681_v8 }
  0xc3   : > { %v665_v16 = vld [vmem:[%s7375_s30 + $0x2c0] sm:$0xff]  ;;  %v666_v18 = vld [vmem:[%s7375_s30 + $0x2c8] sm:$0xff]  ;;  %2121 = vmatpush1.bf16.msra.mxu0 %v5874_v6  ;;  %2162 = vmatpush1.bf16.msra.mxu1 %v5876_v10  ;;  %v5860_v20 = vcombine.low %v674_v12, %v682_v13 }
  0xc4   : > { %2122 = vmatprep.subr.bf16.mxu0 %v5859_v11  ;;  %v5843_v21 = vcombine.high %v657_v14, %v665_v16  ;;  %2163 = vmatprep.subr.bf16.mxu1 %v5861_v15  ;;  %v5845_v22 = vcombine.high %v658_v17, %v666_v18  ;;  %v641_v23 = vld [vmem:[%s7375_s30 + $0x200] sm:$0xff]  ;;  %v642_v25 = vld [vmem:[%s7375_s30 + $0x208] sm:$0xff]  ;;  %v5842_v27 = vcombine.low %v657_v14, %v665_v16 }
  0xc5   : > { %v649_v24 = vld [vmem:[%s7375_s30 + $0x240] sm:$0xff]  ;;  %v650_v26 = vld [vmem:[%s7375_s30 + $0x248] sm:$0xff]  ;;  %v5844_v28 = vcombine.low %v658_v17, %v666_v18 }
  0xc6   : > { %v5827_v29 = vcombine.high %v641_v23, %v649_v24  ;;  %v5829_v30 = vcombine.high %v642_v25, %v650_v26  ;;  %v625_v31 = vld [vmem:[%s7375_s30 + $0x180] sm:$0xff]  ;;  %v626_v33 = vld [vmem:[%s7375_s30 + $0x188] sm:$0xff]  ;;  %v5826_v35 = vcombine.low %v641_v23, %v649_v24  ;;  %v5828_v36 = vcombine.low %v642_v25, %v650_v26 }
  0xc7   : > { %2123 = vmatpush1.bf16.msra.mxu0 %v5858_v19  ;;  %2164 = vmatpush1.bf16.msra.mxu1 %v5860_v20  ;;  %v633_v32 = vld [vmem:[%s7375_s30 + $0x1c0] sm:$0xff]  ;;  %v634_v34 = vld [vmem:[%s7375_s30 + $0x1c8] sm:$0xff] }
  0xc8   : > { %2124 = vmatprep.subr.bf16.mxu0 %v5843_v21  ;;  %2165 = vmatprep.subr.bf16.mxu1 %v5845_v22  ;;  %v5811_v37 = vcombine.high %v625_v31, %v633_v32  ;;  %v5813_v38 = vcombine.high %v626_v33, %v634_v34  ;;  %v609_v39 = vld [vmem:[%s7375_s30 + $0x100] sm:$0xff]  ;;  %v610_v41 = vld [vmem:[%s7375_s30 + $0x108] sm:$0xff]  ;;  %v5810_v43 = vcombine.low %v625_v31, %v633_v32 }
  0xc9   : > { %v617_v40 = vld [vmem:[%s7375_s30 + $0x140] sm:$0xff]  ;;  %v618_v42 = vld [vmem:[%s7375_s30 + $0x148] sm:$0xff]  ;;  %v5812_v44 = vcombine.low %v626_v33, %v634_v34 }
  0xca   : > { %v5795_v45 = vcombine.high %v609_v39, %v617_v40  ;;  %v5797_v46 = vcombine.high %v610_v41, %v618_v42  ;;  %v593_v47 = vld [vmem:[%s7375_s30 + $0x80] sm:$0xff]  ;;  %v594_v49 = vld [vmem:[%s7375_s30 + $0x88] sm:$0xff]  ;;  %v5794_v51 = vcombine.low %v609_v39, %v617_v40  ;;  %v5796_v52 = vcombine.low %v610_v41, %v618_v42 }
  0xcb   : > { %2125 = vmatpush1.bf16.msra.mxu0 %v5842_v27  ;;  %2166 = vmatpush1.bf16.msra.mxu1 %v5844_v28  ;;  %v601_v48 = vld [vmem:[%s7375_s30 + $0xc0] sm:$0xff]  ;;  %v602_v50 = vld [vmem:[%s7375_s30 + $0xc8] sm:$0xff] }
  0xcc   : > { %2126 = vmatprep.subr.bf16.mxu0 %v5827_v29  ;;  %2167 = vmatprep.subr.bf16.mxu1 %v5829_v30  ;;  %v5779_v53 = vcombine.high %v593_v47, %v601_v48  ;;  %v7454_v54 = vld [vmem:[%s7418_s27] sm:$0xff]  ;;  %v5781_v55 = vcombine.high %v594_v49, %v602_v50  ;;  %v578_v59 = vld [vmem:[%s7375_s30 + $0x8] sm:$0xff]  ;;  %v5778_v61 = vcombine.low %v593_v47, %v601_v48 }
  0xcd   : > { %v577_v56 = vld [vmem:[%s7375_s30] sm:$0xff]  ;;  %v7460_v58 = vcombine.high %v7454_v54, %v7454_v54  ;;  %v586_v60 = vld [vmem:[%s7375_s30 + $0x48] sm:$0xff]  ;;  %v5780_v62 = vcombine.low %v594_v49, %v602_v50 }
  0xce   : > { %v585_v57 = vld [vmem:[%s7375_s30 + $0x40] sm:$0xff]  ;;  %v5765_v0 = vcombine.high %v578_v59, %v586_v60  ;;  %v818_v3 = vld [vmem:[%s7375_s30 + $0x788] sm:$0xff]  ;;  %v5764_v6 = vcombine.low %v578_v59, %v586_v60 }
  0xcf   : > { %2127 = vmatpush1.bf16.msra.mxu0 %v5826_v35  ;;  %2168 = vmatpush1.bf16.msra.mxu1 %v5828_v36  ;;  %v5763_v63 = vcombine.high %v577_v56, %v585_v57  ;;  %v817_v1 = vld [vmem:[%s7375_s30 + $0x780] sm:$0xff]  ;;  %v826_v4 = vld [vmem:[%s7375_s30 + $0x7c8] sm:$0xff]  ;;  %v5762_v5 = vcombine.low %v577_v56, %v585_v57 }
  0xd0   : > { %2128 = vmatprep.subr.bf16.mxu0 %v5811_v37  ;;  %2169 = vmatprep.subr.bf16.mxu1 %v5813_v38  ;;  %v825_v2 = vld [vmem:[%s7375_s30 + $0x7c0] sm:$0xff]  ;;  %v6005_v8 = vcombine.high %v818_v3, %v826_v4  ;;  %v802_v11 = vld [vmem:[%s7375_s30 + $0x708] sm:$0xff]  ;;  %v6004_v14 = vcombine.low %v818_v3, %v826_v4  ;;  %v691_v3 = vld [vmem:[%s7375_s30 + $0x390] sm:$0xff] }
  0xd1   : > { %2152 = vmatprep.mubr.bf16.mxu0 %v7460_v58  ;;  %2193 = vmatprep.mubr.bf16.mxu1 %v7460_v58  ;;  %v6003_v7 = vcombine.high %v817_v1, %v825_v2  ;;  %v801_v9 = vld [vmem:[%s7375_s30 + $0x700] sm:$0xff]  ;;  %v810_v12 = vld [vmem:[%s7375_s30 + $0x748] sm:$0xff]  ;;  %v6002_v13 = vcombine.low %v817_v1, %v825_v2  ;;  %v699_v4 = vld [vmem:[%s7375_s30 + $0x3d0] sm:$0xff] }
  0xd2   : > { %v809_v10 = vld [vmem:[%s7375_s30 + $0x740] sm:$0xff]  ;;  %v5989_v16 = vcombine.high %v802_v11, %v810_v12  ;;  %v786_v19 = vld [vmem:[%s7375_s30 + $0x688] sm:$0xff]  ;;  %v5988_v22 = vcombine.low %v802_v11, %v810_v12  ;;  %v675_v11 = vld [vmem:[%s7375_s30 + $0x310] sm:$0xff] }
  0xd3   : > { %2129 = vmatpush1.bf16.msra.mxu0 %v5810_v43  ;;  %2170 = vmatpush1.bf16.msra.mxu1 %v5812_v44  ;;  %v5987_v15 = vcombine.high %v801_v9, %v809_v10  ;;  %v785_v17 = vld [vmem:[%s7375_s30 + $0x680] sm:$0xff]  ;;  %v794_v20 = vld [vmem:[%s7375_s30 + $0x6c8] sm:$0xff]  ;;  %v5986_v21 = vcombine.low %v801_v9, %v809_v10  ;;  %v5879_v9 = vcombine.high %v691_v3, %v699_v4  ;;  %v683_v12 = vld [vmem:[%s7375_s30 + $0x350] sm:$0xff] }
  0xd4   : > { %2130 = vmatprep.subr.bf16.mxu0 %v5795_v45  ;;  %2171 = vmatprep.subr.bf16.mxu1 %v5797_v46  ;;  %v793_v18 = vld [vmem:[%s7375_s30 + $0x6c0] sm:$0xff]  ;;  %v5973_v24 = vcombine.high %v786_v19, %v794_v20  ;;  %v770_v27 = vld [vmem:[%s7375_s30 + $0x608] sm:$0xff]  ;;  %v5972_v30 = vcombine.low %v786_v19, %v794_v20  ;;  %v659_v20 = vld [vmem:[%s7375_s30 + $0x290] sm:$0xff] }
  0xd5   : > { %v5971_v23 = vcombine.high %v785_v17, %v793_v18  ;;  %v769_v25 = vld [vmem:[%s7375_s30 + $0x600] sm:$0xff]  ;;  %v778_v28 = vld [vmem:[%s7375_s30 + $0x648] sm:$0xff]  ;;  %v5970_v29 = vcombine.low %v785_v17, %v793_v18  ;;  %v5863_v18 = vcombine.high %v675_v11, %v683_v12 }
  0xd6   : > { %v777_v26 = vld [vmem:[%s7375_s30 + $0x640] sm:$0xff]  ;;  %v5957_v32 = vcombine.high %v770_v27, %v778_v28  ;;  %v754_v35 = vld [vmem:[%s7375_s30 + $0x588] sm:$0xff]  ;;  %v5956_v38 = vcombine.low %v770_v27, %v778_v28  ;;  %v643_v27 = vld [vmem:[%s7375_s30 + $0x210] sm:$0xff] }
  0xd7   : > { %2131 = vmatpush1.bf16.msra.mxu0 %v5794_v51  ;;  %2172 = vmatpush1.bf16.msra.mxu1 %v5796_v52  ;;  %v5955_v31 = vcombine.high %v769_v25, %v777_v26  ;;  %v753_v33 = vld [vmem:[%s7375_s30 + $0x580] sm:$0xff]  ;;  %v762_v36 = vld [vmem:[%s7375_s30 + $0x5c8] sm:$0xff]  ;;  %v5954_v37 = vcombine.low %v769_v25, %v777_v26  ;;  %v651_v28 = vld [vmem:[%s7375_s30 + $0x250] sm:$0xff] }
  0xd8   : > { %2132 = vmatprep.subr.bf16.mxu0 %v5779_v53  ;;  %2173 = vmatprep.subr.bf16.mxu1 %v5781_v55  ;;  %v761_v34 = vld [vmem:[%s7375_s30 + $0x5c0] sm:$0xff]  ;;  %v5941_v40 = vcombine.high %v754_v35, %v762_v36  ;;  %v738_v43 = vld [vmem:[%s7375_s30 + $0x508] sm:$0xff]  ;;  %v5940_v46 = vcombine.low %v754_v35, %v762_v36  ;;  %v627_v35 = vld [vmem:[%s7375_s30 + $0x190] sm:$0xff] }
  0xd9   : > { %v5939_v39 = vcombine.high %v753_v33, %v761_v34  ;;  %v737_v41 = vld [vmem:[%s7375_s30 + $0x500] sm:$0xff]  ;;  %v746_v44 = vld [vmem:[%s7375_s30 + $0x548] sm:$0xff]  ;;  %v5938_v45 = vcombine.low %v753_v33, %v761_v34  ;;  %v5831_v33 = vcombine.high %v643_v27, %v651_v28  ;;  %v635_v36 = vld [vmem:[%s7375_s30 + $0x1d0] sm:$0xff] }
  0xda   : > { %v745_v42 = vld [vmem:[%s7375_s30 + $0x540] sm:$0xff]  ;;  %v5925_v48 = vcombine.high %v738_v43, %v746_v44  ;;  %v722_v51 = vld [vmem:[%s7375_s30 + $0x488] sm:$0xff]  ;;  %v5924_v55 = vcombine.low %v738_v43, %v746_v44  ;;  %v611_v43 = vld [vmem:[%s7375_s30 + $0x110] sm:$0xff] }
  0xdb   : > { %2133 = vmatpush1.bf16.msra.mxu0 %v5778_v61  ;;  %2174 = vmatpush1.bf16.msra.mxu1 %v5780_v62  ;;  %v5923_v47 = vcombine.high %v737_v41, %v745_v42  ;;  %v721_v49 = vld [vmem:[%s7375_s30 + $0x480] sm:$0xff]  ;;  %v730_v52 = vld [vmem:[%s7375_s30 + $0x4c8] sm:$0xff]  ;;  %v5922_v53 = vcombine.low %v737_v41, %v745_v42  ;;  %v5815_v41 = vcombine.high %v627_v35, %v635_v36  ;;  %v619_v44 = vld [vmem:[%s7375_s30 + $0x150] sm:$0xff] }
  0xdc   : > { %2134 = vmatprep.subr.bf16.mxu0 %v5763_v63  ;;  %2175 = vmatprep.subr.bf16.mxu1 %v5765_v0  ;;  %v729_v50 = vld [vmem:[%s7375_s30 + $0x4c0] sm:$0xff]  ;;  %v5909_v57 = vcombine.high %v722_v51, %v730_v52  ;;  %v706_v61 = vld [vmem:[%s7375_s30 + $0x408] sm:$0xff]  ;;  %v5908_v0 = vcombine.low %v722_v51, %v730_v52  ;;  %v595_v51 = vld [vmem:[%s7375_s30 + $0x90] sm:$0xff] }
  0xdd   : > { %v5907_v56 = vcombine.high %v721_v49, %v729_v50  ;;  %v705_v59 = vld [vmem:[%s7375_s30 + $0x400] sm:$0xff]  ;;  %v714_v62 = vld [vmem:[%s7375_s30 + $0x448] sm:$0xff]  ;;  %v5906_v63 = vcombine.low %v721_v49, %v729_v50  ;;  %v5799_v49 = vcombine.high %v611_v43, %v619_v44  ;;  %v603_v52 = vld [vmem:[%s7375_s30 + $0xd0] sm:$0xff] }
  0xde   : > { %v713_v60 = vld [vmem:[%s7375_s30 + $0x440] sm:$0xff]  ;;  %v5893_v2 = vcombine.high %v706_v61, %v714_v62 }
  0xdf   : > { %2135 = vmatpush1.bf16.msra.mxu0 %v5762_v5  ;;  %2176 = vmatpush1.bf16.msra.mxu1 %v5764_v6  ;;  %v5891_v1 = vcombine.high %v705_v59, %v713_v60  ;;  %v692_v5 = vld [vmem:[%s7375_s30 + $0x398] sm:$0xff] }
  0xe0   : > { %2136 = vmatprep.subr.bf16.mxu0 %v6003_v7  ;;  %2177 = vmatprep.subr.bf16.mxu1 %v6005_v8  ;;  %v700_v6 = vld [vmem:[%s7375_s30 + $0x3d8] sm:$0xff]  ;;  %v5890_v7 = vcombine.low %v705_v59, %v713_v60  ;;  %v5892_v8 = vcombine.low %v706_v61, %v714_v62  ;;  %v5783_v59 = vcombine.high %v595_v51, %v603_v52  ;;  %v579_v61 = vld [vmem:[%s7375_s30 + $0x10] sm:$0xff] }
  0xe1   : > { %v5881_v10 = vcombine.high %v692_v5, %v700_v6  ;;  %v5880_v17 = vcombine.low %v692_v5, %v700_v6  ;;  %v587_v62 = vld [vmem:[%s7375_s30 + $0x50] sm:$0xff] }
  0xe2   : > { %v819_v5 = vld [vmem:[%s7375_s30 + $0x790] sm:$0xff] }
  0xe3   : > { %2137 = vmatpush2.bf16.msra.mxu0 %v6002_v13  ;;  %2178 = vmatpush2.bf16.msra.mxu1 %v6004_v14  ;;  %v7506_v13 = vcombine.low %v7454_v54, %v7454_v54  ;;  %v676_v14 = vld [vmem:[%s7375_s30 + $0x318] sm:$0xff]  ;;  %v827_v6 = vld [vmem:[%s7375_s30 + $0x7d0] sm:$0xff] }
  0xe4   : > { %2138 = vmatprep.subr.bf16.mxu0 %v5987_v15  ;;  %2179 = vmatprep.subr.bf16.mxu1 %v5989_v16  ;;  %v684_v15 = vld [vmem:[%s7375_s30 + $0x358] sm:$0xff]  ;;  %v5878_v16 = vcombine.low %v691_v3, %v699_v4  ;;  %v5767_v3 = vcombine.high %v579_v61, %v587_v62 }
  0xe5   : > { %v5865_v19 = vcombine.high %v676_v14, %v684_v15  ;;  %v660_v54 = vld [vmem:[%s7375_s30 + $0x298] sm:$0xff] }
  0xe7   : > { %2139 = vmatpush2.bf16.msra.mxu0 %v5986_v21  ;;  %2180 = vmatpush2.bf16.msra.mxu1 %v5988_v22  ;;  %v667_v21 = vld [vmem:[%s7375_s30 + $0x2d0] sm:$0xff]  ;;  %v668_v22 = vld [vmem:[%s7375_s30 + $0x2d8] sm:$0xff] }
  0xe8   : > { %2140 = vmatprep.subr.bf16.mxu0 %v5971_v23  ;;  %2181 = vmatprep.subr.bf16.mxu1 %v5973_v24  ;;  %v5862_v23 = vcombine.low %v675_v11, %v683_v12  ;;  %v5864_v24 = vcombine.low %v676_v14, %v684_v15  ;;  %v5847_v25 = vcombine.high %v659_v20, %v667_v21  ;;  %v803_v14 = vld [vmem:[%s7375_s30 + $0x710] sm:$0xff] }
  0xe9   : > { %v5849_v26 = vcombine.high %v660_v54, %v668_v22  ;;  %v6007_v11 = vcombine.high %v819_v5, %v827_v6  ;;  %v811_v15 = vld [vmem:[%s7375_s30 + $0x750] sm:$0xff] }
  0xeb   : > { %2141 = vmatpush2.bf16.msra.mxu0 %v5970_v29  ;;  %2182 = vmatpush2.bf16.msra.mxu1 %v5972_v30  ;;  %v644_v29 = vld [vmem:[%s7375_s30 + $0x218] sm:$0xff] }
  0xec   : > { %2142 = vmatprep.subr.bf16.mxu0 %v5955_v31  ;;  %2183 = vmatprep.subr.bf16.mxu1 %v5957_v32  ;;  %v652_v30 = vld [vmem:[%s7375_s30 + $0x258] sm:$0xff]  ;;  %v5846_v31 = vcombine.low %v659_v20, %v667_v21  ;;  %v5848_v32 = vcombine.low %v660_v54, %v668_v22  ;;  %v5991_v20 = vcombine.high %v803_v14, %v811_v15  ;;  %v787_v54 = vld [vmem:[%s7375_s30 + $0x690] sm:$0xff] }
  0xed   : > { %v5833_v34 = vcombine.high %v644_v29, %v652_v30  ;;  %v795_v22 = vld [vmem:[%s7375_s30 + $0x6d0] sm:$0xff] }
  0xef   : > { %2143 = vmatpush2.bf16.msra.mxu0 %v5954_v37  ;;  %2184 = vmatpush2.bf16.msra.mxu1 %v5956_v38  ;;  %v628_v37 = vld [vmem:[%s7375_s30 + $0x198] sm:$0xff] }
  0xf0   : > { %2144 = vmatprep.subr.bf16.mxu0 %v5939_v39  ;;  %2185 = vmatprep.subr.bf16.mxu1 %v5941_v40  ;;  %v636_v38 = vld [vmem:[%s7375_s30 + $0x1d8] sm:$0xff]  ;;  %v5830_v39 = vcombine.low %v643_v27, %v651_v28  ;;  %v5832_v40 = vcombine.low %v644_v29, %v652_v30  ;;  %v5975_v27 = vcombine.high %v787_v54, %v795_v22  ;;  %v771_v29 = vld [vmem:[%s7375_s30 + $0x610] sm:$0xff] }
  0xf1   : > { %v5817_v42 = vcombine.high %v628_v37, %v636_v38  ;;  %v779_v30 = vld [vmem:[%s7375_s30 + $0x650] sm:$0xff] }
  0xf3   : > { %2145 = vmatpush2.bf16.msra.mxu0 %v5938_v45  ;;  %2186 = vmatpush2.bf16.msra.mxu1 %v5940_v46  ;;  %v612_v45 = vld [vmem:[%s7375_s30 + $0x118] sm:$0xff] }
  0xf4   : > { %2146 = vmatprep.subr.bf16.mxu0 %v5923_v47  ;;  %2187 = vmatprep.subr.bf16.mxu1 %v5925_v48  ;;  %v620_v46 = vld [vmem:[%s7375_s30 + $0x158] sm:$0xff]  ;;  %v5814_v47 = vcombine.low %v627_v35, %v635_v36  ;;  %v5816_v48 = vcombine.low %v628_v37, %v636_v38  ;;  %v5959_v35 = vcombine.high %v771_v29, %v779_v30  ;;  %v755_v37 = vld [vmem:[%s7375_s30 + $0x590] sm:$0xff] }
  0xf5   : > { %v5801_v50 = vcombine.high %v612_v45, %v620_v46  ;;  %v763_v38 = vld [vmem:[%s7375_s30 + $0x5d0] sm:$0xff] }
  0xf7   : > { %2147 = vmatpush2.bf16.msra.mxu0 %v5922_v53  ;;  %2188 = vmatpush2.bf16.msra.mxu1 %v5924_v55  ;;  %v596_v53 = vld [vmem:[%s7375_s30 + $0x98] sm:$0xff] }
  0xf8   : > { %2148 = vmatprep.subr.bf16.mxu0 %v5907_v56  ;;  %2189 = vmatprep.subr.bf16.mxu1 %v5909_v57  ;;  %v604_v55 = vld [vmem:[%s7375_s30 + $0xd8] sm:$0xff]  ;;  %v5798_v56 = vcombine.low %v611_v43, %v619_v44  ;;  %v5800_v57 = vcombine.low %v612_v45, %v620_v46  ;;  %v5943_v43 = vcombine.high %v755_v37, %v763_v38  ;;  %v739_v45 = vld [vmem:[%s7375_s30 + $0x510] sm:$0xff] }
  0xf9   : > { %v5785_v60 = vcombine.high %v596_v53, %v604_v55  ;;  %v747_v46 = vld [vmem:[%s7375_s30 + $0x550] sm:$0xff] }
  0xfb   : > { %2149 = vmatpush2.bf16.msra.mxu0 %v5906_v63  ;;  %2190 = vmatpush2.bf16.msra.mxu1 %v5908_v0  ;;  %v580_v63 = vld [vmem:[%s7375_s30 + $0x18] sm:$0xff] }
  0xfc   : > { %2150 = vmatprep.subr.bf16.mxu0 %v5891_v1  ;;  %2191 = vmatprep.subr.bf16.mxu1 %v5893_v2  ;;  %v588_v0 = vld [vmem:[%s7375_s30 + $0x58] sm:$0xff]  ;;  %v5782_v1 = vcombine.low %v595_v51, %v603_v52  ;;  %v5784_v2 = vcombine.low %v596_v53, %v604_v55  ;;  %v5927_v51 = vcombine.high %v739_v45, %v747_v46  ;;  %v723_v53 = vld [vmem:[%s7375_s30 + $0x490] sm:$0xff] }
  0xfd   : > { %v5769_v4 = vcombine.high %v580_v63, %v588_v0  ;;  %v731_v55 = vld [vmem:[%s7375_s30 + $0x4d0] sm:$0xff] }
  0xff   : > { %2151 = vmatpush2.bf16.msra.mxu0 %v5890_v7  ;;  %2192 = vmatpush2.bf16.msra.mxu1 %v5892_v8  ;;  %v820_v7 = vld [vmem:[%s7375_s30 + $0x798] sm:$0xff] }
 0x100   : > { %2202 = vmatprep.subr.bf16.mxu0 %v5879_v9  ;;  %2243 = vmatprep.subr.bf16.mxu1 %v5881_v10  ;;  %v828_v8 = vld [vmem:[%s7375_s30 + $0x7d8] sm:$0xff]  ;;  %v5766_v9 = vcombine.low %v579_v61, %v587_v62  ;;  %v5768_v10 = vcombine.low %v580_v63, %v588_v0  ;;  %v5911_v61 = vcombine.high %v723_v53, %v731_v55  ;;  %v707_v63 = vld [vmem:[%s7375_s30 + $0x410] sm:$0xff] }
 0x101   : > { %v6009_v12 = vcombine.high %v820_v7, %v828_v8  ;;  %v715_v0 = vld [vmem:[%s7375_s30 + $0x450] sm:$0xff] }
 0x102   : > { %2153 = vmatmul.mubr.bf16.vlgmr.msra.gmra.mxu0 %v7506_v13  ;;  %2194 = vmatmul.mubr.bf16.vlgmr.msra.gmra.mxu1 %v7506_v13 }
 0x103   : > { %2203 = vmatpush1.bf16.msra.mxu0 %v5878_v16  ;;  %2244 = vmatpush1.bf16.msra.mxu1 %v5880_v17  ;;  %v804_v16 = vld [vmem:[%s7375_s30 + $0x718] sm:$0xff] }
 0x104   : > { %2204 = vmatprep.subr.bf16.mxu0 %v5863_v18  ;;  %2245 = vmatprep.subr.bf16.mxu1 %v5865_v19  ;;  %v812_v17 = vld [vmem:[%s7375_s30 + $0x758] sm:$0xff]  ;;  %v6006_v18 = vcombine.low %v819_v5, %v827_v6  ;;  %v6008_v19 = vcombine.low %v820_v7, %v828_v8  ;;  %v5895_v5 = vcombine.high %v707_v63, %v715_v0  ;;  %v693_v7 = vld [vmem:[%s7375_s30 + $0x3a0] sm:$0xff] }
 0x105   : > { %2234 = vmatprep.mubr.bf16.mxu0 %v7460_v58  ;;  %2275 = vmatprep.mubr.bf16.mxu1 %v7460_v58  ;;  %v5993_v21 = vcombine.high %v804_v16, %v812_v17  ;;  %v701_v8 = vld [vmem:[%s7375_s30 + $0x3e0] sm:$0xff] }
 0x107   : > { %2205 = vmatpush1.bf16.msra.mxu0 %v5862_v23  ;;  %2246 = vmatpush1.bf16.msra.mxu1 %v5864_v24  ;;  %v788_v23 = vld [vmem:[%s7375_s30 + $0x698] sm:$0xff] }
 0x108   : > { %2206 = vmatprep.subr.bf16.mxu0 %v5847_v25  ;;  %2247 = vmatprep.subr.bf16.mxu1 %v5849_v26  ;;  %v796_v24 = vld [vmem:[%s7375_s30 + $0x6d8] sm:$0xff]  ;;  %v5990_v25 = vcombine.low %v803_v14, %v811_v15  ;;  %v5992_v26 = vcombine.low %v804_v16, %v812_v17  ;;  %v5883_v14 = vcombine.high %v693_v7, %v701_v8  ;;  %v677_v16 = vld [vmem:[%s7375_s30 + $0x320] sm:$0xff] }
 0x109   : > { %v5977_v28 = vcombine.high %v788_v23, %v796_v24  ;;  %v685_v17 = vld [vmem:[%s7375_s30 + $0x360] sm:$0xff] }
 0x10b   : > { %2207 = vmatpush1.bf16.msra.mxu0 %v5846_v31  ;;  %2248 = vmatpush1.bf16.msra.mxu1 %v5848_v32  ;;  %v772_v31 = vld [vmem:[%s7375_s30 + $0x618] sm:$0xff] }
 0x10c   : > { %2208 = vmatprep.subr.bf16.mxu0 %v5831_v33  ;;  %2249 = vmatprep.subr.bf16.mxu1 %v5833_v34  ;;  %v780_v32 = vld [vmem:[%s7375_s30 + $0x658] sm:$0xff]  ;;  %v5974_v33 = vcombine.low %v787_v54, %v795_v22  ;;  %v5976_v34 = vcombine.low %v788_v23, %v796_v24  ;;  %v5867_v54 = vcombine.high %v677_v16, %v685_v17  ;;  %v661_v23 = vld [vmem:[%s7375_s30 + $0x2a0] sm:$0xff] }
 0x10d   : > { %v5961_v36 = vcombine.high %v772_v31, %v780_v32  ;;  %v669_v24 = vld [vmem:[%s7375_s30 + $0x2e0] sm:$0xff] }
 0x10f   : > { %2209 = vmatpush1.bf16.msra.mxu0 %v5830_v39  ;;  %2250 = vmatpush1.bf16.msra.mxu1 %v5832_v40  ;;  %v756_v39 = vld [vmem:[%s7375_s30 + $0x598] sm:$0xff] }
 0x110   : > { %2210 = vmatprep.subr.bf16.mxu0 %v5815_v41  ;;  %2251 = vmatprep.subr.bf16.mxu1 %v5817_v42  ;;  %v764_v40 = vld [vmem:[%s7375_s30 + $0x5d8] sm:$0xff]  ;;  %v5958_v41 = vcombine.low %v771_v29, %v779_v30  ;;  %v5960_v42 = vcombine.low %v772_v31, %v780_v32  ;;  %v5851_v29 = vcombine.high %v661_v23, %v669_v24  ;;  %v645_v31 = vld [vmem:[%s7375_s30 + $0x220] sm:$0xff] }
 0x111   : > { %v5945_v44 = vcombine.high %v756_v39, %v764_v40  ;;  %v653_v32 = vld [vmem:[%s7375_s30 + $0x260] sm:$0xff] }
 0x113   : > { %2211 = vmatpush1.bf16.msra.mxu0 %v5814_v47  ;;  %2252 = vmatpush1.bf16.msra.mxu1 %v5816_v48  ;;  %v740_v47 = vld [vmem:[%s7375_s30 + $0x518] sm:$0xff] }
 0x114   : > { %2212 = vmatprep.subr.bf16.mxu0 %v5799_v49  ;;  %2253 = vmatprep.subr.bf16.mxu1 %v5801_v50  ;;  %v748_v48 = vld [vmem:[%s7375_s30 + $0x558] sm:$0xff]  ;;  %v5942_v49 = vcombine.low %v755_v37, %v763_v38  ;;  %v5944_v50 = vcombine.low %v756_v39, %v764_v40  ;;  %v5835_v37 = vcombine.high %v645_v31, %v653_v32  ;;  %v629_v39 = vld [vmem:[%s7375_s30 + $0x1a0] sm:$0xff] }
 0x115   : > { %v5929_v52 = vcombine.high %v740_v47, %v748_v48  ;;  %v637_v40 = vld [vmem:[%s7375_s30 + $0x1e0] sm:$0xff] }
 0x117   : > { %2213 = vmatpush1.bf16.msra.mxu0 %v5798_v56  ;;  %2254 = vmatpush1.bf16.msra.mxu1 %v5800_v57  ;;  %v724_v56 = vld [vmem:[%s7375_s30 + $0x498] sm:$0xff] }
 0x118   : > { %2214 = vmatprep.subr.bf16.mxu0 %v5783_v59  ;;  %2255 = vmatprep.subr.bf16.mxu1 %v5785_v60  ;;  %v732_v57 = vld [vmem:[%s7375_s30 + $0x4d8] sm:$0xff]  ;;  %v5926_v59 = vcombine.low %v739_v45, %v747_v46  ;;  %v5928_v60 = vcombine.low %v740_v47, %v748_v48  ;;  %v5819_v45 = vcombine.high %v629_v39, %v637_v40  ;;  %v613_v47 = vld [vmem:[%s7375_s30 + $0x120] sm:$0xff] }
 0x119   : > { %v5913_v62 = vcombine.high %v724_v56, %v732_v57  ;;  %v621_v48 = vld [vmem:[%s7375_s30 + $0x160] sm:$0xff] }
 0x11b   : > { %2215 = vmatpush1.bf16.msra.mxu0 %v5782_v1  ;;  %2256 = vmatpush1.bf16.msra.mxu1 %v5784_v2  ;;  %v708_v1 = vld [vmem:[%s7375_s30 + $0x418] sm:$0xff] }
 0x11c   : > { %2216 = vmatprep.subr.bf16.mxu0 %v5767_v3  ;;  %2257 = vmatprep.subr.bf16.mxu1 %v5769_v4  ;;  %v716_v2 = vld [vmem:[%s7375_s30 + $0x458] sm:$0xff]  ;;  %v5910_v3 = vcombine.low %v723_v53, %v731_v55  ;;  %v5912_v4 = vcombine.low %v724_v56, %v732_v57  ;;  %v5803_v53 = vcombine.high %v613_v47, %v621_v48  ;;  %v597_v56 = vld [vmem:[%s7375_s30 + $0xa0] sm:$0xff] }
 0x11d   : > { %v5897_v6 = vcombine.high %v708_v1, %v716_v2  ;;  %v605_v57 = vld [vmem:[%s7375_s30 + $0xe0] sm:$0xff] }
 0x11f   : > { %2217 = vmatpush1.bf16.msra.mxu0 %v5766_v9  ;;  %2258 = vmatpush1.bf16.msra.mxu1 %v5768_v10  ;;  %v694_v9 = vld [vmem:[%s7375_s30 + $0x3a8] sm:$0xff] }
 0x120   : > { %2218 = vmatprep.subr.bf16.mxu0 %v6007_v11  ;;  %2259 = vmatprep.subr.bf16.mxu1 %v6009_v12  ;;  %v702_v10 = vld [vmem:[%s7375_s30 + $0x3e8] sm:$0xff]  ;;  %v5894_v11 = vcombine.low %v707_v63, %v715_v0  ;;  %v5896_v12 = vcombine.low %v708_v1, %v716_v2  ;;  %v5787_v63 = vcombine.high %v597_v56, %v605_v57  ;;  %v581_v1 = vld [vmem:[%s7375_s30 + $0x20] sm:$0xff] }
 0x121   : > { %v5885_v15 = vcombine.high %v694_v9, %v702_v10  ;;  %v589_v2 = vld [vmem:[%s7375_s30 + $0x60] sm:$0xff] }
 0x123   : > { %2219 = vmatpush2.bf16.msra.mxu0 %v6006_v18  ;;  %2260 = vmatpush2.bf16.msra.mxu1 %v6008_v19  ;;  %v678_v18 = vld [vmem:[%s7375_s30 + $0x328] sm:$0xff] }
 0x124   : > { %2220 = vmatprep.subr.bf16.mxu0 %v5991_v20  ;;  %2261 = vmatprep.subr.bf16.mxu1 %v5993_v21  ;;  %v686_v19 = vld [vmem:[%s7375_s30 + $0x368] sm:$0xff]  ;;  %v5882_v20 = vcombine.low %v693_v7, %v701_v8  ;;  %v5884_v21 = vcombine.low %v694_v9, %v702_v10  ;;  %v5771_v7 = vcombine.high %v581_v1, %v589_v2  ;;  %v821_v9 = vld [vmem:[%s7375_s30 + $0x7a0] sm:$0xff] }
 0x125   : > { %v5869_v22 = vcombine.high %v678_v18, %v686_v19  ;;  %v829_v10 = vld [vmem:[%s7375_s30 + $0x7e0] sm:$0xff] }
 0x127   : > { %2221 = vmatpush2.bf16.msra.mxu0 %v5990_v25  ;;  %2262 = vmatpush2.bf16.msra.mxu1 %v5992_v26  ;;  %v662_v25 = vld [vmem:[%s7375_s30 + $0x2a8] sm:$0xff] }
 0x128   : > { %2222 = vmatprep.subr.bf16.mxu0 %v5975_v27  ;;  %2263 = vmatprep.subr.bf16.mxu1 %v5977_v28  ;;  %v670_v26 = vld [vmem:[%s7375_s30 + $0x2e8] sm:$0xff]  ;;  %v5866_v27 = vcombine.low %v677_v16, %v685_v17  ;;  %v5868_v28 = vcombine.low %v678_v18, %v686_v19  ;;  %v6011_v16 = vcombine.high %v821_v9, %v829_v10  ;;  %v805_v18 = vld [vmem:[%s7375_s30 + $0x720] sm:$0xff] }
 0x129   : > { %v5853_v30 = vcombine.high %v662_v25, %v670_v26  ;;  %v813_v19 = vld [vmem:[%s7375_s30 + $0x760] sm:$0xff] }
 0x12b   : > { %2223 = vmatpush2.bf16.msra.mxu0 %v5974_v33  ;;  %2264 = vmatpush2.bf16.msra.mxu1 %v5976_v34  ;;  %v646_v33 = vld [vmem:[%s7375_s30 + $0x228] sm:$0xff] }
 0x12c   : > { %2224 = vmatprep.subr.bf16.mxu0 %v5959_v35  ;;  %2265 = vmatprep.subr.bf16.mxu1 %v5961_v36  ;;  %v654_v34 = vld [vmem:[%s7375_s30 + $0x268] sm:$0xff]  ;;  %v5850_v35 = vcombine.low %v661_v23, %v669_v24  ;;  %v5852_v36 = vcombine.low %v662_v25, %v670_v26  ;;  %v5995_v23 = vcombine.high %v805_v18, %v813_v19  ;;  %v789_v25 = vld [vmem:[%s7375_s30 + $0x6a0] sm:$0xff] }
 0x12d   : > { %v5837_v38 = vcombine.high %v646_v33, %v654_v34  ;;  %v797_v26 = vld [vmem:[%s7375_s30 + $0x6e0] sm:$0xff] }
 0x12f   : > { %2225 = vmatpush2.bf16.msra.mxu0 %v5958_v41  ;;  %2266 = vmatpush2.bf16.msra.mxu1 %v5960_v42  ;;  %v630_v41 = vld [vmem:[%s7375_s30 + $0x1a8] sm:$0xff] }
 0x130   : > { %2226 = vmatprep.subr.bf16.mxu0 %v5943_v43  ;;  %2267 = vmatprep.subr.bf16.mxu1 %v5945_v44  ;;  %v638_v42 = vld [vmem:[%s7375_s30 + $0x1e8] sm:$0xff]  ;;  %v5834_v43 = vcombine.low %v645_v31, %v653_v32  ;;  %v5836_v44 = vcombine.low %v646_v33, %v654_v34  ;;  %v5979_v31 = vcombine.high %v789_v25, %v797_v26  ;;  %v773_v33 = vld [vmem:[%s7375_s30 + $0x620] sm:$0xff] }
 0x131   : > { %v5821_v46 = vcombine.high %v630_v41, %v638_v42  ;;  %v781_v34 = vld [vmem:[%s7375_s30 + $0x660] sm:$0xff] }
 0x133   : > { %2227 = vmatpush2.bf16.msra.mxu0 %v5942_v49  ;;  %2268 = vmatpush2.bf16.msra.mxu1 %v5944_v50  ;;  %v614_v49 = vld [vmem:[%s7375_s30 + $0x128] sm:$0xff] }
 0x134   : > { %2228 = vmatprep.subr.bf16.mxu0 %v5927_v51  ;;  %2269 = vmatprep.subr.bf16.mxu1 %v5929_v52  ;;  %v622_v50 = vld [vmem:[%s7375_s30 + $0x168] sm:$0xff]  ;;  %v5818_v51 = vcombine.low %v629_v39, %v637_v40  ;;  %v5820_v52 = vcombine.low %v630_v41, %v638_v42  ;;  %v5963_v39 = vcombine.high %v773_v33, %v781_v34  ;;  %v757_v41 = vld [vmem:[%s7375_s30 + $0x5a0] sm:$0xff] }
 0x135   : > { %v5805_v55 = vcombine.high %v614_v49, %v622_v50  ;;  %v765_v42 = vld [vmem:[%s7375_s30 + $0x5e0] sm:$0xff] }
 0x137   : > { %2229 = vmatpush2.bf16.msra.mxu0 %v5926_v59  ;;  %2270 = vmatpush2.bf16.msra.mxu1 %v5928_v60  ;;  %v598_v59 = vld [vmem:[%s7375_s30 + $0xa8] sm:$0xff] }
 0x138   : > { %2230 = vmatprep.subr.bf16.mxu0 %v5911_v61  ;;  %2271 = vmatprep.subr.bf16.mxu1 %v5913_v62  ;;  %v606_v60 = vld [vmem:[%s7375_s30 + $0xe8] sm:$0xff]  ;;  %v5802_v61 = vcombine.low %v613_v47, %v621_v48  ;;  %v5804_v62 = vcombine.low %v614_v49, %v622_v50  ;;  %v5947_v47 = vcombine.high %v757_v41, %v765_v42  ;;  %v741_v49 = vld [vmem:[%s7375_s30 + $0x520] sm:$0xff] }
 0x139   : > { %v5789_v0 = vcombine.high %v598_v59, %v606_v60  ;;  %v749_v50 = vld [vmem:[%s7375_s30 + $0x560] sm:$0xff] }
 0x13b   : > { %2231 = vmatpush2.bf16.msra.mxu0 %v5910_v3  ;;  %2272 = vmatpush2.bf16.msra.mxu1 %v5912_v4  ;;  %v582_v3 = vld [vmem:[%s7375_s30 + $0x28] sm:$0xff] }
 0x13c   : > { %2232 = vmatprep.subr.bf16.mxu0 %v5895_v5  ;;  %2273 = vmatprep.subr.bf16.mxu1 %v5897_v6  ;;  %v590_v4 = vld [vmem:[%s7375_s30 + $0x68] sm:$0xff]  ;;  %v5786_v5 = vcombine.low %v597_v56, %v605_v57  ;;  %v5788_v6 = vcombine.low %v598_v59, %v606_v60  ;;  %v5931_v56 = vcombine.high %v741_v49, %v749_v50  ;;  %v725_v59 = vld [vmem:[%s7375_s30 + $0x4a0] sm:$0xff] }
 0x13d   : > { %v5773_v8 = vcombine.high %v582_v3, %v590_v4  ;;  %v733_v60 = vld [vmem:[%s7375_s30 + $0x4e0] sm:$0xff] }
 0x13f   : > { %2233 = vmatpush2.bf16.msra.mxu0 %v5894_v11  ;;  %2274 = vmatpush2.bf16.msra.mxu1 %v5896_v12  ;;  %v822_v11 = vld [vmem:[%s7375_s30 + $0x7a8] sm:$0xff] }
 0x140   : > { %2284 = vmatprep.subr.bf16.mxu0 %v5883_v14  ;;  %2325 = vmatprep.subr.bf16.mxu1 %v5885_v15  ;;  %v830_v12 = vld [vmem:[%s7375_s30 + $0x7e8] sm:$0xff]  ;;  %v5770_v14 = vcombine.low %v581_v1, %v589_v2  ;;  %v5772_v15 = vcombine.low %v582_v3, %v590_v4  ;;  %v5915_v1 = vcombine.high %v725_v59, %v733_v60  ;;  %v709_v3 = vld [vmem:[%s7375_s30 + $0x420] sm:$0xff] }
 0x141   : > { %v6013_v17 = vcombine.high %v822_v11, %v830_v12  ;;  %v717_v4 = vld [vmem:[%s7375_s30 + $0x460] sm:$0xff] }
 0x142   : > { %2235 = vmatmul.mubr.bf16.vlgmr.msra.gmra.mxu0 %v7506_v13  ;;  %2276 = vmatmul.mubr.bf16.vlgmr.msra.gmra.mxu1 %v7506_v13 }
 0x143   : > { %2285 = vmatpush1.bf16.msra.mxu0 %v5882_v20  ;;  %2326 = vmatpush1.bf16.msra.mxu1 %v5884_v21  ;;  %v806_v20 = vld [vmem:[%s7375_s30 + $0x728] sm:$0xff] }
 0x144   : > { %2286 = vmatprep.subr.bf16.mxu0 %v5867_v54  ;;  %2327 = vmatprep.subr.bf16.mxu1 %v5869_v22  ;;  %v814_v21 = vld [vmem:[%s7375_s30 + $0x768] sm:$0xff]  ;;  %v6010_v54 = vcombine.low %v821_v9, %v829_v10  ;;  %v6012_v22 = vcombine.low %v822_v11, %v830_v12  ;;  %v5899_v9 = vcombine.high %v709_v3, %v717_v4  ;;  %v695_v11 = vld [vmem:[%s7375_s30 + $0x3b0] sm:$0xff] }
 0x145   : > { %2316 = vmatprep.mubr.bf16.mxu0 %v7460_v58  ;;  %2357 = vmatprep.mubr.bf16.mxu1 %v7460_v58  ;;  %v5997_v24 = vcombine.high %v806_v20, %v814_v21  ;;  %v703_v12 = vld [vmem:[%s7375_s30 + $0x3f0] sm:$0xff] }
 0x147   : > { %2287 = vmatpush1.bf16.msra.mxu0 %v5866_v27  ;;  %2328 = vmatpush1.bf16.msra.mxu1 %v5868_v28  ;;  %v790_v27 = vld [vmem:[%s7375_s30 + $0x6a8] sm:$0xff] }
 0x148   : > { %2288 = vmatprep.subr.bf16.mxu0 %v5851_v29  ;;  %2329 = vmatprep.subr.bf16.mxu1 %v5853_v30  ;;  %v798_v28 = vld [vmem:[%s7375_s30 + $0x6e8] sm:$0xff]  ;;  %v5994_v29 = vcombine.low %v805_v18, %v813_v19  ;;  %v5996_v30 = vcombine.low %v806_v20, %v814_v21  ;;  %v5887_v18 = vcombine.high %v695_v11, %v703_v12  ;;  %v679_v20 = vld [vmem:[%s7375_s30 + $0x330] sm:$0xff] }
 0x149   : > { %v5981_v32 = vcombine.high %v790_v27, %v798_v28  ;;  %v687_v21 = vld [vmem:[%s7375_s30 + $0x370] sm:$0xff] }
 0x14b   : > { %2289 = vmatpush1.bf16.msra.mxu0 %v5850_v35  ;;  %2330 = vmatpush1.bf16.msra.mxu1 %v5852_v36  ;;  %v774_v35 = vld [vmem:[%s7375_s30 + $0x628] sm:$0xff] }
 0x14c   : > { %2290 = vmatprep.subr.bf16.mxu0 %v5835_v37  ;;  %2331 = vmatprep.subr.bf16.mxu1 %v5837_v38  ;;  %v782_v36 = vld [vmem:[%s7375_s30 + $0x668] sm:$0xff]  ;;  %v5978_v37 = vcombine.low %v789_v25, %v797_v26  ;;  %v5980_v38 = vcombine.low %v790_v27, %v798_v28  ;;  %v5871_v25 = vcombine.high %v679_v20, %v687_v21  ;;  %v663_v27 = vld [vmem:[%s7375_s30 + $0x2b0] sm:$0xff] }
 0x14d   : > { %v5965_v40 = vcombine.high %v774_v35, %v782_v36  ;;  %v671_v28 = vld [vmem:[%s7375_s30 + $0x2f0] sm:$0xff] }
 0x14f   : > { %2291 = vmatpush1.bf16.msra.mxu0 %v5834_v43  ;;  %2332 = vmatpush1.bf16.msra.mxu1 %v5836_v44  ;;  %v758_v43 = vld [vmem:[%s7375_s30 + $0x5a8] sm:$0xff] }
 0x150   : > { %2292 = vmatprep.subr.bf16.mxu0 %v5819_v45  ;;  %2333 = vmatprep.subr.bf16.mxu1 %v5821_v46  ;;  %v766_v44 = vld [vmem:[%s7375_s30 + $0x5e8] sm:$0xff]  ;;  %v5962_v45 = vcombine.low %v773_v33, %v781_v34  ;;  %v5964_v46 = vcombine.low %v774_v35, %v782_v36  ;;  %v5855_v33 = vcombine.high %v663_v27, %v671_v28  ;;  %v647_v35 = vld [vmem:[%s7375_s30 + $0x230] sm:$0xff] }
 0x151   : > { %v5949_v48 = vcombine.high %v758_v43, %v766_v44  ;;  %v655_v36 = vld [vmem:[%s7375_s30 + $0x270] sm:$0xff] }
 0x153   : > { %2293 = vmatpush1.bf16.msra.mxu0 %v5818_v51  ;;  %2334 = vmatpush1.bf16.msra.mxu1 %v5820_v52  ;;  %v742_v51 = vld [vmem:[%s7375_s30 + $0x528] sm:$0xff] }
 0x154   : > { %2294 = vmatprep.subr.bf16.mxu0 %v5803_v53  ;;  %2335 = vmatprep.subr.bf16.mxu1 %v5805_v55  ;;  %v750_v52 = vld [vmem:[%s7375_s30 + $0x568] sm:$0xff]  ;;  %v5946_v53 = vcombine.low %v757_v41, %v765_v42  ;;  %v5948_v55 = vcombine.low %v758_v43, %v766_v44  ;;  %v5839_v41 = vcombine.high %v647_v35, %v655_v36  ;;  %v631_v43 = vld [vmem:[%s7375_s30 + $0x1b0] sm:$0xff] }
 0x155   : > { %v5933_v57 = vcombine.high %v742_v51, %v750_v52  ;;  %v639_v44 = vld [vmem:[%s7375_s30 + $0x1f0] sm:$0xff] }
 0x157   : > { %2295 = vmatpush1.bf16.msra.mxu0 %v5802_v61  ;;  %2336 = vmatpush1.bf16.msra.mxu1 %v5804_v62  ;;  %v726_v61 = vld [vmem:[%s7375_s30 + $0x4a8] sm:$0xff] }
 0x158   : > { %2296 = vmatprep.subr.bf16.mxu0 %v5787_v63  ;;  %2337 = vmatprep.subr.bf16.mxu1 %v5789_v0  ;;  %v734_v62 = vld [vmem:[%s7375_s30 + $0x4e8] sm:$0xff]  ;;  %v5930_v63 = vcombine.low %v741_v49, %v749_v50  ;;  %v5932_v0 = vcombine.low %v742_v51, %v750_v52  ;;  %v615_v50 = vld [vmem:[%s7375_s30 + $0x130] sm:$0xff]  ;;  %v616_v52 = vld [vmem:[%s7375_s30 + $0x138] sm:$0xff] }
 0x159   : > { %v5917_v2 = vcombine.high %v726_v61, %v734_v62  ;;  %v623_v51 = vld [vmem:[%s7375_s30 + $0x170] sm:$0xff] }
 0x15b   : > { %2297 = vmatpush1.bf16.msra.mxu0 %v5786_v5  ;;  %2338 = vmatpush1.bf16.msra.mxu1 %v5788_v6  ;;  %v710_v5 = vld [vmem:[%s7375_s30 + $0x428] sm:$0xff] }
 0x15c   : > { %2298 = vmatprep.subr.bf16.mxu0 %v5771_v7  ;;  %2339 = vmatprep.subr.bf16.mxu1 %v5773_v8  ;;  %v718_v6 = vld [vmem:[%s7375_s30 + $0x468] sm:$0xff]  ;;  %v5914_v7 = vcombine.low %v725_v59, %v733_v60  ;;  %v5916_v8 = vcombine.low %v726_v61, %v734_v62  ;;  %v599_v60 = vld [vmem:[%s7375_s30 + $0xb0] sm:$0xff]  ;;  %v600_v62 = vld [vmem:[%s7375_s30 + $0xb8] sm:$0xff] }
 0x15d   : > { %v5901_v10 = vcombine.high %v710_v5, %v718_v6  ;;  %v607_v61 = vld [vmem:[%s7375_s30 + $0xf0] sm:$0xff] }
 0x15f   : > { %2299 = vmatpush1.bf16.msra.mxu0 %v5770_v14  ;;  %2340 = vmatpush1.bf16.msra.mxu1 %v5772_v15  ;;  %v696_v14 = vld [vmem:[%s7375_s30 + $0x3b8] sm:$0xff] }
 0x160   : > { %2300 = vmatprep.subr.bf16.mxu0 %v6011_v16  ;;  %2341 = vmatprep.subr.bf16.mxu1 %v6013_v17  ;;  %v704_v15 = vld [vmem:[%s7375_s30 + $0x3f8] sm:$0xff]  ;;  %v5898_v16 = vcombine.low %v709_v3, %v717_v4  ;;  %v5900_v17 = vcombine.low %v710_v5, %v718_v6  ;;  %v583_v4 = vld [vmem:[%s7375_s30 + $0x30] sm:$0xff] }
 0x161   : > { %v5889_v19 = vcombine.high %v696_v14, %v704_v15  ;;  %v591_v5 = vld [vmem:[%s7375_s30 + $0x70] sm:$0xff]  ;;  %v584_v6 = vld [vmem:[%s7375_s30 + $0x38] sm:$0xff] }
 0x163   : > { %2301 = vmatpush2.bf16.msra.mxu0 %v6010_v54  ;;  %2342 = vmatpush2.bf16.msra.mxu1 %v6012_v22  ;;  %v680_v54 = vld [vmem:[%s7375_s30 + $0x338] sm:$0xff] }
 0x164   : > { %2302 = vmatprep.subr.bf16.mxu0 %v5995_v23  ;;  %2343 = vmatprep.subr.bf16.mxu1 %v5997_v24  ;;  %v688_v22 = vld [vmem:[%s7375_s30 + $0x378] sm:$0xff]  ;;  %v5886_v23 = vcombine.low %v695_v11, %v703_v12  ;;  %v5888_v24 = vcombine.low %v696_v14, %v704_v15  ;;  %v823_v12 = vld [vmem:[%s7375_s30 + $0x7b0] sm:$0xff] }
 0x165   : > { %v5873_v26 = vcombine.high %v680_v54, %v688_v22  ;;  %v831_v14 = vld [vmem:[%s7375_s30 + $0x7f0] sm:$0xff]  ;;  %v824_v15 = vld [vmem:[%s7375_s30 + $0x7b8] sm:$0xff] }
 0x167   : > { %2303 = vmatpush2.bf16.msra.mxu0 %v5994_v29  ;;  %2344 = vmatpush2.bf16.msra.mxu1 %v5996_v30  ;;  %v664_v29 = vld [vmem:[%s7375_s30 + $0x2b8] sm:$0xff] }
 0x168   : > { %2304 = vmatprep.subr.bf16.mxu0 %v5979_v31  ;;  %2345 = vmatprep.subr.bf16.mxu1 %v5981_v32  ;;  %v672_v30 = vld [vmem:[%s7375_s30 + $0x2f8] sm:$0xff]  ;;  %v5870_v31 = vcombine.low %v679_v20, %v687_v21  ;;  %v5872_v32 = vcombine.low %v680_v54, %v688_v22  ;;  %v807_v21 = vld [vmem:[%s7375_s30 + $0x730] sm:$0xff] }
 0x169   : > { %v5857_v34 = vcombine.high %v664_v29, %v672_v30  ;;  %v815_v54 = vld [vmem:[%s7375_s30 + $0x770] sm:$0xff]  ;;  %v808_v22 = vld [vmem:[%s7375_s30 + $0x738] sm:$0xff] }
 0x16b   : > { %2305 = vmatpush2.bf16.msra.mxu0 %v5978_v37  ;;  %2346 = vmatpush2.bf16.msra.mxu1 %v5980_v38  ;;  %v648_v37 = vld [vmem:[%s7375_s30 + $0x238] sm:$0xff] }
 0x16c   : > { %2306 = vmatprep.subr.bf16.mxu0 %v5963_v39  ;;  %2347 = vmatprep.subr.bf16.mxu1 %v5965_v40  ;;  %v656_v38 = vld [vmem:[%s7375_s30 + $0x278] sm:$0xff]  ;;  %v5854_v39 = vcombine.low %v663_v27, %v671_v28  ;;  %v5856_v40 = vcombine.low %v664_v29, %v672_v30  ;;  %v791_v28 = vld [vmem:[%s7375_s30 + $0x6b0] sm:$0xff] }
 0x16d   : > { %v5841_v42 = vcombine.high %v648_v37, %v656_v38  ;;  %v799_v29 = vld [vmem:[%s7375_s30 + $0x6f0] sm:$0xff]  ;;  %v792_v30 = vld [vmem:[%s7375_s30 + $0x6b8] sm:$0xff] }
 0x16f   : > { %2307 = vmatpush2.bf16.msra.mxu0 %v5962_v45  ;;  %2348 = vmatpush2.bf16.msra.mxu1 %v5964_v46  ;;  %v632_v45 = vld [vmem:[%s7375_s30 + $0x1b8] sm:$0xff] }
 0x170   : > { %2308 = vmatprep.subr.bf16.mxu0 %v5947_v47  ;;  %2349 = vmatprep.subr.bf16.mxu1 %v5949_v48  ;;  %v640_v46 = vld [vmem:[%s7375_s30 + $0x1f8] sm:$0xff]  ;;  %v5838_v47 = vcombine.low %v647_v35, %v655_v36  ;;  %v5823_v48 = vcombine.high %v631_v43, %v639_v44  ;;  %v775_v36 = vld [vmem:[%s7375_s30 + $0x630] sm:$0xff] }
 0x171   : > { %v5825_v49 = vcombine.high %v632_v45, %v640_v46 }
 0x173   : > { %2309 = vmatpush2.bf16.msra.mxu0 %v5946_v53  ;;  %2350 = vmatpush2.bf16.msra.mxu1 %v5948_v55  ;;  %v624_v53 = vld [vmem:[%s7375_s30 + $0x178] sm:$0xff]  ;;  %v5822_v55 = vcombine.low %v631_v43, %v639_v44  ;;  %v759_v44 = vld [vmem:[%s7375_s30 + $0x5b0] sm:$0xff] }
 0x174   : > { %2310 = vmatprep.subr.bf16.mxu0 %v5931_v56  ;;  %2351 = vmatprep.subr.bf16.mxu1 %v5933_v57  ;;  %v5824_v56 = vcombine.low %v632_v45, %v640_v46  ;;  %v5807_v57 = vcombine.high %v615_v50, %v623_v51  ;;  %v5809_v59 = vcombine.high %v616_v52, %v624_v53  ;;  %v767_v45 = vld [vmem:[%s7375_s30 + $0x5f0] sm:$0xff]  ;;  %v760_v46 = vld [vmem:[%s7375_s30 + $0x5b8] sm:$0xff] }
 0x177   : > { %2311 = vmatpush2.bf16.msra.mxu0 %v5930_v63  ;;  %2352 = vmatpush2.bf16.msra.mxu1 %v5932_v0  ;;  %v608_v63 = vld [vmem:[%s7375_s30 + $0xf8] sm:$0xff]  ;;  %v5806_v0 = vcombine.low %v615_v50, %v623_v51  ;;  %v743_v51 = vld [vmem:[%s7375_s30 + $0x530] sm:$0xff] }
 0x178   : > { %2312 = vmatprep.subr.bf16.mxu0 %v5915_v1  ;;  %2353 = vmatprep.subr.bf16.mxu1 %v5917_v2  ;;  %v5808_v1 = vcombine.low %v616_v52, %v624_v53  ;;  %v5791_v2 = vcombine.high %v599_v60, %v607_v61  ;;  %v5793_v3 = vcombine.high %v600_v62, %v608_v63  ;;  %v751_v52 = vld [vmem:[%s7375_s30 + $0x570] sm:$0xff]  ;;  %v744_v53 = vld [vmem:[%s7375_s30 + $0x538] sm:$0xff] }
 0x17b   : > { %2313 = vmatpush2.bf16.msra.mxu0 %v5914_v7  ;;  %2354 = vmatpush2.bf16.msra.mxu1 %v5916_v8  ;;  %v592_v7 = vld [vmem:[%s7375_s30 + $0x78] sm:$0xff]  ;;  %v5790_v8 = vcombine.low %v599_v60, %v607_v61  ;;  %v727_v61 = vld [vmem:[%s7375_s30 + $0x4b0] sm:$0xff] }
 0x17c   : > { %2314 = vmatprep.subr.bf16.mxu0 %v5899_v9  ;;  %2355 = vmatprep.subr.bf16.mxu1 %v5901_v10  ;;  %v5792_v9 = vcombine.low %v600_v62, %v608_v63  ;;  %v5775_v10 = vcombine.high %v583_v4, %v591_v5  ;;  %v5777_v11 = vcombine.high %v584_v6, %v592_v7  ;;  %v735_v62 = vld [vmem:[%s7375_s30 + $0x4f0] sm:$0xff]  ;;  %v728_v63 = vld [vmem:[%s7375_s30 + $0x4b8] sm:$0xff] }
 0x17f   : > { %2315 = vmatpush2.bf16.msra.mxu0 %v5898_v16  ;;  %2356 = vmatpush2.bf16.msra.mxu1 %v5900_v17  ;;  %v832_v16 = vld [vmem:[%s7375_s30 + $0x7f8] sm:$0xff]  ;;  %v5774_v17 = vcombine.low %v583_v4, %v591_v5  ;;  %v711_v5 = vld [vmem:[%s7375_s30 + $0x430] sm:$0xff] }
 0x180   : > { %2366 = vmatprep.subr.bf16.mxu0 %v5887_v18  ;;  %2407 = vmatprep.subr.bf16.mxu1 %v5889_v19  ;;  %v5776_v18 = vcombine.low %v584_v6, %v592_v7  ;;  %v6015_v19 = vcombine.high %v823_v12, %v831_v14  ;;  %v6017_v20 = vcombine.high %v824_v15, %v832_v16  ;;  %v719_v6 = vld [vmem:[%s7375_s30 + $0x470] sm:$0xff]  ;;  %v712_v7 = vld [vmem:[%s7375_s30 + $0x438] sm:$0xff] }
 0x182   : > { %2317 = vmatmul.mubr.bf16.vlgmr.msra.gmra.mxu0 %v7506_v13  ;;  %2358 = vmatmul.mubr.bf16.vlgmr.msra.gmra.mxu1 %v7506_v13 }
 0x183   : > { %2367 = vmatpush1.bf16.msra.mxu0 %v5886_v23  ;;  %2408 = vmatpush1.bf16.msra.mxu1 %v5888_v24  ;;  %v816_v23 = vld [vmem:[%s7375_s30 + $0x778] sm:$0xff]  ;;  %v6014_v24 = vcombine.low %v823_v12, %v831_v14  ;;  %v5902_v14 = vcombine.low %v711_v5, %v719_v6 }
 0x184   : > { %2368 = vmatprep.subr.bf16.mxu0 %v5871_v25  ;;  %2409 = vmatprep.subr.bf16.mxu1 %v5873_v26  ;;  %v6016_v25 = vcombine.low %v824_v15, %v832_v16  ;;  %v5999_v26 = vcombine.high %v807_v21, %v815_v54  ;;  %v6001_v27 = vcombine.high %v808_v22, %v816_v23  ;;  %v560_v16 = vld [vmem:[#allocation2 + $0x30] sm:$0xff] }
 0x185   : > { %2398 = vmatprep.mubr.bf16.mxu0 %v7460_v58  ;;  %2439 = vmatprep.mubr.bf16.mxu1 %v7460_v58  ;;  %v5840_v58 = vcombine.low %v648_v37, %v656_v38  ;;  %v783_v37 = vld [vmem:[%s7375_s30 + $0x670] sm:$0xff]  ;;  %v776_v38 = vld [vmem:[%s7375_s30 + $0x638] sm:$0xff] }
 0x187   : > { %2369 = vmatpush1.bf16.msra.mxu0 %v5870_v31  ;;  %2410 = vmatpush1.bf16.msra.mxu1 %v5872_v32  ;;  %v800_v31 = vld [vmem:[%s7375_s30 + $0x6f8] sm:$0xff]  ;;  %v5998_v32 = vcombine.low %v807_v21, %v815_v54 }
 0x188   : > { %2370 = vmatprep.subr.bf16.mxu0 %v5855_v33  ;;  %2411 = vmatprep.subr.bf16.mxu1 %v5857_v34  ;;  %v6000_v33 = vcombine.low %v808_v22, %v816_v23  ;;  %v5983_v34 = vcombine.high %v791_v28, %v799_v29  ;;  %v5985_v35 = vcombine.high %v792_v30, %v800_v31  ;;  %v563_v54 = vld [vmem:[#allocation2 + $0x18] sm:$0xff] }
 0x18b   : > { %2371 = vmatpush1.bf16.msra.mxu0 %v5854_v39  ;;  %2412 = vmatpush1.bf16.msra.mxu1 %v5856_v40  ;;  %v784_v39 = vld [vmem:[%s7375_s30 + $0x678] sm:$0xff]  ;;  %v5982_v40 = vcombine.low %v791_v28, %v799_v29 }
 0x18c   : > { %2372 = vmatprep.subr.bf16.mxu0 %v5839_v41  ;;  %2413 = vmatprep.subr.bf16.mxu1 %v5841_v42  ;;  %v5984_v41 = vcombine.low %v792_v30, %v800_v31  ;;  %v5967_v42 = vcombine.high %v775_v36, %v783_v37  ;;  %v5969_v43 = vcombine.high %v776_v38, %v784_v39  ;;  %v564_v31 = vld [vmem:[#allocation2 + $0x50] sm:$0xff] }
 0x18f   : > { %2373 = vmatpush1.bf16.msra.mxu0 %v5838_v47  ;;  %2414 = vmatpush1.bf16.msra.mxu1 %v5840_v58  ;;  %v768_v47 = vld [vmem:[%s7375_s30 + $0x5f8] sm:$0xff]  ;;  %v5966_v58 = vcombine.low %v775_v36, %v783_v37  ;;  %v567_v36 = vld [vmem:[#allocation2 + $0x48] sm:$0xff] }
 0x190   : > { %2374 = vmatprep.subr.bf16.mxu0 %v5823_v48  ;;  %2415 = vmatprep.subr.bf16.mxu1 %v5825_v49  ;;  %v5968_v48 = vcombine.low %v776_v38, %v784_v39  ;;  %v5951_v49 = vcombine.high %v759_v44, %v767_v45  ;;  %v5953_v50 = vcombine.high %v760_v46, %v768_v47 }
 0x193   : > { %2375 = vmatpush1.bf16.msra.mxu0 %v5822_v55  ;;  %2416 = vmatpush1.bf16.msra.mxu1 %v5824_v56  ;;  %v752_v55 = vld [vmem:[%s7375_s30 + $0x578] sm:$0xff]  ;;  %v5950_v56 = vcombine.low %v759_v44, %v767_v45 }
 0x194   : > { %2376 = vmatprep.subr.bf16.mxu0 %v5807_v57  ;;  %2417 = vmatprep.subr.bf16.mxu1 %v5809_v59  ;;  %v5952_v57 = vcombine.low %v760_v46, %v768_v47  ;;  %v5935_v59 = vcombine.high %v743_v51, %v751_v52  ;;  %v5937_v60 = vcombine.high %v744_v53, %v752_v55  ;;  %v568_v46 = vld [vmem:[#allocation2 + $0x40] sm:$0xff]  ;;  %v570_v47 = vld [vmem:[#allocation2 + $0x10] sm:$0xff] }
 0x197   : > { %2377 = vmatpush1.bf16.msra.mxu0 %v5806_v0  ;;  %2418 = vmatpush1.bf16.msra.mxu1 %v5808_v1  ;;  %v736_v0 = vld [vmem:[%s7375_s30 + $0x4f8] sm:$0xff]  ;;  %v5934_v1 = vcombine.low %v743_v51, %v751_v52 }
 0x198   : > { %2378 = vmatprep.subr.bf16.mxu0 %v5791_v2  ;;  %2419 = vmatprep.subr.bf16.mxu1 %v5793_v3  ;;  %v5936_v2 = vcombine.low %v744_v53, %v752_v55  ;;  %v5919_v3 = vcombine.high %v727_v61, %v735_v62  ;;  %v5921_v4 = vcombine.high %v728_v63, %v736_v0  ;;  %v571_v51 = vld [vmem:[#allocation2 + $0x38] sm:$0xff] }
 0x19b   : > { %2379 = vmatpush1.bf16.msra.mxu0 %v5790_v8  ;;  %2420 = vmatpush1.bf16.msra.mxu1 %v5792_v9  ;;  %v720_v8 = vld [vmem:[%s7375_s30 + $0x478] sm:$0xff]  ;;  %v5918_v9 = vcombine.low %v727_v61, %v735_v62 }
 0x19c   : > { %2380 = vmatprep.subr.bf16.mxu0 %v5775_v10  ;;  %2421 = vmatprep.subr.bf16.mxu1 %v5777_v11  ;;  %v5920_v10 = vcombine.low %v728_v63, %v736_v0  ;;  %v5903_v11 = vcombine.high %v711_v5, %v719_v6  ;;  %v5905_v12 = vcombine.high %v712_v7, %v720_v8  ;;  %v572_v63 = vld [vmem:[#allocation2 + $0x60] sm:$0xff]  ;;  %v574_v0 = vld [vmem:[#allocation2 + $0x78] sm:$0xff]  ;;  %v575_v5 = vld [vmem:[#allocation2 + $0x28] sm:$0xff] }
 0x19d   : > { %v5904_v15 = vcombine.low %v712_v7, %v720_v8 }
 0x19f   : > { %2381 = vmatpush1.bf16.msra.mxu0 %v5774_v17  ;;  %2422 = vmatpush1.bf16.msra.mxu1 %v5776_v18  ;;  %v562_v17 = vld [vmem:[#allocation2 + $0x58] sm:$0xff] }
 0x1a0   : > { %2382 = vmatprep.subr.bf16.mxu0 %v6015_v19  ;;  %2423 = vmatprep.subr.bf16.mxu1 %v6017_v20  ;;  %v561_v19 = vld [vmem:[#allocation2] sm:$0xff] }
 0x1a3   : > { %2383 = vmatpush2.bf16.msra.mxu0 %v6014_v24  ;;  %2424 = vmatpush2.bf16.msra.mxu1 %v6016_v25 }
 0x1a4   : > { %2384 = vmatprep.subr.bf16.mxu0 %v5999_v26  ;;  %2425 = vmatprep.subr.bf16.mxu1 %v6001_v27 }
 0x1a7   : > { %2385 = vmatpush2.bf16.msra.mxu0 %v5998_v32  ;;  %2426 = vmatpush2.bf16.msra.mxu1 %v6000_v33  ;;  %v566_v32 = vld [vmem:[#allocation2 + $0x8] sm:$0xff] }
 0x1a8   : > { %2386 = vmatprep.subr.bf16.mxu0 %v5983_v34  ;;  %2427 = vmatprep.subr.bf16.mxu1 %v5985_v35  ;;  %v565_v34 = vld [vmem:[#allocation2 + $0x68] sm:$0xff] }
 0x1ab   : > { %2387 = vmatpush2.bf16.msra.mxu0 %v5982_v40  ;;  %2428 = vmatpush2.bf16.msra.mxu1 %v5984_v41 }
 0x1ac   : > { %2388 = vmatprep.subr.bf16.mxu0 %v5967_v42  ;;  %2429 = vmatprep.subr.bf16.mxu1 %v5969_v43 }
 0x1af   : > { %2389 = vmatpush2.bf16.msra.mxu0 %v5966_v58  ;;  %2430 = vmatpush2.bf16.msra.mxu1 %v5968_v48  ;;  %v569_v48 = vld [vmem:[#allocation2 + $0x20] sm:$0xff] }
 0x1b0   : > { %2390 = vmatprep.subr.bf16.mxu0 %v5951_v49  ;;  %2431 = vmatprep.subr.bf16.mxu1 %v5953_v50 }
 0x1b3   : > { %2391 = vmatpush2.bf16.msra.mxu0 %v5950_v56  ;;  %2432 = vmatpush2.bf16.msra.mxu1 %v5952_v57 }
 0x1b4   : > { %2392 = vmatprep.subr.bf16.mxu0 %v5935_v59  ;;  %2433 = vmatprep.subr.bf16.mxu1 %v5937_v60 }
 0x1b7   : > { %2393 = vmatpush2.bf16.msra.mxu0 %v5934_v1  ;;  %2434 = vmatpush2.bf16.msra.mxu1 %v5936_v2  ;;  %v573_v2 = vld [vmem:[#allocation2 + $0x70] sm:$0xff] }
 0x1b8   : > { %2394 = vmatprep.subr.bf16.mxu0 %v5919_v3  ;;  %2435 = vmatprep.subr.bf16.mxu1 %v5921_v4 }
 0x1bb   : > { %2395 = vmatpush2.bf16.msra.mxu0 %v5918_v9  ;;  %2436 = vmatpush2.bf16.msra.mxu1 %v5920_v10 }
 0x1bc   : > { %2396 = vmatprep.subr.bf16.mxu0 %v5903_v11  ;;  %2437 = vmatprep.subr.bf16.mxu1 %v5905_v12 }
 0x1bf   : > { %2397 = vmatpush2.bf16.msra.mxu0 %v5902_v14  ;;  %2438 = vmatpush2.bf16.msra.mxu1 %v5904_v15 }
 0x1c2   : > { %v2154_v18 = vpop.f32.mrf.mxu0  ;;  %2399 = vmatmul.mubr.bf16.vlgmr.msra.gmra.mxu0 %v7506_v13  ;;  %v2195_v21 = vpop.f32.mrf.mxu1  ;;  %2440 = vmatmul.mubr.bf16.vlgmr.msra.gmra.mxu1 %v7506_v13 }
 0x1c3   : > { %v2448_v20 = vadd.f32 %v2154_v18, %v560_v16  ;;  %v2450_v22 = vadd.f32 %v2195_v21, %v562_v17 }
 0x1c4   : > { %v2156_v23 = vpop.f32.mrf.mxu0  ;;  %v2197_v25 = vpop.f32.mrf.mxu1 }
 0x1c5   : > { %2464 = vst [vmem:[#allocation2 + $0x30] sm:$0xff] %v2448_v20  ;;  %v2449_v24 = vadd.f32 %v2156_v23, %v561_v19  ;;  %2466 = vst [vmem:[#allocation2 + $0x58] sm:$0xff] %v2450_v22  ;;  %v2451_v26 = vadd.f32 %v2197_v25, %v563_v54 }
 0x1c6   : > { %v2158_v27 = vpop.f32.mrf.mxu0  ;;  %v2199_v28 = vpop.f32.mrf.mxu1 }
 0x1c7   : > { %2465 = vst [vmem:[#allocation2] sm:$0xff] %v2449_v24  ;;  %2467 = vst [vmem:[#allocation2 + $0x18] sm:$0xff] %v2451_v26 }
 0x1c8   : > { %v2159_v29 = vpop.f32.mrf.mxu0  ;;  %v2200_v30 = vpop.f32.mrf.mxu1 }
 0x202   : > { %v2236_v33 = vpop.f32.mrf.mxu0  ;;  %v2277_v13 = vpop.f32.mrf.mxu1 }
 0x203   : > { %v2452_v35 = vadd.f32 %v2236_v33, %v564_v31  ;;  %v2454_v37 = vadd.f32 %v2277_v13, %v566_v32 }
 0x204   : > { %v2238_v38 = vpop.f32.mrf.mxu0  ;;  %v2279_v40 = vpop.f32.mrf.mxu1 }
 0x205   : > { %2468 = vst [vmem:[#allocation2 + $0x50] sm:$0xff] %v2452_v35  ;;  %v2453_v39 = vadd.f32 %v2238_v38, %v565_v34  ;;  %2470 = vst [vmem:[#allocation2 + $0x8] sm:$0xff] %v2454_v37  ;;  %v2455_v41 = vadd.f32 %v2279_v40, %v567_v36 }
 0x206   : > { %v2240_v42 = vpop.f32.mrf.mxu0  ;;  %v2281_v43 = vpop.f32.mrf.mxu1 }
 0x207   : > { %2469 = vst [vmem:[#allocation2 + $0x68] sm:$0xff] %v2453_v39  ;;  %2471 = vst [vmem:[#allocation2 + $0x48] sm:$0xff] %v2455_v41 }
 0x208   : > { %v2241_v44 = vpop.f32.mrf.mxu0  ;;  %v2282_v45 = vpop.f32.mrf.mxu1 }
 0x242   : > { %v2318_v58 = vpop.f32.mrf.mxu0  ;;  %v2359_v50 = vpop.f32.mrf.mxu1 }
 0x243   : > { %v2456_v49 = vadd.f32 %v2318_v58, %v568_v46  ;;  %v2458_v52 = vadd.f32 %v2359_v50, %v570_v47 }
 0x244   : > { %v2320_v53 = vpop.f32.mrf.mxu0  ;;  %v2361_v56 = vpop.f32.mrf.mxu1 }
 0x245   : > { %2472 = vst [vmem:[#allocation2 + $0x40] sm:$0xff] %v2456_v49  ;;  %v2457_v55 = vadd.f32 %v2320_v53, %v569_v48  ;;  %2474 = vst [vmem:[#allocation2 + $0x10] sm:$0xff] %v2458_v52  ;;  %v2459_v57 = vadd.f32 %v2361_v56, %v571_v51 }
 0x246   : > { %v2322_v59 = vpop.f32.mrf.mxu0  ;;  %v2363_v60 = vpop.f32.mrf.mxu1 }
 0x247   : > { %2473 = vst [vmem:[#allocation2 + $0x20] sm:$0xff] %v2457_v55  ;;  %2475 = vst [vmem:[#allocation2 + $0x38] sm:$0xff] %v2459_v57 }
 0x248   : > { %v2323_v61 = vpop.f32.mrf.mxu0  ;;  %v2364_v62 = vpop.f32.mrf.mxu1 }
 0x282   : > { %v2400_v1 = vpop.f32.mrf.mxu0  ;;  %v2441_v4 = vpop.f32.mrf.mxu1 }
 0x283   : > { %v2460_v3 = vadd.f32 %v2400_v1, %v572_v63  ;;  %v2462_v6 = vadd.f32 %v2441_v4, %v574_v0 }
 0x284   : > { %v2402_v7 = vpop.f32.mrf.mxu0  ;;  %v2443_v9 = vpop.f32.mrf.mxu1 }
 0x285   : > { %2476 = vst [vmem:[#allocation2 + $0x60] sm:$0xff] %v2460_v3  ;;  %v2461_v8 = vadd.f32 %v2402_v7, %v573_v2  ;;  %2478 = vst [vmem:[#allocation2 + $0x78] sm:$0xff] %v2462_v6  ;;  %v2463_v10 = vadd.f32 %v2443_v9, %v575_v5 }
 0x286   : > { %v2404_v11 = vpop.f32.mrf.mxu0  ;;  %v2445_v12 = vpop.f32.mrf.mxu1 }
 0x287   : > { %2477 = vst [vmem:[#allocation2 + $0x70] sm:$0xff] %v2461_v8  ;;  %2479 = vst [vmem:[#allocation2 + $0x28] sm:$0xff] %v2463_v10 }
 0x288   : > { %v2405_v14 = vpop.f32.mrf.mxu0  ;;  %v2446_v15 = vpop.f32.mrf.mxu1 }
 0x289 PF: > { %s8434_s30 = sld [smem:[#allocation15_spill]] }
 0x28f   : > { %p6018_p1 = scmp.ne.s32.totalorder %s8434_s30, 1 }
 0x291   : > { %2483 = sbr.rel (%p6018_p1) target bundleno = 1517 (0x5ed), region = 72 }
 0x296   : > { %v6438_v16 = vld [vmem:[%s7384_s7 + $0x74] ss:$8 sps:$4 sm:$0xff]   ;;  %v6442_v18 = vld [vmem:[%s7384_s7 + $0x70] ss:$8 sps:$4 sm:$0xff]   ;;  %v6444_v20 = vld [vmem:[%s7384_s7 + $0x64] ss:$8 sps:$4 sm:$0xff]   ;;  %v2516_v50 = vlaneseq }
 0x297   : > { %v6440_v17 = vld [vmem:[%s7384_s7 + $0x174] ss:$8 sps:$4 sm:$0xff]   ;;  %4929 = vmatprep.subr.bf16.mxu0 %v6438_v16  ;;  %v6443_v19 = vld [vmem:[%s7384_s7 + $0x170] ss:$8 sps:$4 sm:$0xff]   ;;  %v6446_v21 = vld [vmem:[%s7384_s7 + $0x164] ss:$8 sps:$4 sm:$0xff]  }
 0x298   : > { %4970 = vmatprep.subr.bf16.mxu1 %v6440_v17  ;;  %4930 = vmatpush1.bf16.msra.mxu0 %v6442_v18  ;;  %v6448_v54 = vld [vmem:[%s7384_s7 + $0x60] ss:$8 sps:$4 sm:$0xff]   ;;  %v6450_v23 = vld [vmem:[%s7384_s7 + $0x54] ss:$8 sps:$4 sm:$0xff]   ;;  %v6454_v25 = vld [vmem:[%s7384_s7 + $0x50] ss:$8 sps:$4 sm:$0xff]  }
 0x299   : > { %4971 = vmatpush1.bf16.msra.mxu1 %v6443_v19  ;;  %4931 = vmatprep.subr.bf16.mxu0 %v6444_v20  ;;  %v6449_v22 = vld [vmem:[%s7384_s7 + $0x160] ss:$8 sps:$4 sm:$0xff]   ;;  %v6452_v24 = vld [vmem:[%s7384_s7 + $0x154] ss:$8 sps:$4 sm:$0xff]   ;;  %v6455_v26 = vld [vmem:[%s7384_s7 + $0x150] ss:$8 sps:$4 sm:$0xff]  }
 0x29a   : > { %4972 = vmatprep.subr.bf16.mxu1 %v6446_v21  ;;  %v6456_v27 = vld [vmem:[%s7384_s7 + $0x44] ss:$8 sps:$4 sm:$0xff]   ;;  %v6460_v29 = vld [vmem:[%s7384_s7 + $0x40] ss:$8 sps:$4 sm:$0xff]   ;;  %v6462_v31 = vld [vmem:[%s7384_s7 + $0x34] ss:$8 sps:$4 sm:$0xff]  }
 0x29b   : > { %v6458_v28 = vld [vmem:[%s7384_s7 + $0x144] ss:$8 sps:$4 sm:$0xff]   ;;  %v6461_v30 = vld [vmem:[%s7384_s7 + $0x140] ss:$8 sps:$4 sm:$0xff]   ;;  %v6464_v32 = vld [vmem:[%s7384_s7 + $0x134] ss:$8 sps:$4 sm:$0xff]  }
 0x29c   : > { %4932 = vmatpush1.bf16.msra.mxu0 %v6448_v54  ;;  %v6466_v33 = vld [vmem:[%s7384_s7 + $0x30] ss:$8 sps:$4 sm:$0xff]   ;;  %v6468_v35 = vld [vmem:[%s7384_s7 + $0x24] ss:$8 sps:$4 sm:$0xff]   ;;  %v6472_v36 = vld [vmem:[%s7384_s7 + $0x20] ss:$8 sps:$4 sm:$0xff]  }
 0x29d   : > { %4973 = vmatpush1.bf16.msra.mxu1 %v6449_v22  ;;  %4933 = vmatprep.subr.bf16.mxu0 %v6450_v23  ;;  %v6467_v34 = vld [vmem:[%s7384_s7 + $0x130] ss:$8 sps:$4 sm:$0xff]   ;;  %v6470_v13 = vld [vmem:[%s7384_s7 + $0x124] ss:$8 sps:$4 sm:$0xff]   ;;  %v6473_v37 = vld [vmem:[%s7384_s7 + $0x120] ss:$8 sps:$4 sm:$0xff]  }
 0x29e   : > { %4974 = vmatprep.subr.bf16.mxu1 %v6452_v24  ;;  %v6474_v38 = vld [vmem:[%s7384_s7 + $0x14] ss:$8 sps:$4 sm:$0xff]   ;;  %v6478_v40 = vld [vmem:[%s7384_s7 + $0x10] ss:$8 sps:$4 sm:$0xff]   ;;  %v6480_v42 = vld [vmem:[%s7384_s7 + $0x4] ss:$8 sps:$4 sm:$0xff]  }
 0x29f   : > { %v6476_v39 = vld [vmem:[%s7384_s7 + $0x114] ss:$8 sps:$4 sm:$0xff]   ;;  %v6479_v41 = vld [vmem:[%s7384_s7 + $0x110] ss:$8 sps:$4 sm:$0xff]   ;;  %v6482_v43 = vld [vmem:[%s7384_s7 + $0x104] ss:$8 sps:$4 sm:$0xff]  }
 0x2a0   : > { %4934 = vmatpush1.bf16.msra.mxu0 %v6454_v25  ;;  %v6484_v44 = vld [vmem:[%s7384_s7] ss:$8 sps:$4 sm:$0xff]   ;;  %v6486_v46 = vld [vmem:[%s7384_s7 + $0xf4] ss:$8 sps:$4 sm:$0xff]   ;;  %v6490_v58 = vld [vmem:[%s7384_s7 + $0xf0] ss:$8 sps:$4 sm:$0xff]  }
 0x2a1   : > { %4975 = vmatpush1.bf16.msra.mxu1 %v6455_v26  ;;  %4935 = vmatprep.subr.bf16.mxu0 %v6456_v27  ;;  %v6485_v45 = vld [vmem:[%s7384_s7 + $0x100] ss:$8 sps:$4 sm:$0xff]   ;;  %v6488_v47 = vld [vmem:[%s7384_s7 + $0x1f4] ss:$8 sps:$4 sm:$0xff]   ;;  %v6491_v48 = vld [vmem:[%s7384_s7 + $0x1f0] ss:$8 sps:$4 sm:$0xff]  }
 0x2a2   : > { %4976 = vmatprep.subr.bf16.mxu1 %v6458_v28  ;;  %v6492_v49 = vld [vmem:[%s7384_s7 + $0xe4] ss:$8 sps:$4 sm:$0xff]   ;;  %v6496_v52 = vld [vmem:[%s7384_s7 + $0xe0] ss:$8 sps:$4 sm:$0xff]   ;;  %v6498_v55 = vld [vmem:[%s7384_s7 + $0xd4] ss:$8 sps:$4 sm:$0xff]  }
 0x2a3   : > { %v6494_v51 = vld [vmem:[%s7384_s7 + $0x1e4] ss:$8 sps:$4 sm:$0xff]   ;;  %v6497_v53 = vld [vmem:[%s7384_s7 + $0x1e0] ss:$8 sps:$4 sm:$0xff]   ;;  %v7750_v56 = vshrl.u32 %v2516_v50, 7  ;;  %v2484_v6 = vld [vmem:[#allocation2 + $0x30] sm:$0xff] }
 0x2a4   : > { %4936 = vmatpush1.bf16.msra.mxu0 %v6460_v29  ;;  %v6500_v57 = vld [vmem:[%s7384_s7 + $0x1d4] ss:$8 sps:$4 sm:$0xff]   ;;  %v6502_v59 = vld [vmem:[%s7384_s7 + $0xd0] ss:$8 sps:$4 sm:$0xff]   ;;  %v6504_v61 = vld [vmem:[%s7384_s7 + $0xc4] ss:$8 sps:$4 sm:$0xff]  }
 0x2a5   : > { %4977 = vmatpush1.bf16.msra.mxu1 %v6461_v30  ;;  %4937 = vmatprep.subr.bf16.mxu0 %v6462_v31  ;;  %v6503_v60 = vld [vmem:[%s7384_s7 + $0x1d0] ss:$8 sps:$4 sm:$0xff]   ;;  %v7757_v62 = vsub.s32 0, %v7750_v56  ;;  %v7760_v63 = vsub.s32 4, %v7750_v56  ;;  %v6506_v0 = vld [vmem:[%s7384_s7 + $0x1c4] ss:$8 sps:$4 sm:$0xff]  }
 0x2a6   : > { %4978 = vmatprep.subr.bf16.mxu1 %v6464_v32  ;;  %v6508_v1 = vld [vmem:[%s7384_s7 + $0xc0] ss:$8 sps:$4 sm:$0xff]   ;;  %v6510_v3 = vld [vmem:[%s7384_s7 + $0xb4] ss:$8 sps:$4 sm:$0xff]   ;;  %v6514_v20 = vld [vmem:[%s7384_s7 + $0xb0] ss:$8 sps:$4 sm:$0xff]  }
 0x2a7   : > { %v6509_v2 = vld [vmem:[%s7384_s7 + $0x1c0] ss:$8 sps:$4 sm:$0xff]   ;;  %v6512_v4 = vld [vmem:[%s7384_s7 + $0x1b4] ss:$8 sps:$4 sm:$0xff]   ;;  %v6515_v21 = vld [vmem:[%s7384_s7 + $0x1b0] ss:$8 sps:$4 sm:$0xff]  }
 0x2a8   : > { %4938 = vmatpush1.bf16.msra.mxu0 %v6466_v33  ;;  %v7768_v5 = vld [vmem:[%s7396_s19] sm:$0x77]  ;;  %v7775_v9 = vld [vmem:[%s7396_s19 + $0x8] sm:$0x77]  ;;  %v2486_v11 = vld [vmem:[#allocation2 + $0x58] sm:$0xff] }
 0x2a9   : > { %4979 = vmatpush1.bf16.msra.mxu1 %v6467_v34  ;;  %4939 = vmatprep.subr.bf16.mxu0 %v6468_v35  ;;  %v2519_v7 = vrot.slane %v7768_v5, %v7757_v62  ;;  %v2523_v8 = vrot.slane %v7768_v5, %v7760_v63  ;;  %v2485_v10 = vld [vmem:[#allocation2] sm:$0xff]  ;;  %v2527_v12 = vrot.slane %v7775_v9, %v7757_v62  ;;  %v2487_v17 = vld [vmem:[#allocation2 + $0x18] sm:$0xff] }
 0x2aa   : > { %4980 = vmatprep.subr.bf16.mxu1 %v6470_v13  ;;  %v2531_v14 = vrot.slane %v7775_v9, %v7760_v63  ;;  %v6516_v23 = vld [vmem:[%s7384_s7 + $0xa4] ss:$8 sps:$4 sm:$0xff]   ;;  %v6520_v31 = vld [vmem:[%s7384_s7 + $0xa0] ss:$8 sps:$4 sm:$0xff]   ;;  %v6522_v35 = vld [vmem:[%s7384_s7 + $0x94] ss:$8 sps:$4 sm:$0xff]  }
 0x2ab   : > { %v2599_v15 = vrot.slane %v2519_v7, %v7757_v62  ;;  %v2603_v16 = vrot.slane %v2523_v8, %v7757_v62  ;;  %v2607_v18 = vrot.slane %v2527_v12, %v7757_v62  ;;  %v6518_v24 = vld [vmem:[%s7384_s7 + $0x1a4] ss:$8 sps:$4 sm:$0xff]   ;;  %v6521_v32 = vld [vmem:[%s7384_s7 + $0x1a0] ss:$8 sps:$4 sm:$0xff]   ;;  %v6524_v13 = vld [vmem:[%s7384_s7 + $0x194] ss:$8 sps:$4 sm:$0xff]  }
 0x2ac   : > { %4940 = vmatpush1.bf16.msra.mxu0 %v6472_v36  ;;  %v2611_v19 = vrot.slane %v2531_v14, %v7757_v62 }
 0x2ad   : > { %4981 = vmatpush1.bf16.msra.mxu1 %v6473_v37  ;;  %4941 = vmatprep.subr.bf16.mxu0 %v6474_v38  ;;  %v2660_v54 = vadd.f32 %v2599_v15, %v2484_v6  ;;  %v2661_v22 = vadd.f32 %v2603_v16, %v2485_v10  ;;  %v2662_v25 = vadd.f32 %v2607_v18, %v2486_v11 }
 0x2ae   : > { %4982 = vmatprep.subr.bf16.mxu1 %v6476_v39  ;;  %v2663_v26 = vadd.f32 %v2611_v19, %v2487_v17 }
 0x2af   : > { %v2676_v27 = vrot.slane %v2660_v54, 4  ;;  %v2682_v28 = vrot.slane %v2661_v22, 4  ;;  %v2688_v29 = vrot.slane %v2662_v25, 4 }
 0x2b0   : > { %4942 = vmatpush1.bf16.msra.mxu0 %v6478_v40  ;;  %v2694_v30 = vrot.slane %v2663_v26, 4 }
 0x2b1   : > { %4983 = vmatpush1.bf16.msra.mxu1 %v6479_v41  ;;  %4943 = vmatprep.subr.bf16.mxu0 %v6480_v42  ;;  %v2677_v33 = vadd.f32 %v2676_v27, %v2660_v54  ;;  %v2683_v34 = vadd.f32 %v2682_v28, %v2661_v22  ;;  %v2689_v36 = vadd.f32 %v2688_v29, %v2662_v25  ;;  %v6526_v42 = vld [vmem:[%s7384_s7 + $0x90] ss:$8 sps:$4 sm:$0xff]  }
 0x2b2   : > { %4984 = vmatprep.subr.bf16.mxu1 %v6482_v43  ;;  %v2695_v37 = vadd.f32 %v2694_v30, %v2663_v26  ;;  %v6527_v43 = vld [vmem:[%s7384_s7 + $0x190] ss:$8 sps:$4 sm:$0xff]  }
 0x2b3   : > { %v2678_v38 = vrot.slane %v2677_v33, 2  ;;  %v2684_v39 = vrot.slane %v2683_v34, 2  ;;  %v2690_v40 = vrot.slane %v2689_v36, 2 }
 0x2b4   : > { %4944 = vmatpush1.bf16.msra.mxu0 %v6484_v44  ;;  %v2696_v41 = vrot.slane %v2695_v37, 2 }
 0x2b5   : > { %4985 = vmatpush1.bf16.msra.mxu1 %v6485_v45  ;;  %4945 = vmatprep.subr.bf16.mxu0 %v6486_v46  ;;  %v2679_v44 = vadd.f32 %v2678_v38, %v2677_v33  ;;  %v2685_v45 = vadd.f32 %v2684_v39, %v2683_v34  ;;  %v6528_v46 = vld [vmem:[%s7384_s7 + $0x84] ss:$8 sps:$4 sm:$0xff]  }
 0x2b6   : > { %4986 = vmatprep.subr.bf16.mxu1 %v6488_v47  ;;  %v6530_v47 = vld [vmem:[%s7384_s7 + $0x184] ss:$8 sps:$4 sm:$0xff]  }
 0x2b7   : > { %v2686_v50 = vrot.slane %v2685_v45, 1 }
 0x2b8   : > { %4946 = vmatpush2.bf16.msra.mxu0 %v6490_v58  ;;  %v2691_v58 = vadd.f32 %v2690_v40, %v2689_v36 }
 0x2b9   : > { %4987 = vmatpush2.bf16.msra.mxu1 %v6491_v48  ;;  %4947 = vmatprep.subr.bf16.mxu0 %v6492_v49  ;;  %v2697_v48 = vadd.f32 %v2696_v41, %v2695_v37  ;;  %v2680_v49 = vrot.slane %v2679_v44, 1 }
 0x2ba   : > { %4988 = vmatprep.subr.bf16.mxu1 %v6494_v51  ;;  %v2692_v51 = vrot.slane %v2691_v58, 1 }
 0x2bc   : > { %4948 = vmatpush2.bf16.msra.mxu0 %v6496_v52  ;;  %v2698_v52 = vrot.slane %v2697_v48, 1 }
 0x2bd   : > { %4989 = vmatpush2.bf16.msra.mxu1 %v6497_v53  ;;  %4949 = vmatprep.subr.bf16.mxu0 %v6498_v55  ;;  %v6532_v53 = vld [vmem:[%s7384_s7 + $0x80] ss:$8 sps:$4 sm:$0xff]  }
 0x2be   : > { %4990 = vmatprep.subr.bf16.mxu1 %v6500_v57  ;;  %v6533_v55 = vld [vmem:[%s7384_s7 + $0x180] ss:$8 sps:$4 sm:$0xff]   ;;  %v2681_v57 = vadd.f32 %v2680_v49, %v2679_v44 }
 0x2c0   : > { %4950 = vmatpush2.bf16.msra.mxu0 %v6502_v59  ;;  %v2687_v59 = vadd.f32 %v2686_v50, %v2685_v45 }
 0x2c1   : > { %4991 = vmatpush2.bf16.msra.mxu1 %v6503_v60  ;;  %4951 = vmatprep.subr.bf16.mxu0 %v6504_v61  ;;  %v2693_v60 = vadd.f32 %v2692_v51, %v2691_v58  ;;  %v2699_v61 = vadd.f32 %v2698_v52, %v2697_v48  ;;  %v2488_v58 = vld [vmem:[#allocation2 + $0x50] sm:$0xff]  ;;  %v2489_v48 = vld [vmem:[#allocation2 + $0x68] sm:$0xff]  ;;  %v7825_v51 = vld [vmem:[%s7396_s19 + $0x18] sm:$0x77] }
 0x2c2   : > { %4992 = vmatprep.subr.bf16.mxu1 %v6506_v0  ;;  %v6536_v0 = vld [vmem:[%s7384_s7 + $0x274] ss:$8 sps:$4 sm:$0xff]   ;;  %v2490_v52 = vld [vmem:[#allocation2 + $0x8] sm:$0xff] }
 0x2c3   : > { %v2776_v6 = vmul.f32 0.125, %v2699_v61 }
 0x2c4   : > { %4952 = vmatpush2.bf16.msra.mxu0 %v6508_v1  ;;  %v6539_v1 = vld [vmem:[%s7384_s7 + $0x374] ss:$8 sps:$4 sm:$0xff]  }
 0x2c5   : > { %4993 = vmatpush2.bf16.msra.mxu1 %v6509_v2  ;;  %4953 = vmatprep.subr.bf16.mxu0 %v6510_v3  ;;  %v2773_v2 = vmul.f32 0.125, %v2681_v57  ;;  %v2774_v3 = vmul.f32 0.125, %v2687_v59  ;;  %v7807_v11 = vsub.f32 %v2663_v26, %v2776_v6 }
 0x2c6   : > { %4994 = vmatprep.subr.bf16.mxu1 %v6512_v4  ;;  %v2775_v4 = vmul.f32 0.125, %v2693_v60  ;;  %v2491_v60 = vld [vmem:[#allocation2 + $0x48] sm:$0xff] }
 0x2c7   : > { %v7801_v7 = vsub.f32 %v2660_v54, %v2773_v2  ;;  %v7803_v8 = vsub.f32 %v2661_v22, %v2774_v3  ;;  %v2808_v16 = vmul.f32 %v7807_v11, %v7807_v11 }
 0x2c8   : > { %4954 = vmatpush2.bf16.msra.mxu0 %v6514_v20  ;;  %v7805_v10 = vsub.f32 %v2662_v25, %v2775_v4 }
 0x2c9   : > { %4995 = vmatpush2.bf16.msra.mxu1 %v6515_v21  ;;  %4955 = vmatprep.subr.bf16.mxu0 %v6516_v23  ;;  %v2805_v12 = vmul.f32 %v7801_v7, %v7801_v7  ;;  %v2806_v14 = vmul.f32 %v7803_v8, %v7803_v8  ;;  %v2839_v20 = vrot.slane %v2808_v16, 4 }
 0x2ca   : > { %4996 = vmatprep.subr.bf16.mxu1 %v6518_v24  ;;  %v2807_v15 = vmul.f32 %v7805_v10, %v7805_v10 }
 0x2cb   : > { %v2821_v17 = vrot.slane %v2805_v12, 4  ;;  %v2827_v18 = vrot.slane %v2806_v14, 4  ;;  %v2840_v23 = vadd.f32 %v2839_v20, %v2808_v16  ;;  %v7848_v20 = vsub.s32 1, %v7750_v56 }
 0x2cc   : > { %4956 = vmatpush2.bf16.msra.mxu0 %v6520_v31  ;;  %v2833_v19 = vrot.slane %v2807_v15, 4 }
 0x2cd   : > { %4997 = vmatpush2.bf16.msra.mxu1 %v6521_v32  ;;  %4957 = vmatprep.subr.bf16.mxu0 %v6522_v35  ;;  %v2822_v21 = vadd.f32 %v2821_v17, %v2805_v12  ;;  %v2828_v54 = vadd.f32 %v2827_v18, %v2806_v14  ;;  %v2841_v27 = vrot.slane %v2840_v23, 2  ;;  %v7843_v12 = vsub.s32 2, %v7750_v56 }
 0x2ce   : > { %4998 = vmatprep.subr.bf16.mxu1 %v6524_v13  ;;  %v2834_v22 = vadd.f32 %v2833_v19, %v2807_v15 }
 0x2cf   : > { %v2823_v24 = vrot.slane %v2822_v21, 2  ;;  %v2829_v25 = vrot.slane %v2828_v54, 2  ;;  %v2842_v31 = vadd.f32 %v2841_v27, %v2840_v23 }
 0x2d0   : > { %4958 = vmatpush2.bf16.msra.mxu0 %v6526_v42  ;;  %v2835_v26 = vrot.slane %v2834_v22, 2 }
 0x2d1   : > { %4999 = vmatpush2.bf16.msra.mxu1 %v6527_v43  ;;  %4959 = vmatprep.subr.bf16.mxu0 %v6528_v46  ;;  %v2824_v28 = vadd.f32 %v2823_v24, %v2822_v21  ;;  %v2830_v29 = vadd.f32 %v2829_v25, %v2828_v54  ;;  %v2843_v35 = vrot.slane %v2842_v31, 1  ;;  %v7853_v25 = vsub.s32 5, %v7750_v56 }
 0x2d2   : > { %5000 = vmatprep.subr.bf16.mxu1 %v6530_v47  ;;  %v2836_v30 = vadd.f32 %v2835_v26, %v2834_v22  ;;  %v7818_v47 = vld [vmem:[%s7396_s19 + $0x10] sm:$0x77] }
 0x2d3   : > { %v2825_v32 = vrot.slane %v2824_v28, 1  ;;  %v2831_v33 = vrot.slane %v2830_v29, 1  ;;  %v2844_v38 = vadd.f32 %v2843_v35, %v2842_v31  ;;  %v2535_v49 = vrot.slane %v7818_v47, %v7757_v62 }
 0x2d4   : > { %4960 = vmatpush2.bf16.msra.mxu0 %v6532_v53  ;;  %v2837_v34 = vrot.slane %v2836_v30, 1  ;;  %v2539_v50 = vrot.slane %v7818_v47, %v7760_v63  ;;  %v2543_v53 = vrot.slane %v7825_v51, %v7757_v62 }
 0x2d5   : > { %5001 = vmatpush2.bf16.msra.mxu1 %v6533_v55  ;;  %5011 = vmatprep.subr.bf16.mxu0 %v6536_v0  ;;  %v2826_v13 = vadd.f32 %v2825_v32, %v2824_v28  ;;  %v2832_v36 = vadd.f32 %v2831_v33, %v2830_v29  ;;  %v2920_v42 = vmul.f32 0.125, %v2844_v38  ;;  %v2547_v55 = vrot.slane %v7825_v51, %v7760_v63 }
 0x2d6   : > { %5052 = vmatprep.subr.bf16.mxu1 %v6539_v1  ;;  %v2838_v37 = vadd.f32 %v2837_v34, %v2836_v30  ;;  %v2615_v57 = vrot.slane %v2535_v49, %v7757_v62  ;;  %v2619_v59 = vrot.slane %v2539_v50, %v7757_v62  ;;  %v2623_v61 = vrot.slane %v2543_v53, %v7757_v62 }
 0x2d7   : > { %v2917_v39 = vmul.f32 0.125, %v2826_v13  ;;  %v2918_v40 = vmul.f32 0.125, %v2832_v36  ;;  %v2936_v46 = vadd.f32 1e-05, %v2920_v42  ;;  %v2627_v0 = vrot.slane %v2547_v55, %v7757_v62 }
 0x2d8   : > { %v2919_v41 = vmul.f32 0.125, %v2838_v37  ;;  %v7836_v1 = vsub.s32 6, %v7750_v56  ;;  %v2664_v2 = vadd.f32 %v2615_v57, %v2488_v58  ;;  %v2665_v3 = vadd.f32 %v2619_v59, %v2489_v48 }
 0x2d9   : > { %v2933_v43 = vadd.f32 1e-05, %v2917_v39  ;;  %v2934_v44 = vadd.f32 1e-05, %v2918_v40  ;;  %v7838_v4 = vadd.f32 %v2623_v61, %v2490_v52  ;;  %v7840_v6 = vadd.f32 %v2627_v0, %v2491_v60 }
 0x2da   : > { %v2935_v45 = vadd.f32 1e-05, %v2919_v41  ;;  %v2700_v14 = vrot.slane %v2664_v2, 4  ;;  %v2706_v15 = vrot.slane %v2665_v3, 4  ;;  %v3188_v21 = vrot.slane %v7768_v5, %v7836_v1 }
 0x2db   : > { %6838 = vrsqrt.f32 %v2933_v43  ;;  %v2712_v17 = vrot.slane %v7838_v4, 4  ;;  %v2718_v18 = vrot.slane %v7840_v6, 4  ;;  %v3196_v29 = vrot.slane %v7775_v9, %v7836_v1 }
 0x2dc   : > { %6840 = vrsqrt.f32 %v2934_v44  ;;  %v2701_v54 = vadd.f32 %v2700_v14, %v2664_v2  ;;  %v2707_v22 = vadd.f32 %v2706_v15, %v2665_v3  ;;  %v3184_v30 = vrot.slane %v7768_v5, %v7843_v12 }
 0x2dd   : > { %6842 = vrsqrt.f32 %v2935_v45  ;;  %v2713_v26 = vadd.f32 %v2712_v17, %v7838_v4  ;;  %v2719_v27 = vadd.f32 %v2718_v18, %v7840_v6  ;;  %v3268_v56 = vrot.slane %v3188_v21, %v7843_v12 }
 0x2de   : > { %6844 = vrsqrt.f32 %v2936_v46  ;;  %v2702_v31 = vrot.slane %v2701_v54, 2  ;;  %v2708_v32 = vrot.slane %v2707_v22, 2  ;;  %v3192_v36 = vrot.slane %v7775_v9, %v7843_v12 }
 0x2df   : > { %v2714_v35 = vrot.slane %v2713_v26, 2  ;;  %v2720_v13 = vrot.slane %v2719_v27, 2  ;;  %v3276_v43 = vrot.slane %v3196_v29, %v7843_v12  ;;  %v3264_v44 = vrot.slane %v3184_v30, %v7843_v12 }
 0x2e0   : > { %v2703_v37 = vadd.f32 %v2702_v31, %v2701_v54  ;;  %v2709_v38 = vadd.f32 %v2708_v32, %v2707_v22  ;;  %v3272_v52 = vrot.slane %v3192_v36, %v7843_v12 }
 0x2e1   : > { %v2715_v41 = vadd.f32 %v2714_v35, %v2713_v26  ;;  %v2721_v42 = vadd.f32 %v2720_v13, %v2719_v27 }
 0x2e2   : > { %v2704_v45 = vrot.slane %v2703_v37, 1  ;;  %v2710_v46 = vrot.slane %v2709_v38, 1 }
 0x2e3   : > { %v2716_v50 = vrot.slane %v2715_v41, 1  ;;  %v2722_v55 = vrot.slane %v2721_v42, 1 }
 0x2e4   : > { %v2705_v53 = vadd.f32 %v2704_v45, %v2703_v37 }
 0x2e5   : > { %v2717_v15 = vadd.f32 %v2716_v50, %v2715_v41 }
 0x2e6   : > { %v2777_v0 = vmul.f32 0.125, %v2705_v53 }
 0x2e7   : > { %v2779_v22 = vmul.f32 0.125, %v2717_v15 }
 0x2e8   : > { %v6839_v16 = vpop.eup %6838  ;;  %v7879_v21 = vsub.f32 %v2664_v2, %v2777_v0 }
 0x2e9   : > { %v6841_v19 = vpop.eup %6840  ;;  %v7890_v29 = vsub.f32 %v7838_v4, %v2779_v22 }
 0x2ea   : > { %v6843_v23 = vpop.eup %6842  ;;  %v2981_v24 = vcombine.low %v6839_v16, %v6841_v19 }
 0x2eb   : > { %v6845_v28 = vpop.eup %6844 }
 0x2ec   : > { %v2989_v33 = vrot.slane %v2981_v24, 7  ;;  %v2982_v34 = vcombine.low %v6843_v23, %v6845_v28 }
 0x2ee   : > { %v3005_v39 = vmul.f32 %v2989_v33, %v7768_v5  ;;  %v2990_v40 = vrot.slane %v2982_v34, 7  ;;  %v2711_v5 = vadd.f32 %v2710_v46, %v2709_v38 }
 0x2f0   : > { %v3028_v58 = vrot.slane %v3005_v39, %v7853_v25  ;;  %v3006_v48 = vmul.f32 %v2990_v40, %v7775_v9  ;;  %v3024_v49 = vrot.slane %v3005_v39, %v7848_v20  ;;  %v2778_v14 = vmul.f32 0.125, %v2711_v5 }
 0x2f1   : > { %v2723_v9 = vadd.f32 %v2722_v55, %v2721_v42 }
 0x2f2   : > { %v3108_v57 = vrot.slane %v3028_v58, %v7848_v20  ;;  %v3036_v59 = vrot.slane %v3006_v48, %v7853_v25  ;;  %v3104_v60 = vrot.slane %v3024_v49, %v7848_v20  ;;  %v3032_v61 = vrot.slane %v3006_v48, %v7848_v20 }
 0x2f3   : > { %v7881_v54 = vsub.f32 %v2665_v3, %v2778_v14  ;;  %v2780_v23 = vmul.f32 0.125, %v2723_v9 }
 0x2f4   : > { %v3166_v16 = vmul.f32 %v3108_v57, %v7803_v8  ;;  %v3116_v17 = vrot.slane %v3036_v59, %v7848_v20  ;;  %v3165_v18 = vmul.f32 %v3104_v60, %v7801_v7  ;;  %v3112_v19 = vrot.slane %v3032_v61, %v7848_v20  ;;  %v6534_v57 = vld [vmem:[%s7384_s7 + $0x270] ss:$8 sps:$4 sm:$0xff]   ;;  %v6542_v59 = vld [vmem:[%s7384_s7 + $0x264] ss:$8 sps:$4 sm:$0xff]  }
 0x2f5   : > { %v2809_v8 = vmul.f32 %v7879_v21, %v7879_v21  ;;  %v2810_v7 = vmul.f32 %v7881_v54, %v7881_v54  ;;  %v7893_v2 = vsub.f32 %v7840_v6, %v2780_v23  ;;  %v6545_v23 = vld [vmem:[%s7384_s7 + $0x364] ss:$8 sps:$4 sm:$0xff]  }
 0x2f6   : > { %v3326_v24 = vadd.f32 %v3268_v56, %v3166_v16  ;;  %v3168_v26 = vmul.f32 %v3116_v17, %v7807_v11  ;;  %v3325_v27 = vadd.f32 %v3264_v44, %v3165_v18  ;;  %v3167_v28 = vmul.f32 %v3112_v19, %v7805_v10  ;;  %v6537_v18 = vld [vmem:[%s7384_s7 + $0x370] ss:$8 sps:$4 sm:$0xff]  }
 0x2f7   : > { %v2845_v11 = vrot.slane %v2809_v8, 4  ;;  %v2851_v31 = vrot.slane %v2810_v7, 4  ;;  %v2811_v10 = vmul.f32 %v7890_v29, %v7890_v29  ;;  %v2812_v32 = vmul.f32 %v7893_v2, %v7893_v2 }
 0x2f8   : > { %6846 = vtanh.f32 %v3326_v24  ;;  %v3328_v3 = vadd.f32 %v3276_v43, %v3168_v26  ;;  %v3327_v30 = vadd.f32 %v3272_v52, %v3167_v28  ;;  %v6540_v26 = vld [vmem:[%s7384_s7 + $0x260] ss:$8 sps:$4 sm:$0xff]   ;;  %v6548_v28 = vld [vmem:[%s7384_s7 + $0x254] ss:$8 sps:$4 sm:$0xff]  }
 0x2f9   : > { %6848 = vtanh.f32 %v3325_v27  ;;  %v2846_v33 = vadd.f32 %v2845_v11, %v2809_v8  ;;  %v2852_v4 = vadd.f32 %v2851_v31, %v2810_v7  ;;  %v2857_v34 = vrot.slane %v2811_v10, 4  ;;  %v6543_v8 = vld [vmem:[%s7384_s7 + $0x360] ss:$8 sps:$4 sm:$0xff]   ;;  %v6546_v7 = vld [vmem:[%s7384_s7 + $0x250] ss:$8 sps:$4 sm:$0xff]  }
 0x2fa   : > { %6850 = vtanh.f32 %v3328_v3  ;;  %v2863_v35 = vrot.slane %v2812_v32, 4  ;;  %v6551_v3 = vld [vmem:[%s7384_s7 + $0x354] ss:$8 sps:$4 sm:$0xff]   ;;  %v6554_v11 = vld [vmem:[%s7384_s7 + $0x244] ss:$8 sps:$4 sm:$0xff]  }
 0x2fb   : > { %6852 = vtanh.f32 %v3327_v30  ;;  %v2847_v6 = vrot.slane %v2846_v33, 2  ;;  %v2853_v13 = vrot.slane %v2852_v4, 2  ;;  %v2858_v56 = vadd.f32 %v2857_v34, %v2811_v10  ;;  %v6549_v30 = vld [vmem:[%s7384_s7 + $0x350] ss:$8 sps:$4 sm:$0xff]   ;;  %v7911_v31 = vld [vmem:[%s7396_s19 + $0x20] sm:$0x77] }
 0x2fc   : > { %v2864_v36 = vadd.f32 %v2863_v35, %v2812_v32  ;;  %v6557_v10 = vld [vmem:[%s7384_s7 + $0x344] ss:$8 sps:$4 sm:$0xff]   ;;  %v2555_v34 = vrot.slane %v7911_v31, %v7760_v63 }
 0x2fd   : > { %v2848_v37 = vadd.f32 %v2847_v6, %v2846_v33  ;;  %v2854_v38 = vadd.f32 %v2853_v13, %v2852_v4  ;;  %v2859_v39 = vrot.slane %v2858_v56, 2  ;;  %v2492_v32 = vld [vmem:[#allocation2 + $0x40] sm:$0xff]  ;;  %v2551_v4 = vrot.slane %v7911_v31, %v7757_v62  ;;  %v7919_v35 = vld [vmem:[%s7396_s19 + $0x28] sm:$0x77]  ;;  %v2494_v6 = vld [vmem:[#allocation2 + $0x10] sm:$0xff] }
 0x2fe   : > { %v2865_v40 = vrot.slane %v2864_v36, 2  ;;  %v2493_v33 = vld [vmem:[#allocation2 + $0x20] sm:$0xff]  ;;  %v2559_v13 = vrot.slane %v7919_v35, %v7757_v62 }
 0x2ff   : > { %v2849_v41 = vrot.slane %v2848_v37, 1  ;;  %v2855_v42 = vrot.slane %v2854_v38, 1  ;;  %v2860_v43 = vadd.f32 %v2859_v39, %v2858_v56  ;;  %v2563_v56 = vrot.slane %v7919_v35, %v7760_v63  ;;  %v6552_v39 = vld [vmem:[%s7384_s7 + $0x240] ss:$8 sps:$4 sm:$0xff]  }
 0x300   : > { %v2866_v44 = vadd.f32 %v2865_v40, %v2864_v36  ;;  %v2631_v36 = vrot.slane %v2551_v4, %v7757_v62  ;;  %v2639_v40 = vrot.slane %v2559_v13, %v7757_v62 }
 0x301   : > { %v2850_v45 = vadd.f32 %v2849_v41, %v2848_v37  ;;  %v2856_v46 = vadd.f32 %v2855_v42, %v2854_v38  ;;  %v2861_v58 = vrot.slane %v2860_v43, 1  ;;  %v2635_v37 = vrot.slane %v2555_v34, %v7757_v62  ;;  %v2495_v38 = vld [vmem:[#allocation2 + $0x38] sm:$0xff] }
 0x302   : > { %v2867_v48 = vrot.slane %v2866_v44, 1  ;;  %v2643_v41 = vrot.slane %v2563_v56, %v7757_v62  ;;  %v6560_v42 = vld [vmem:[%s7384_s7 + $0x234] ss:$8 sps:$4 sm:$0xff]   ;;  %v6570_v56 = vld [vmem:[%s7384_s7 + $0x210] ss:$8 sps:$4 sm:$0xff]  }
 0x303   : > { %v2921_v50 = vmul.f32 0.125, %v2850_v45  ;;  %v2922_v52 = vmul.f32 0.125, %v2856_v46  ;;  %v2862_v53 = vadd.f32 %v2861_v58, %v2860_v43  ;;  %v7931_v43 = vadd.f32 %v2631_v36, %v2492_v32  ;;  %v6555_v45 = vld [vmem:[%s7384_s7 + $0x340] ss:$8 sps:$4 sm:$0xff]   ;;  %v6575_v34 = vld [vmem:[%s7384_s7 + $0x314] ss:$8 sps:$4 sm:$0xff]  }
 0x304   : > { %v2868_v60 = vadd.f32 %v2867_v48, %v2866_v44  ;;  %v7933_v44 = vadd.f32 %v2635_v37, %v2493_v33  ;;  %v7936_v46 = vadd.f32 %v2639_v40, %v2494_v6  ;;  %v7938_v58 = vadd.f32 %v2643_v41, %v2495_v38  ;;  %v6563_v48 = vld [vmem:[%s7384_s7 + $0x334] ss:$8 sps:$4 sm:$0xff]   ;;  %v6578_v40 = vld [vmem:[%s7384_s7 + $0x204] ss:$8 sps:$4 sm:$0xff]  }
 0x305   : > { %v6847_v49 = vpop.eup %6846  ;;  %v2937_v14 = vadd.f32 1e-05, %v2921_v50  ;;  %v2938_v15 = vadd.f32 1e-05, %v2922_v52  ;;  %v2923_v9 = vmul.f32 0.125, %v2862_v53  ;;  %v3212_v38 = vrot.slane %v7825_v51, %v7836_v1 }
 0x306   : > { %v6849_v5 = vpop.eup %6848  ;;  %v3615_v55 = vpack.c.bf16 %v6847_v49, %v6847_v49  ;;  %v2924_v19 = vmul.f32 0.125, %v2868_v60  ;;  %v2724_v49 = vrot.slane %v7931_v43, 4  ;;  %v2730_v50 = vrot.slane %v7933_v44, 4  ;;  %v6558_v53 = vld [vmem:[%s7384_s7 + $0x230] ss:$8 sps:$4 sm:$0xff]  }
 0x307   : > { %v6851_v61 = vpop.eup %6850  ;;  %v3614_v0 = vpack.c.bf16 %v6849_v5, %v6849_v5  ;;  %6854 = vrsqrt.f32 %v2937_v14  ;;  %v2939_v24 = vadd.f32 1e-05, %v2923_v9  ;;  %v2736_v5 = vrot.slane %v7936_v46, 4  ;;  %v6561_v14 = vld [vmem:[%s7384_s7 + $0x330] ss:$8 sps:$4 sm:$0xff]  }
 0x308   : > { %v6853_v16 = vpop.eup %6852  ;;  %4961 = vmatprep.mubr.bf16.mxu0 %v3615_v55  ;;  %v3617_v17 = vpack.c.bf16 %v6851_v61, %v6851_v61  ;;  %6856 = vrsqrt.f32 %v2938_v15  ;;  %v2940_v27 = vadd.f32 1e-05, %v2924_v19  ;;  %v2742_v55 = vrot.slane %v7938_v58, 4  ;;  %v6569_v19 = vld [vmem:[%s7384_s7 + $0x324] ss:$8 sps:$4 sm:$0xff]  }
 0x309   : > { %4962 = vmatmul.mubr.bf16.vlgmr.msra.gmra.mxu0 %v3614_v0  ;;  %v3616_v22 = vpack.c.bf16 %v6853_v16, %v6853_v16  ;;  %6858 = vrsqrt.f32 %v2939_v24  ;;  %v2725_v60 = vadd.f32 %v2724_v49, %v7931_v43  ;;  %v2731_v61 = vadd.f32 %v2730_v50, %v7933_v44 }
 0x30a   : > { %5002 = vmatprep.mubr.bf16.mxu1 %v3617_v17  ;;  %5012 = vmatpush1.bf16.msra.mxu0 %v6534_v57  ;;  %6860 = vrsqrt.f32 %v2940_v27  ;;  %v2737_v9 = vadd.f32 %v2736_v5, %v7936_v46  ;;  %v2743_v16 = vadd.f32 %v2742_v55, %v7938_v58 }
 0x30b   : > { %5003 = vmatmul.mubr.bf16.vlgmr.msra.gmra.mxu1 %v3616_v22  ;;  %5013 = vmatprep.subr.bf16.mxu0 %v6542_v59  ;;  %v6566_v59 = vld [vmem:[%s7384_s7 + $0x224] ss:$8 sps:$4 sm:$0xff]   ;;  %v2726_v22 = vrot.slane %v2725_v60, 2 }
 0x30c   : > { %5053 = vmatpush1.bf16.msra.mxu1 %v6537_v18  ;;  %v6564_v18 = vld [vmem:[%s7384_s7 + $0x220] ss:$8 sps:$4 sm:$0xff]   ;;  %v2738_v27 = vrot.slane %v2737_v9, 2 }
 0x30d   : > { %5054 = vmatprep.subr.bf16.mxu1 %v6545_v23  ;;  %v2732_v23 = vrot.slane %v2731_v61, 2 }
 0x30e   : > { %5014 = vmatpush1.bf16.msra.mxu0 %v6540_v26  ;;  %v2739_v33 = vadd.f32 %v2738_v27, %v2737_v9 }
 0x30f   : > { %5015 = vmatprep.subr.bf16.mxu0 %v6548_v28  ;;  %v2744_v28 = vrot.slane %v2743_v16, 2 }
 0x310   : > { %5055 = vmatpush1.bf16.msra.mxu1 %v6543_v8  ;;  %v6572_v8 = vld [vmem:[%s7384_s7 + $0x214] ss:$8 sps:$4 sm:$0xff]  }
 0x311   : > { %5056 = vmatprep.subr.bf16.mxu1 %v6551_v3  ;;  %v2727_v3 = vadd.f32 %v2726_v22, %v2725_v60  ;;  %v2745_v4 = vadd.f32 %v2744_v28, %v2743_v16  ;;  %v6576_v60 = vld [vmem:[%s7384_s7 + $0x200] ss:$8 sps:$4 sm:$0xff]   ;;  %v6582_v22 = vld [vmem:[%s7384_s7 + $0x2f0] ss:$8 sps:$4 sm:$0xff]  }
 0x312   : > { %5016 = vmatpush1.bf16.msra.mxu0 %v6546_v7  ;;  %v3204_v7 = vrot.slane %v7818_v47, %v7836_v1 }
 0x313   : > { %5017 = vmatprep.subr.bf16.mxu0 %v6554_v11  ;;  %v6567_v11 = vld [vmem:[%s7384_s7 + $0x320] ss:$8 sps:$4 sm:$0xff]   ;;  %v2728_v6 = vrot.slane %v2727_v3, 1 }
 0x314   : > { %5057 = vmatpush1.bf16.msra.mxu1 %v6549_v30  ;;  %v6855_v52 = vpop.eup %6854  ;;  %v2733_v30 = vadd.f32 %v2732_v23, %v2731_v61  ;;  %v3284_v50 = vrot.slane %v3204_v7, %v7843_v12 }
 0x315   : > { %5058 = vmatprep.subr.bf16.mxu1 %v6557_v10  ;;  %v6857_v57 = vpop.eup %6856  ;;  %v2729_v41 = vadd.f32 %v2728_v6, %v2727_v3 }
 0x316   : > { %5018 = vmatpush1.bf16.msra.mxu0 %v6552_v39  ;;  %v6859_v0 = vpop.eup %6858  ;;  %v2983_v15 = vcombine.low %v6855_v52, %v6857_v57  ;;  %v2734_v13 = vrot.slane %v2733_v30, 1  ;;  %v2740_v39 = vrot.slane %v2739_v33, 1 }
 0x317   : > { %5019 = vmatprep.subr.bf16.mxu0 %v6560_v42  ;;  %v6861_v17 = vpop.eup %6860  ;;  %v2781_v5 = vmul.f32 0.125, %v2729_v41  ;;  %v6591_v41 = vld [vmem:[%s7384_s7 + $0x3e0] ss:$8 sps:$4 sm:$0xff]  }
 0x318   : > { %5059 = vmatpush1.bf16.msra.mxu1 %v6555_v45  ;;  %v2991_v24 = vrot.slane %v2983_v15, 7  ;;  %v2984_v26 = vcombine.low %v6859_v0, %v6861_v17  ;;  %v2735_v42 = vadd.f32 %v2734_v13, %v2733_v30  ;;  %v2746_v45 = vrot.slane %v2745_v4, 1  ;;  %v6584_v15 = vld [vmem:[%s7384_s7 + $0x2f4] ss:$8 sps:$4 sm:$0xff]  }
 0x319   : > { %5060 = vmatprep.subr.bf16.mxu1 %v6563_v48  ;;  %v6573_v48 = vld [vmem:[%s7384_s7 + $0x310] ss:$8 sps:$4 sm:$0xff]   ;;  %v2741_v57 = vadd.f32 %v2740_v39, %v2739_v33  ;;  %v7983_v9 = vsub.f32 %v7931_v43, %v2781_v5  ;;  %v6590_v43 = vld [vmem:[%s7384_s7 + $0x2e4] ss:$8 sps:$4 sm:$0xff]  }
 0x31a   : > { %5020 = vmatpush1.bf16.msra.mxu0 %v6558_v53  ;;  %v7959_v10 = vmul.f32 %v2991_v24, %v7818_v47  ;;  %v2992_v32 = vrot.slane %v2984_v26, 7  ;;  %v6581_v53 = vld [vmem:[%s7384_s7 + $0x304] ss:$8 sps:$4 sm:$0xff]   ;;  %v2782_v55 = vmul.f32 0.125, %v2735_v42  ;;  %v6587_v26 = vld [vmem:[%s7384_s7 + $0x3f4] ss:$8 sps:$4 sm:$0xff]  }
 0x31b   : > { %5021 = vmatprep.subr.bf16.mxu0 %v6566_v59  ;;  %v2747_v59 = vadd.f32 %v2746_v45, %v2745_v4  ;;  %v2783_v17 = vmul.f32 0.125, %v2741_v57  ;;  %v6596_v4 = vld [vmem:[%s7384_s7 + $0x2d4] ss:$8 sps:$4 sm:$0xff]   ;;  %v6594_v42 = vld [vmem:[%s7384_s7 + $0x2d0] ss:$8 sps:$4 sm:$0xff]  }
 0x31c   : > { %5061 = vmatpush1.bf16.msra.mxu1 %v6561_v14  ;;  %v3044_v36 = vrot.slane %v7959_v10, %v7853_v25  ;;  %v7966_v37 = vmul.f32 %v2992_v32, %v7825_v51  ;;  %v3292_v14 = vrot.slane %v3212_v38, %v7843_v12  ;;  %v7986_v16 = vsub.f32 %v7933_v44, %v2782_v55  ;;  %v6593_v32 = vld [vmem:[%s7384_s7 + $0x3e4] ss:$8 sps:$4 sm:$0xff]   ;;  %v6599_v45 = vld [vmem:[%s7384_s7 + $0x3d4] ss:$8 sps:$4 sm:$0xff]  }
 0x31d   : > { %5062 = vmatprep.subr.bf16.mxu1 %v6569_v19  ;;  %v6579_v19 = vld [vmem:[%s7384_s7 + $0x300] ss:$8 sps:$4 sm:$0xff]   ;;  %v3040_v24 = vrot.slane %v7959_v10, %v7848_v20  ;;  %v2813_v44 = vmul.f32 %v7983_v9, %v7983_v9  ;;  %v8000_v28 = vsub.f32 %v7936_v46, %v2783_v17  ;;  %v6585_v10 = vld [vmem:[%s7384_s7 + $0x3f0] ss:$8 sps:$4 sm:$0xff]   ;;  %v6605_v17 = vld [vmem:[%s7384_s7 + $0x3c4] ss:$8 sps:$4 sm:$0xff]  }
 0x31e   : > { %5022 = vmatpush1.bf16.msra.mxu0 %v6564_v18  ;;  %v3124_v49 = vrot.slane %v3044_v36, %v7848_v20  ;;  %v3052_v52 = vrot.slane %v7966_v37, %v7853_v25  ;;  %v2784_v18 = vmul.f32 0.125, %v2747_v59  ;;  %v2814_v27 = vmul.f32 %v7986_v16, %v7986_v16  ;;  %v6588_v46 = vld [vmem:[%s7384_s7 + $0x2e0] ss:$8 sps:$4 sm:$0xff]  }
 0x31f   : > { %5023 = vmatprep.subr.bf16.mxu0 %v6572_v8  ;;  %v3048_v7 = vrot.slane %v7966_v37, %v7848_v20  ;;  %v2869_v3 = vrot.slane %v2813_v44, 4 }
 0x320   : > { %5063 = vmatpush1.bf16.msra.mxu1 %v6567_v11  ;;  %v3170_v61 = vmul.f32 %v3124_v49, %v7881_v54  ;;  %v3132_v0 = vrot.slane %v3052_v52, %v7848_v20  ;;  %v2875_v30 = vrot.slane %v2814_v27, 4  ;;  %v2815_v11 = vmul.f32 %v8000_v28, %v8000_v28 }
 0x321   : > { %5064 = vmatprep.subr.bf16.mxu1 %v6575_v34  ;;  %v3120_v34 = vrot.slane %v3040_v24, %v7848_v20  ;;  %v2870_v6 = vadd.f32 %v2869_v3, %v2813_v44  ;;  %v3128_v36 = vrot.slane %v3048_v7, %v7848_v20  ;;  %v6611_v7 = vld [vmem:[%s7384_s7 + $0x3b4] ss:$8 sps:$4 sm:$0xff]  }
 0x322   : > { %5024 = vmatpush1.bf16.msra.mxu0 %v6570_v56  ;;  %v3330_v54 = vadd.f32 %v3284_v50, %v3170_v61  ;;  %v3172_v23 = vmul.f32 %v3132_v0, %v7893_v2  ;;  %v8003_v2 = vsub.f32 %v7938_v58, %v2784_v18  ;;  %v3200_v58 = vrot.slane %v7818_v47, %v7843_v12  ;;  %v6602_v50 = vld [vmem:[%s7384_s7 + $0x2c4] ss:$8 sps:$4 sm:$0xff]  }
 0x323   : > { %5025 = vmatprep.subr.bf16.mxu0 %v6578_v40  ;;  %v2876_v13 = vadd.f32 %v2875_v30, %v2814_v27  ;;  %v2881_v56 = vrot.slane %v2815_v11, 4  ;;  %v3208_v47 = vrot.slane %v7825_v51, %v7843_v12  ;;  %v2871_v38 = vrot.slane %v2870_v6, 2 }
 0x324   : > { %5065 = vmatpush1.bf16.msra.mxu1 %v6573_v48  ;;  %6862 = vtanh.f32 %v3330_v54  ;;  %v3332_v8 = vadd.f32 %v3292_v14, %v3172_v23  ;;  %v2816_v33 = vmul.f32 %v8003_v2, %v8003_v2  ;;  %v3280_v48 = vrot.slane %v3200_v58, %v7843_v12  ;;  %v6597_v14 = vld [vmem:[%s7384_s7 + $0x3d0] ss:$8 sps:$4 sm:$0xff]  }
 0x325   : > { %5066 = vmatprep.subr.bf16.mxu1 %v6581_v53  ;;  %v2877_v39 = vrot.slane %v2876_v13, 2  ;;  %v2882_v40 = vadd.f32 %v2881_v56, %v2815_v11  ;;  %v3169_v52 = vmul.f32 %v3120_v34, %v7879_v21  ;;  %v2872_v51 = vadd.f32 %v2871_v38, %v2870_v6  ;;  %v6608_v21 = vld [vmem:[%s7384_s7 + $0x2b4] ss:$8 sps:$4 sm:$0xff]   ;;  %v6606_v58 = vld [vmem:[%s7384_s7 + $0x2b0] ss:$8 sps:$4 sm:$0xff]  }
 0x326   : > { %5026 = vmatpush1.bf16.msra.mxu0 %v6576_v60  ;;  %6864 = vtanh.f32 %v3332_v8  ;;  %v2887_v37 = vrot.slane %v2816_v33, 4  ;;  %v3171_v55 = vmul.f32 %v3128_v36, %v7890_v29  ;;  %v3288_v57 = vrot.slane %v3208_v47, %v7843_v12  ;;  %v6603_v8 = vld [vmem:[%s7384_s7 + $0x3c0] ss:$8 sps:$4 sm:$0xff]   ;;  %v6614_v6 = vld [vmem:[%s7384_s7 + $0x2a4] ss:$8 sps:$4 sm:$0xff]  }
 0x327   : > { %5027 = vmatprep.subr.bf16.mxu0 %v6584_v15  ;;  %v2878_v53 = vadd.f32 %v2877_v39, %v2876_v13  ;;  %v2883_v5 = vrot.slane %v2882_v40, 2  ;;  %v2873_v60 = vrot.slane %v2872_v51, 1  ;;  %v6600_v15 = vld [vmem:[%s7384_s7 + $0x2c0] ss:$8 sps:$4 sm:$0xff]   ;;  %v8039_v56 = vld [vmem:[%s7396_s19 + $0x30] sm:$0x77] }
 0x328   : > { %5067 = vmatpush1.bf16.msra.mxu1 %v6579_v19  ;;  %v2888_v49 = vadd.f32 %v2887_v37, %v2816_v33  ;;  %v3329_v19 = vadd.f32 %v3280_v48, %v3169_v52  ;;  %v3331_v23 = vadd.f32 %v3288_v57, %v3171_v55  ;;  %v6609_v33 = vld [vmem:[%s7384_s7 + $0x3b0] ss:$8 sps:$4 sm:$0xff]   ;;  %v6612_v36 = vld [vmem:[%s7384_s7 + $0x2a0] ss:$8 sps:$4 sm:$0xff]   ;;  %v6617_v47 = vld [vmem:[%s7384_s7 + $0x3a4] ss:$8 sps:$4 sm:$0xff]   ;;  %v2567_v38 = vrot.slane %v8039_v56, %v7757_v62 }
 0x329   : > { %5068 = vmatprep.subr.bf16.mxu1 %v6587_v26  ;;  %v2879_v61 = vrot.slane %v2878_v53, 1  ;;  %v2884_v0 = vadd.f32 %v2883_v5, %v2882_v40  ;;  %v2571_v39 = vrot.slane %v8039_v56, %v7760_v63  ;;  %v6620_v40 = vld [vmem:[%s7384_s7 + $0x294] ss:$8 sps:$4 sm:$0xff]  }
 0x32a   : > { %5028 = vmatpush2.bf16.msra.mxu0 %v6582_v22  ;;  %v2889_v59 = vrot.slane %v2888_v49, 2  ;;  %v2874_v22 = vadd.f32 %v2873_v60, %v2872_v51  ;;  %6866 = vtanh.f32 %v3329_v19  ;;  %v2647_v48 = vrot.slane %v2567_v38, %v7757_v62  ;;  %v6623_v5 = vld [vmem:[%s7384_s7 + $0x394] ss:$8 sps:$4 sm:$0xff]   ;;  %v2499_v60 = vld [vmem:[#allocation2 + $0x28] sm:$0xff]  ;;  %v6621_v19 = vld [vmem:[%s7384_s7 + $0x390] ss:$8 sps:$4 sm:$0xff]  }
 0x32b   : > { %5029 = vmatprep.subr.bf16.mxu0 %v6590_v43  ;;  %v2880_v54 = vadd.f32 %v2879_v61, %v2878_v53  ;;  %v2885_v29 = vrot.slane %v2884_v0, 1  ;;  %6868 = vtanh.f32 %v3331_v23  ;;  %v6618_v53 = vld [vmem:[%s7384_s7 + $0x290] ss:$8 sps:$4 sm:$0xff]   ;;  %v6626_v61 = vld [vmem:[%s7384_s7 + $0x284] ss:$8 sps:$4 sm:$0xff]  }
 0x32c   : > { %5069 = vmatpush2.bf16.msra.mxu1 %v6585_v10  ;;  %v2890_v18 = vadd.f32 %v2889_v59, %v2888_v49  ;;  %v2925_v43 = vmul.f32 0.125, %v2874_v22  ;;  %v2651_v49 = vrot.slane %v2571_v39, %v7757_v62  ;;  %v2498_v59 = vld [vmem:[#allocation2 + $0x78] sm:$0xff]  ;;  %v6624_v22 = vld [vmem:[%s7384_s7 + $0x280] ss:$8 sps:$4 sm:$0xff]  }
 0x32d   : > { %5070 = vmatprep.subr.bf16.mxu1 %v6593_v32  ;;  %v2926_v44 = vmul.f32 0.125, %v2880_v54  ;;  %v2886_v27 = vadd.f32 %v2885_v29, %v2884_v0  ;;  %v6629_v54 = vld [vmem:[%s7384_s7 + $0x384] ss:$8 sps:$4 sm:$0xff]   ;;  %v6633_v39 = vld [vmem:[%s7384_s7 + $0x570] ss:$8 sps:$4 sm:$0xff]  }
 0x32e   : > { %5030 = vmatpush2.bf16.msra.mxu0 %v6588_v46  ;;  %v2891_v24 = vrot.slane %v2890_v18, 1  ;;  %v2941_v10 = vadd.f32 1e-05, %v2925_v43 }
 0x32f   : > { %5031 = vmatprep.subr.bf16.mxu0 %v6596_v4  ;;  %v2942_v46 = vadd.f32 1e-05, %v2926_v44  ;;  %v2927_v32 = vmul.f32 0.125, %v2886_v27 }
 0x330   : > { %5071 = vmatpush2.bf16.msra.mxu1 %v6591_v41  ;;  %v2892_v30 = vadd.f32 %v2891_v24, %v2890_v18  ;;  %6870 = vrsqrt.f32 %v2941_v10  ;;  %v2496_v41 = vld [vmem:[#allocation2 + $0x60] sm:$0xff]  ;;  %v6632_v24 = vld [vmem:[%s7384_s7 + $0x474] ss:$8 sps:$4 sm:$0xff]  }
 0x331   : > { %5072 = vmatprep.subr.bf16.mxu1 %v6599_v45  ;;  %v6863_v26 = vpop.eup %6862  ;;  %v2943_v13 = vadd.f32 1e-05, %v2927_v32  ;;  %6872 = vrsqrt.f32 %v2942_v46  ;;  %v6615_v45 = vld [vmem:[%s7384_s7 + $0x3a0] ss:$8 sps:$4 sm:$0xff]   ;;  %v8060_v55 = vadd.f32 %v2647_v48, %v2496_v41  ;;  %v6630_v46 = vld [vmem:[%s7384_s7 + $0x470] ss:$8 sps:$4 sm:$0xff]   ;;  %v3228_v41 = vrot.slane %v7919_v35, %v7836_v1 }
 0x332   : > { %5032 = vmatpush2.bf16.msra.mxu0 %v6594_v42  ;;  %v3619_v3 = vpack.c.bf16 %v6863_v26, %v6863_v26  ;;  %v2928_v34 = vmul.f32 0.125, %v2892_v30  ;;  %v2497_v42 = vld [vmem:[#allocation2 + $0x70] sm:$0xff]  ;;  %v6627_v10 = vld [vmem:[%s7384_s7 + $0x380] ss:$8 sps:$4 sm:$0xff]  }
 0x333   : > { %5033 = vmatprep.subr.bf16.mxu0 %v6602_v50  ;;  %v6865_v11 = vpop.eup %6864  ;;  %6874 = vrsqrt.f32 %v2943_v13  ;;  %v8052_v50 = vld [vmem:[%s7396_s19 + $0x38] sm:$0x77]  ;;  %v8062_v57 = vadd.f32 %v2651_v49, %v2497_v42  ;;  %v6638_v13 = vld [vmem:[%s7384_s7 + $0x464] ss:$8 sps:$4 sm:$0xff]  }
 0x334   : > { %5073 = vmatpush2.bf16.msra.mxu1 %v6597_v14  ;;  %5043 = vmatprep.mubr.bf16.mxu0 %v3619_v3  ;;  %v3621_v4 = vpack.c.bf16 %v6865_v11, %v6865_v11  ;;  %v2944_v37 = vadd.f32 1e-05, %v2928_v34  ;;  %v2575_v52 = vrot.slane %v8052_v50, %v7757_v62  ;;  %v2579_v51 = vrot.slane %v8052_v50, %v7760_v63  ;;  %v6635_v32 = vld [vmem:[%s7384_s7 + $0x574] ss:$8 sps:$4 sm:$0xff]  }
 0x335   : > { %5074 = vmatprep.subr.bf16.mxu1 %v6605_v17  ;;  %v2754_v17 = vrot.slane %v8062_v57, 4 }
 0x336   : > { %5034 = vmatpush2.bf16.msra.mxu0 %v6600_v15  ;;  %5084 = vmatprep.mubr.bf16.mxu1 %v3621_v4  ;;  %6876 = vrsqrt.f32 %v2944_v37  ;;  %v2655_v0 = vrot.slane %v2575_v52, %v7757_v62  ;;  %v2659_v14 = vrot.slane %v2579_v51, %v7757_v62  ;;  %v2748_v15 = vrot.slane %v8060_v55, 4 }
 0x337   : > { %5035 = vmatprep.subr.bf16.mxu0 %v6608_v21  ;;  %v2755_v23 = vadd.f32 %v2754_v17, %v8062_v57  ;;  %v6867_v44 = vpop.eup %6866  ;;  %v3224_v52 = vrot.slane %v7919_v35, %v7843_v12 }
 0x338   : > { %5075 = vmatpush2.bf16.msra.mxu1 %v6603_v8  ;;  %v8069_v18 = vadd.f32 %v2655_v0, %v2498_v59  ;;  %v8071_v21 = vadd.f32 %v2659_v14, %v2499_v60  ;;  %v2749_v29 = vadd.f32 %v2748_v15, %v8060_v55  ;;  %v6641_v59 = vld [vmem:[%s7384_s7 + $0x564] ss:$8 sps:$4 sm:$0xff]   ;;  %v6644_v15 = vld [vmem:[%s7384_s7 + $0x454] ss:$8 sps:$4 sm:$0xff]  }
 0x339   : > { %5076 = vmatprep.subr.bf16.mxu1 %v6611_v7  ;;  %v2756_v8 = vrot.slane %v2755_v23, 2  ;;  %v6869_v7 = vpop.eup %6868 }
 0x33a   : > { %5036 = vmatpush2.bf16.msra.mxu0 %v6606_v58  ;;  %v2760_v26 = vrot.slane %v8069_v18, 4  ;;  %v2766_v43 = vrot.slane %v8071_v21, 4  ;;  %v2750_v27 = vrot.slane %v2749_v29, 2  ;;  %v3220_v58 = vrot.slane %v7911_v31, %v7836_v1 }
 0x33b   : > { %5037 = vmatprep.subr.bf16.mxu0 %v6614_v6  ;;  %v2757_v4 = vadd.f32 %v2756_v8, %v2755_v23  ;;  %v3618_v6 = vpack.c.bf16 %v6867_v44, %v6867_v44  ;;  %v3620_v49 = vpack.c.bf16 %v6869_v7, %v6869_v7  ;;  %v6639_v8 = vld [vmem:[%s7384_s7 + $0x560] ss:$8 sps:$4 sm:$0xff]  }
 0x33c   : > { %5077 = vmatpush2.bf16.msra.mxu1 %v6609_v33  ;;  %v2761_v3 = vadd.f32 %v2760_v26, %v8069_v18  ;;  %v2767_v30 = vadd.f32 %v2766_v43, %v8071_v21  ;;  %v2751_v33 = vadd.f32 %v2750_v27, %v2749_v29  ;;  %v3300_v17 = vrot.slane %v3220_v58, %v7843_v12 }
 0x33d   : > { %5078 = vmatprep.subr.bf16.mxu1 %v6617_v47  ;;  %v6871_v11 = vpop.eup %6870  ;;  %v3308_v43 = vrot.slane %v3228_v41, %v7843_v12 }
 0x33e   : > { %5038 = vmatpush2.bf16.msra.mxu0 %v6612_v36  ;;  %v6873_v34 = vpop.eup %6872  ;;  %v3216_v36 = vrot.slane %v7911_v31, %v7843_v12  ;;  %v2762_v47 = vrot.slane %v2761_v3, 2  ;;  %v2768_v37 = vrot.slane %v2767_v30, 2  ;;  %v2752_v42 = vrot.slane %v2751_v33, 1 }
 0x33f   : > { %5039 = vmatprep.subr.bf16.mxu0 %v6620_v40  ;;  %v2985_v40 = vcombine.low %v6871_v11, %v6873_v34  ;;  %v6647_v11 = vld [vmem:[%s7384_s7 + $0x554] ss:$8 sps:$4 sm:$0xff]  }
 0x340   : > { %5079 = vmatpush2.bf16.msra.mxu1 %v6615_v45  ;;  %v6875_v38 = vpop.eup %6874  ;;  %v2758_v45 = vrot.slane %v2757_v4, 1  ;;  %v2763_v51 = vadd.f32 %v2762_v47, %v2761_v3  ;;  %v2753_v0 = vadd.f32 %v2752_v42, %v2751_v33  ;;  %v6642_v33 = vld [vmem:[%s7384_s7 + $0x450] ss:$8 sps:$4 sm:$0xff]   ;;  %v6653_v42 = vld [vmem:[%s7384_s7 + $0x544] ss:$8 sps:$4 sm:$0xff]  }
 0x341   : > { %5080 = vmatprep.subr.bf16.mxu1 %v6623_v5  ;;  %v6636_v5 = vld [vmem:[%s7384_s7 + $0x460] ss:$8 sps:$4 sm:$0xff]   ;;  %v2993_v60 = vrot.slane %v2985_v40, 7 }
 0x342   : > { %5040 = vmatpush2.bf16.msra.mxu0 %v6618_v53  ;;  %v2769_v53 = vadd.f32 %v2768_v37, %v2767_v30  ;;  %v2759_v14 = vadd.f32 %v2758_v45, %v2757_v4  ;;  %v6645_v37 = vld [vmem:[%s7384_s7 + $0x550] ss:$8 sps:$4 sm:$0xff]  }
 0x343   : > { %5041 = vmatprep.subr.bf16.mxu0 %v6626_v61  ;;  %v6877_v48 = vpop.eup %6876  ;;  %v3009_v29 = vmul.f32 %v2993_v60, %v7911_v31 }
 0x344   : > { %5081 = vmatpush2.bf16.msra.mxu1 %v6621_v19  ;;  %v2986_v61 = vcombine.low %v6875_v38, %v6877_v48  ;;  %v3296_v19 = vrot.slane %v3216_v36, %v7843_v12  ;;  %v2786_v26 = vmul.f32 0.125, %v2759_v14 }
 0x345   : > { %5082 = vmatprep.subr.bf16.mxu1 %v6629_v54  ;;  %v2770_v54 = vrot.slane %v2769_v53, 1  ;;  %v3060_v7 = vrot.slane %v3009_v29, %v7853_v25  ;;  %v3056_v31 = vrot.slane %v3009_v29, %v7848_v20  ;;  %v6662_v29 = vld [vmem:[%s7384_s7 + $0x424] ss:$8 sps:$4 sm:$0xff]  }
 0x346   : > { %5042 = vmatpush2.bf16.msra.mxu0 %v6624_v22  ;;  %v2764_v22 = vrot.slane %v2763_v51, 1  ;;  %v2994_v23 = vrot.slane %v2986_v61, 7 }
 0x347   : > { %5093 = vmatprep.subr.bf16.mxu0 %v6632_v24  ;;  %v2785_v24 = vmul.f32 0.125, %v2753_v0  ;;  %v2771_v27 = vadd.f32 %v2770_v54, %v2769_v53  ;;  %v6656_v53 = vld [vmem:[%s7384_s7 + $0x434] ss:$8 sps:$4 sm:$0xff]   ;;  %v6651_v0 = vld [vmem:[%s7384_s7 + $0x540] ss:$8 sps:$4 sm:$0xff]  }
 0x348   : > { %5083 = vmatpush2.bf16.msra.mxu1 %v6627_v10  ;;  %v2765_v44 = vadd.f32 %v2764_v22, %v2763_v51  ;;  %v3010_v3 = vmul.f32 %v2994_v23, %v7919_v35  ;;  %v3304_v10 = vrot.slane %v3224_v52, %v7843_v12  ;;  %v3140_v35 = vrot.slane %v3060_v7, %v7848_v20  ;;  %v6654_v22 = vld [vmem:[%s7384_s7 + $0x430] ss:$8 sps:$4 sm:$0xff]  }
 0x349   : > { %5044 = vmatmul.mubr.bf16.vlgmr.msra.gmra.mxu0 %v3618_v6  ;;  %5134 = vmatprep.subr.bf16.mxu1 %v6635_v32  ;;  %v8108_v30 = vsub.f32 %v8060_v55, %v2785_v24  ;;  %v2788_v58 = vmul.f32 0.125, %v2771_v27  ;;  %v3136_v55 = vrot.slane %v3056_v31, %v7848_v20  ;;  %v6650_v6 = vld [vmem:[%s7384_s7 + $0x444] ss:$8 sps:$4 sm:$0xff]   ;;  %v6660_v31 = vld [vmem:[%s7384_s7 + $0x420] ss:$8 sps:$4 sm:$0xff]  }
 0x34a   : > { %5094 = vmatpush1.bf16.msra.mxu0 %v6630_v46  ;;  %v8113_v46 = vsub.f32 %v8062_v57, %v2786_v26  ;;  %v2787_v32 = vmul.f32 0.125, %v2765_v44  ;;  %v3068_v4 = vrot.slane %v3010_v3, %v7853_v25  ;;  %v3064_v34 = vrot.slane %v3010_v3, %v7848_v20  ;;  %v6665_v27 = vld [vmem:[%s7384_s7 + $0x524] ss:$8 sps:$4 sm:$0xff]  }
 0x34b   : > { %5085 = vmatmul.mubr.bf16.vlgmr.msra.gmra.mxu1 %v3620_v49  ;;  %5095 = vmatprep.subr.bf16.mxu0 %v6638_v13  ;;  %v2817_v57 = vmul.f32 %v8108_v30, %v8108_v30  ;;  %v8129_v47 = vsub.f32 %v8071_v21, %v2788_v58  ;;  %v3174_v38 = vmul.f32 %v3140_v35, %v7986_v16  ;;  %v6648_v16 = vld [vmem:[%s7384_s7 + $0x440] ss:$8 sps:$4 sm:$0xff]  }
 0x34c   : > { %5135 = vmatpush1.bf16.msra.mxu1 %v6633_v39  ;;  %v2818_v13 = vmul.f32 %v8113_v46, %v8113_v46  ;;  %v8126_v36 = vsub.f32 %v8069_v18, %v2787_v32  ;;  %v3148_v39 = vrot.slane %v3068_v4, %v7848_v20  ;;  %v3173_v40 = vmul.f32 %v3136_v55, %v7983_v9  ;;  %v6663_v35 = vld [vmem:[%s7384_s7 + $0x520] ss:$8 sps:$4 sm:$0xff]   ;;  %v6671_v55 = vld [vmem:[%s7384_s7 + $0x514] ss:$8 sps:$4 sm:$0xff]  }
 0x34d   : > { %5136 = vmatprep.subr.bf16.mxu1 %v6641_v59  ;;  %v3144_v41 = vrot.slane %v3064_v34, %v7848_v20  ;;  %v2893_v45 = vrot.slane %v2817_v57, 4  ;;  %v2820_v21 = vmul.f32 %v8129_v47, %v8129_v47  ;;  %v3334_v49 = vadd.f32 %v3300_v17, %v3174_v38 }
 0x34e   : > { %5096 = vmatpush1.bf16.msra.mxu0 %v6636_v5  ;;  %v2899_v48 = vrot.slane %v2818_v13, 4  ;;  %v2819_v18 = vmul.f32 %v8126_v36, %v8126_v36  ;;  %v3176_v52 = vmul.f32 %v3148_v39, %v8003_v2  ;;  %v8143_v9 = vadd.f32 %v3296_v19, %v3173_v40  ;;  %v6659_v2 = vld [vmem:[%s7384_s7 + $0x534] ss:$8 sps:$4 sm:$0xff]  }
 0x34f   : > { %5097 = vmatprep.subr.bf16.mxu0 %v6644_v15  ;;  %v3175_v51 = vmul.f32 %v3144_v41, %v8000_v28  ;;  %v2894_v5 = vadd.f32 %v2893_v45, %v2817_v57  ;;  %v2911_v61 = vrot.slane %v2820_v21, 4  ;;  %6878 = vtanh.f32 %v3334_v49 }
 0x350   : > { %5137 = vmatpush1.bf16.msra.mxu1 %v6639_v8  ;;  %v2900_v59 = vadd.f32 %v2899_v48, %v2818_v13  ;;  %v2905_v60 = vrot.slane %v2819_v18, 4  ;;  %v3336_v14 = vadd.f32 %v3308_v43, %v3176_v52  ;;  %v6657_v43 = vld [vmem:[%s7384_s7 + $0x530] ss:$8 sps:$4 sm:$0xff]  }
 0x351   : > { %5138 = vmatprep.subr.bf16.mxu1 %v6647_v11  ;;  %v8148_v15 = vadd.f32 %v3304_v10, %v3175_v51  ;;  %v2895_v17 = vrot.slane %v2894_v5, 2  ;;  %v2912_v54 = vadd.f32 %v2911_v61, %v2820_v21  ;;  %v6668_v10 = vld [vmem:[%s7384_s7 + $0x414] ss:$8 sps:$4 sm:$0xff]   ;;  %v6666_v13 = vld [vmem:[%s7384_s7 + $0x410] ss:$8 sps:$4 sm:$0xff]  }
 0x352   : > { %5098 = vmatpush1.bf16.msra.mxu0 %v6642_v33  ;;  %v2901_v28 = vrot.slane %v2900_v59, 2  ;;  %v2906_v19 = vadd.f32 %v2905_v60, %v2819_v18  ;;  %6880 = vtanh.f32 %v3336_v14  ;;  %v6677_v18 = vld [vmem:[%s7384_s7 + $0x504] ss:$8 sps:$4 sm:$0xff]   ;;  %v6683_v60 = vld [vmem:[%s7384_s7 + $0x5f4] ss:$8 sps:$4 sm:$0xff]  }
 0x353   : > { %5099 = vmatprep.subr.bf16.mxu0 %v6650_v6  ;;  %v2896_v23 = vadd.f32 %v2895_v17, %v2894_v5  ;;  %v2913_v44 = vrot.slane %v2912_v54, 2  ;;  %v6675_v5 = vld [vmem:[%s7384_s7 + $0x500] ss:$8 sps:$4 sm:$0xff]   ;;  %v6678_v61 = vld [vmem:[%s7384_s7 + $0x4f0] ss:$8 sps:$4 sm:$0xff]  }
 0x354   : > { %5139 = vmatpush1.bf16.msra.mxu1 %v6645_v37  ;;  %v2902_v24 = vadd.f32 %v2901_v28, %v2900_v59  ;;  %v2907_v26 = vrot.slane %v2906_v19, 2  ;;  %v6674_v37 = vld [vmem:[%s7384_s7 + $0x404] ss:$8 sps:$4 sm:$0xff]   ;;  %v6681_v14 = vld [vmem:[%s7384_s7 + $0x5f0] ss:$8 sps:$4 sm:$0xff]  }
 0x355   : > { %5140 = vmatprep.subr.bf16.mxu1 %v6653_v42  ;;  %v2897_v8 = vrot.slane %v2896_v23, 1  ;;  %v2914_v11 = vadd.f32 %v2913_v44, %v2912_v54  ;;  %v6669_v42 = vld [vmem:[%s7384_s7 + $0x510] ss:$8 sps:$4 sm:$0xff]   ;;  %v6684_v17 = vld [vmem:[%s7384_s7 + $0x4e0] ss:$8 sps:$4 sm:$0xff]  }
 0x356   : > { %5100 = vmatpush1.bf16.msra.mxu0 %v6648_v16  ;;  %v2903_v7 = vrot.slane %v2902_v24, 1  ;;  %v2908_v3 = vadd.f32 %v2907_v26, %v2906_v19  ;;  %v6672_v16 = vld [vmem:[%s7384_s7 + $0x400] ss:$8 sps:$4 sm:$0xff]   ;;  %v6692_v28 = vld [vmem:[%s7384_s7 + $0x4d4] ss:$8 sps:$4 sm:$0xff]  }
 0x357   : > { %5101 = vmatprep.subr.bf16.mxu0 %v6656_v53  ;;  %v2898_v32 = vadd.f32 %v2897_v8, %v2896_v23  ;;  %v2915_v4 = vrot.slane %v2914_v11, 1  ;;  %v6680_v53 = vld [vmem:[%s7384_s7 + $0x4f4] ss:$8 sps:$4 sm:$0xff]   ;;  %v6687_v19 = vld [vmem:[%s7384_s7 + $0x5e0] ss:$8 sps:$4 sm:$0xff]  }
 0x358   : > { %5141 = vmatpush1.bf16.msra.mxu1 %v6651_v0  ;;  %v2904_v58 = vadd.f32 %v2903_v7, %v2902_v24  ;;  %v2909_v33 = vrot.slane %v2908_v3, 1  ;;  %v6686_v0 = vld [vmem:[%s7384_s7 + $0x4e4] ss:$8 sps:$4 sm:$0xff]   ;;  %v6696_v7 = vld [vmem:[%s7384_s7 + $0x4c0] ss:$8 sps:$4 sm:$0xff]  }
 0x359   : > { %5142 = vmatprep.subr.bf16.mxu1 %v6659_v2  ;;  %v2929_v34 = vmul.f32 0.125, %v2898_v32  ;;  %v2916_v38 = vadd.f32 %v2915_v4, %v2914_v11  ;;  %v6689_v2 = vld [vmem:[%s7384_s7 + $0x5e4] ss:$8 sps:$4 sm:$0xff]   ;;  %v6704_v11 = vld [vmem:[%s7384_s7 + $0x4b4] ss:$8 sps:$4 sm:$0xff]   ;;  %v3232_v32 = vrot.slane %v8039_v56, %v7843_v12 }
 0x35a   : > { %5102 = vmatpush1.bf16.msra.mxu0 %v6654_v22  ;;  %v2930_v6 = vmul.f32 0.125, %v2904_v58  ;;  %v2910_v57 = vadd.f32 %v2909_v33, %v2908_v3  ;;  %v6695_v22 = vld [vmem:[%s7384_s7 + $0x5d4] ss:$8 sps:$4 sm:$0xff]   ;;  %v6698_v24 = vld [vmem:[%s7384_s7 + $0x4c4] ss:$8 sps:$4 sm:$0xff]  }
 0x35b   : > { %5103 = vmatprep.subr.bf16.mxu0 %v6662_v29  ;;  %v2945_v39 = vadd.f32 1e-05, %v2929_v34  ;;  %v2932_v45 = vmul.f32 0.125, %v2916_v38  ;;  %v6690_v29 = vld [vmem:[%s7384_s7 + $0x4d0] ss:$8 sps:$4 sm:$0xff]   ;;  %v3240_v34 = vrot.slane %v8052_v50, %v7843_v12  ;;  %v3312_v38 = vrot.slane %v3232_v32, %v7843_v12 }
 0x35c   : > { %5143 = vmatpush1.bf16.msra.mxu1 %v6657_v43  ;;  %v2946_v40 = vadd.f32 1e-05, %v2930_v6  ;;  %v2931_v41 = vmul.f32 0.125, %v2910_v57  ;;  %v6879_v48 = vpop.eup %6878  ;;  %v6693_v43 = vld [vmem:[%s7384_s7 + $0x5d0] ss:$8 sps:$4 sm:$0xff]  }
 0x35d   : > { %5144 = vmatprep.subr.bf16.mxu1 %v6665_v27  ;;  %6882 = vrsqrt.f32 %v2945_v39  ;;  %v3623_v49 = vpack.c.bf16 %v6879_v48, %v6879_v48  ;;  %v2948_v52 = vadd.f32 1e-05, %v2932_v45  ;;  %v6701_v8 = vld [vmem:[%s7384_s7 + $0x5c4] ss:$8 sps:$4 sm:$0xff]   ;;  %v6699_v58 = vld [vmem:[%s7384_s7 + $0x5c0] ss:$8 sps:$4 sm:$0xff]   ;;  %v3320_v48 = vrot.slane %v3240_v34, %v7843_v12 }
 0x35e   : > { %5104 = vmatpush1.bf16.msra.mxu0 %v6660_v31  ;;  %v2947_v21 = vadd.f32 1e-05, %v2931_v41  ;;  %6884 = vrsqrt.f32 %v2946_v40  ;;  %v6707_v4 = vld [vmem:[%s7384_s7 + $0x5b4] ss:$8 sps:$4 sm:$0xff]   ;;  %v6702_v6 = vld [vmem:[%s7384_s7 + $0x4b0] ss:$8 sps:$4 sm:$0xff]  }
 0x35f   : > { %5105 = vmatprep.subr.bf16.mxu0 %v6668_v10  ;;  %v6881_v51 = vpop.eup %6880  ;;  %5125 = vmatprep.mubr.bf16.mxu0 %v3623_v49  ;;  %v3236_v10 = vrot.slane %v8039_v56, %v7836_v1  ;;  %v6705_v39 = vld [vmem:[%s7384_s7 + $0x5b0] ss:$8 sps:$4 sm:$0xff]   ;;  %v6713_v45 = vld [vmem:[%s7384_s7 + $0x5a4] ss:$8 sps:$4 sm:$0xff]   ;;  %v6743_v32 = vld [vmem:[%s7384_s7 + $0x754] ss:$8 sps:$4 sm:$0xff]  }
 0x360   : > { %5145 = vmatpush1.bf16.msra.mxu1 %v6663_v35  ;;  %6886 = vrsqrt.f32 %v2947_v21  ;;  %v3625_v59 = vpack.c.bf16 %v6881_v51, %v6881_v51  ;;  %v6716_v51 = vld [vmem:[%s7384_s7 + $0x494] ss:$8 sps:$4 sm:$0xff]   ;;  %v6744_v34 = vld [vmem:[%s7384_s7 + $0x640] ss:$8 sps:$4 sm:$0xff]  }
 0x361   : > { %5146 = vmatprep.subr.bf16.mxu1 %v6671_v55  ;;  %6888 = vrsqrt.f32 %v2948_v52  ;;  %v3244_v55 = vrot.slane %v8052_v50, %v7836_v1 }
 0x362   : > { %5106 = vmatpush1.bf16.msra.mxu0 %v6666_v13  ;;  %5166 = vmatprep.mubr.bf16.mxu1 %v3625_v59  ;;  %6890 = vtanh.f32 %v8143_v9  ;;  %v3316_v9 = vrot.slane %v3236_v10, %v7843_v12 }
 0x363   : > { %5107 = vmatprep.subr.bf16.mxu0 %v6674_v37  ;;  %v6710_v37 = vld [vmem:[%s7384_s7 + $0x4a4] ss:$8 sps:$4 sm:$0xff]   ;;  %6892 = vtanh.f32 %v8148_v15  ;;  %v3324_v15 = vrot.slane %v3244_v55, %v7843_v12 }
 0x364   : > { %5147 = vmatpush1.bf16.msra.mxu1 %v6669_v42  ;;  %v6749_v55 = vld [vmem:[%s7384_s7 + $0x744] ss:$8 sps:$4 sm:$0xff]  }
 0x365   : > { %5148 = vmatprep.subr.bf16.mxu1 %v6677_v18  ;;  %v6708_v18 = vld [vmem:[%s7384_s7 + $0x4a0] ss:$8 sps:$4 sm:$0xff]  }
 0x366   : > { %5108 = vmatpush1.bf16.msra.mxu0 %v6672_v16 }
 0x367   : > { %5109 = vmatprep.subr.bf16.mxu0 %v6680_v53  ;;  %v6711_v53 = vld [vmem:[%s7384_s7 + $0x5a0] ss:$8 sps:$4 sm:$0xff]  }
 0x368   : > { %5149 = vmatpush1.bf16.msra.mxu1 %v6675_v5 }
 0x369   : > { %5150 = vmatprep.subr.bf16.mxu1 %v6683_v60 }
 0x36a   : > { %5110 = vmatpush2.bf16.msra.mxu0 %v6678_v61  ;;  %v6883_v54 = vpop.eup %6882  ;;  %v6719_v61 = vld [vmem:[%s7384_s7 + $0x594] ss:$8 sps:$4 sm:$0xff]  }
 0x36b   : > { %5111 = vmatprep.subr.bf16.mxu0 %v6686_v0  ;;  %v6885_v23 = vpop.eup %6884 }
 0x36c   : > { %5151 = vmatpush2.bf16.msra.mxu1 %v6681_v14  ;;  %v2987_v44 = vcombine.low %v6883_v54, %v6885_v23  ;;  %v6723_v54 = vld [vmem:[%s7384_s7 + $0x580] ss:$8 sps:$4 sm:$0xff]   ;;  %v6731_v23 = vld [vmem:[%s7384_s7 + $0x774] ss:$8 sps:$4 sm:$0xff]  }
 0x36d   : > { %5152 = vmatprep.subr.bf16.mxu1 %v6689_v2  ;;  %v6887_v26 = vpop.eup %6886  ;;  %v6722_v2 = vld [vmem:[%s7384_s7 + $0x484] ss:$8 sps:$4 sm:$0xff]  }
 0x36e   : > { %5112 = vmatpush2.bf16.msra.mxu0 %v6684_v17  ;;  %v6889_v27 = vpop.eup %6888  ;;  %v2995_v3 = vrot.slane %v2987_v44, 7  ;;  %v6729_v44 = vld [vmem:[%s7384_s7 + $0x770] ss:$8 sps:$4 sm:$0xff]  }
 0x36f   : > { %5113 = vmatprep.subr.bf16.mxu0 %v6692_v28  ;;  %v2988_v31 = vcombine.low %v6887_v26, %v6889_v27  ;;  %v6891_v17 = vpop.eup %6890  ;;  %v6720_v28 = vld [vmem:[%s7384_s7 + $0x480] ss:$8 sps:$4 sm:$0xff]   ;;  %v6737_v27 = vld [vmem:[%s7384_s7 + $0x764] ss:$8 sps:$4 sm:$0xff]  }
 0x370   : > { %5153 = vmatpush2.bf16.msra.mxu1 %v6687_v19  ;;  %v3011_v33 = vmul.f32 %v2995_v3, %v8039_v56  ;;  %v6728_v19 = vld [vmem:[%s7384_s7 + $0x674] ss:$8 sps:$4 sm:$0xff]  }
 0x371   : > { %5154 = vmatprep.subr.bf16.mxu1 %v6695_v22  ;;  %v2996_v35 = vrot.slane %v2988_v31, 7  ;;  %v6893_v22 = vpop.eup %6892  ;;  %v6740_v3 = vld [vmem:[%s7384_s7 + $0x654] ss:$8 sps:$4 sm:$0xff]   ;;  %v6735_v31 = vld [vmem:[%s7384_s7 + $0x760] ss:$8 sps:$4 sm:$0xff]  }
 0x372   : > { %5114 = vmatpush2.bf16.msra.mxu0 %v6690_v29  ;;  %v3076_v57 = vrot.slane %v3011_v33, %v7853_v25  ;;  %v3072_v56 = vrot.slane %v3011_v33, %v7848_v20  ;;  %v3622_v29 = vpack.c.bf16 %v6891_v17, %v6891_v17  ;;  %v3624_v26 = vpack.c.bf16 %v6893_v22, %v6893_v22  ;;  %v6792_v17 = vld [vmem:[%s7384_s7 + $0x6c0] ss:$8 sps:$4 sm:$0xff]   ;;  %v6803_v22 = vld [vmem:[%s7384_s7 + $0x7b4] ss:$8 sps:$4 sm:$0xff]  }
 0x373   : > { %5115 = vmatprep.subr.bf16.mxu0 %v6698_v24  ;;  %v3012_v13 = vmul.f32 %v2996_v35, %v8052_v50  ;;  %v6726_v24 = vld [vmem:[%s7384_s7 + $0x670] ss:$8 sps:$4 sm:$0xff]   ;;  %v6746_v35 = vld [vmem:[%s7384_s7 + $0x644] ss:$8 sps:$4 sm:$0xff]  }
 0x374   : > { %5155 = vmatpush2.bf16.msra.mxu1 %v6693_v43  ;;  %v3156_v40 = vrot.slane %v3076_v57, %v7848_v20  ;;  %v3152_v50 = vrot.slane %v3072_v56, %v7848_v20  ;;  %v6734_v43 = vld [vmem:[%s7384_s7 + $0x664] ss:$8 sps:$4 sm:$0xff]   ;;  %v6747_v57 = vld [vmem:[%s7384_s7 + $0x740] ss:$8 sps:$4 sm:$0xff]   ;;  %v6750_v56 = vld [vmem:[%s7384_s7 + $0x630] ss:$8 sps:$4 sm:$0xff]  }
 0x375   : > { %5156 = vmatprep.subr.bf16.mxu1 %v6701_v8  ;;  %v3084_v41 = vrot.slane %v3012_v13, %v7853_v25  ;;  %v3080_v42 = vrot.slane %v3012_v13, %v7848_v20  ;;  %v6732_v8 = vld [vmem:[%s7384_s7 + $0x660] ss:$8 sps:$4 sm:$0xff]   ;;  %v6755_v13 = vld [vmem:[%s7384_s7 + $0x734] ss:$8 sps:$4 sm:$0xff]  }
 0x376   : > { %5116 = vmatpush2.bf16.msra.mxu0 %v6696_v7  ;;  %v3178_v21 = vmul.f32 %v3156_v40, %v8113_v46  ;;  %v3177_v49 = vmul.f32 %v3152_v50, %v8108_v30  ;;  %v6714_v30 = vld [vmem:[%s7384_s7 + $0x490] ss:$8 sps:$4 sm:$0xff]   ;;  %v6764_v40 = vld [vmem:[%s7384_s7 + $0x614] ss:$8 sps:$4 sm:$0xff]  }
 0x377   : > { %5117 = vmatprep.subr.bf16.mxu0 %v6704_v11  ;;  %v3164_v16 = vrot.slane %v3084_v41, %v7848_v20  ;;  %v3160_v52 = vrot.slane %v3080_v42, %v7848_v20  ;;  %v6759_v41 = vld [vmem:[%s7384_s7 + $0x720] ss:$8 sps:$4 sm:$0xff]   ;;  %v6767_v50 = vld [vmem:[%s7384_s7 + $0x714] ss:$8 sps:$4 sm:$0xff]   ;;  %v6762_v42 = vld [vmem:[%s7384_s7 + $0x610] ss:$8 sps:$4 sm:$0xff]  }
 0x378   : > { %5157 = vmatpush2.bf16.msra.mxu1 %v6699_v58  ;;  %v3338_v5 = vadd.f32 %v3316_v9, %v3178_v21  ;;  %v8217_v60 = vadd.f32 %v3312_v38, %v3177_v49  ;;  %v6738_v58 = vld [vmem:[%s7384_s7 + $0x650] ss:$8 sps:$4 sm:$0xff]   ;;  %v6761_v38 = vld [vmem:[%s7384_s7 + $0x724] ss:$8 sps:$4 sm:$0xff]   ;;  %v6776_v21 = vld [vmem:[%s7384_s7 + $0x6f4] ss:$8 sps:$4 sm:$0xff]  }
 0x379   : > { %5158 = vmatprep.subr.bf16.mxu1 %v6707_v4  ;;  %v3180_v59 = vmul.f32 %v3164_v16, %v8129_v47  ;;  %v3179_v46 = vmul.f32 %v3160_v52, %v8126_v36  ;;  %v6717_v47 = vld [vmem:[%s7384_s7 + $0x590] ss:$8 sps:$4 sm:$0xff]   ;;  %v6725_v36 = vld [vmem:[%s7384_s7 + $0x584] ss:$8 sps:$4 sm:$0xff]   ;;  %v6771_v16 = vld [vmem:[%s7384_s7 + $0x700] ss:$8 sps:$4 sm:$0xff]  }
 0x37a   : > { %5118 = vmatpush2.bf16.msra.mxu0 %v6702_v6  ;;  %6894 = vtanh.f32 %v3338_v5  ;;  %v6741_v4 = vld [vmem:[%s7384_s7 + $0x750] ss:$8 sps:$4 sm:$0xff]   ;;  %v6752_v6 = vld [vmem:[%s7384_s7 + $0x634] ss:$8 sps:$4 sm:$0xff]   ;;  %v6785_v5 = vld [vmem:[%s7384_s7 + $0x7e4] ss:$8 sps:$4 sm:$0xff]  }
 0x37b   : > { %5119 = vmatprep.subr.bf16.mxu0 %v6710_v37  ;;  %v3340_v0 = vadd.f32 %v3324_v15, %v3180_v59  ;;  %v8222_v14 = vadd.f32 %v3320_v48, %v3179_v46  ;;  %v6758_v37 = vld [vmem:[%s7384_s7 + $0x624] ss:$8 sps:$4 sm:$0xff]   ;;  %v6753_v9 = vld [vmem:[%s7384_s7 + $0x730] ss:$8 sps:$4 sm:$0xff]   ;;  %v6779_v49 = vld [vmem:[%s7384_s7 + $0x7f4] ss:$8 sps:$4 sm:$0xff]  }
 0x37c   : > { %5159 = vmatpush2.bf16.msra.mxu1 %v6705_v39  ;;  %v6756_v39 = vld [vmem:[%s7384_s7 + $0x620] ss:$8 sps:$4 sm:$0xff]   ;;  %v6765_v15 = vld [vmem:[%s7384_s7 + $0x710] ss:$8 sps:$4 sm:$0xff]   ;;  %v6773_v48 = vld [vmem:[%s7384_s7 + $0x704] ss:$8 sps:$4 sm:$0xff]  }
 0x37d   : > { %5160 = vmatprep.subr.bf16.mxu1 %v6713_v45  ;;  %6896 = vtanh.f32 %v3340_v0  ;;  %v6770_v45 = vld [vmem:[%s7384_s7 + $0x604] ss:$8 sps:$4 sm:$0xff]   ;;  %v6774_v52 = vld [vmem:[%s7384_s7 + $0x6f0] ss:$8 sps:$4 sm:$0xff]   ;;  %v6780_v59 = vld [vmem:[%s7384_s7 + $0x6e0] ss:$8 sps:$4 sm:$0xff]  }
 0x37e   : > { %5120 = vmatpush2.bf16.msra.mxu0 %v6708_v18  ;;  %v6768_v18 = vld [vmem:[%s7384_s7 + $0x600] ss:$8 sps:$4 sm:$0xff]   ;;  %v6788_v46 = vld [vmem:[%s7384_s7 + $0x6d4] ss:$8 sps:$4 sm:$0xff]   ;;  %v6786_v0 = vld [vmem:[%s7384_s7 + $0x6d0] ss:$8 sps:$4 sm:$0xff]   ;;  %6898 = vtanh.f32 %v8217_v60 }
 0x37f   : > { %5121 = vmatprep.subr.bf16.mxu0 %v6716_v51  ;;  %v6782_v51 = vld [vmem:[%s7384_s7 + $0x6e4] ss:$8 sps:$4 sm:$0xff]   ;;  %6900 = vtanh.f32 %v8222_v14  ;;  %v6812_v60 = vld [vmem:[%s7384_s7 + $0x694] ss:$8 sps:$4 sm:$0xff]   ;;  %v6810_v14 = vld [vmem:[%s7384_s7 + $0x690] ss:$8 sps:$4 sm:$0xff]  }
 0x380   : > { %5161 = vmatpush2.bf16.msra.mxu1 %v6711_v53  ;;  %v6777_v53 = vld [vmem:[%s7384_s7 + $0x7f0] ss:$8 sps:$4 sm:$0xff]  }
 0x381   : > { %5162 = vmatprep.subr.bf16.mxu1 %v6719_v61  ;;  %v6783_v61 = vld [vmem:[%s7384_s7 + $0x7e0] ss:$8 sps:$4 sm:$0xff]  }
 0x382   : > { %5122 = vmatpush2.bf16.msra.mxu0 %v6714_v30  ;;  %v6791_v30 = vld [vmem:[%s7384_s7 + $0x7d4] ss:$8 sps:$4 sm:$0xff]  }
 0x383   : > { %5123 = vmatprep.subr.bf16.mxu0 %v6722_v2  ;;  %v6794_v2 = vld [vmem:[%s7384_s7 + $0x6c4] ss:$8 sps:$4 sm:$0xff]  }
 0x384   : > { %5163 = vmatpush2.bf16.msra.mxu1 %v6717_v47  ;;  %v6789_v47 = vld [vmem:[%s7384_s7 + $0x7d0] ss:$8 sps:$4 sm:$0xff]  }
 0x385   : > { %5164 = vmatprep.subr.bf16.mxu1 %v6725_v36  ;;  %v6797_v36 = vld [vmem:[%s7384_s7 + $0x7c4] ss:$8 sps:$4 sm:$0xff]  }
 0x386   : > { %5124 = vmatpush2.bf16.msra.mxu0 %v6720_v28  ;;  %v6800_v28 = vld [vmem:[%s7384_s7 + $0x6b4] ss:$8 sps:$4 sm:$0xff]  }
 0x387   : > { %5175 = vmatprep.subr.bf16.mxu0 %v6728_v19  ;;  %v6895_v7 = vpop.eup %6894  ;;  %v6795_v19 = vld [vmem:[%s7384_s7 + $0x7c0] ss:$8 sps:$4 sm:$0xff]  }
 0x388   : > { %5165 = vmatpush2.bf16.msra.mxu1 %v6723_v54  ;;  %v3627_v11 = vpack.c.bf16 %v6895_v7, %v6895_v7  ;;  %v6798_v54 = vld [vmem:[%s7384_s7 + $0x6b0] ss:$8 sps:$4 sm:$0xff]  }
 0x389   : > { %5126 = vmatmul.mubr.bf16.vlgmr.msra.gmra.mxu0 %v3622_v29  ;;  %5216 = vmatprep.subr.bf16.mxu1 %v6731_v23  ;;  %v6806_v29 = vld [vmem:[%s7384_s7 + $0x6a4] ss:$8 sps:$4 sm:$0xff]   ;;  %v6801_v23 = vld [vmem:[%s7384_s7 + $0x7b0] ss:$8 sps:$4 sm:$0xff]  }
 0x38a   : > { %5176 = vmatpush1.bf16.msra.mxu0 %v6726_v24  ;;  %v6897_v10 = vpop.eup %6896  ;;  %5207 = vmatprep.mubr.bf16.mxu0 %v3627_v11  ;;  %v6809_v24 = vld [vmem:[%s7384_s7 + $0x7a4] ss:$8 sps:$4 sm:$0xff]   ;;  %v6813_v7 = vld [vmem:[%s7384_s7 + $0x790] ss:$8 sps:$4 sm:$0xff]   ;;  %v6816_v11 = vld [vmem:[%s7384_s7 + $0x680] ss:$8 sps:$4 sm:$0xff]  }
 0x38b   : > { %5167 = vmatmul.mubr.bf16.vlgmr.msra.gmra.mxu1 %v3624_v26  ;;  %5177 = vmatprep.subr.bf16.mxu0 %v6734_v43  ;;  %v3629_v33 = vpack.c.bf16 %v6897_v10, %v6897_v10  ;;  %v6804_v26 = vld [vmem:[%s7384_s7 + $0x6a0] ss:$8 sps:$4 sm:$0xff]  }
 0x38c   : > { %5217 = vmatpush1.bf16.msra.mxu1 %v6729_v44  ;;  %v6807_v43 = vld [vmem:[%s7384_s7 + $0x7a0] ss:$8 sps:$4 sm:$0xff]   ;;  %v6815_v44 = vld [vmem:[%s7384_s7 + $0x794] ss:$8 sps:$4 sm:$0xff]  }
 0x38d   : > { %5218 = vmatprep.subr.bf16.mxu1 %v6737_v27  ;;  %5248 = vmatprep.mubr.bf16.mxu1 %v3629_v33  ;;  %v6818_v27 = vld [vmem:[%s7384_s7 + $0x684] ss:$8 sps:$4 sm:$0xff]  }
 0x38e   : > { %5178 = vmatpush1.bf16.msra.mxu0 %v6732_v8  ;;  %v8292_v8 = vld [vmem:[%s7401_s21] sm:$0x77] }
 0x38f   : > { %5179 = vmatprep.subr.bf16.mxu0 %v6740_v3  ;;  %v6821_v3 = vld [vmem:[%s7384_s7 + $0x784] ss:$8 sps:$4 sm:$0xff]   ;;  %v3634_v10 = vrot.slane %v8292_v8, %v7757_v62  ;;  %v3638_v33 = vrot.slane %v8292_v8, %v7760_v63 }
 0x390   : > { %5219 = vmatpush1.bf16.msra.mxu1 %v6735_v31  ;;  %v6899_v31 = vpop.eup %6898 }
 0x391   : > { %5220 = vmatprep.subr.bf16.mxu1 %v6743_v32  ;;  %v6901_v32 = vpop.eup %6900 }
 0x392   : > { %5180 = vmatpush1.bf16.msra.mxu0 %v6738_v58  ;;  %v6819_v58 = vld [vmem:[%s7384_s7 + $0x780] ss:$8 sps:$4 sm:$0xff]  }
 0x393   : > { %5181 = vmatprep.subr.bf16.mxu0 %v6746_v35  ;;  %v3626_v35 = vpack.c.bf16 %v6899_v31, %v6899_v31 }
 0x394   : > { %5221 = vmatpush1.bf16.msra.mxu1 %v6741_v4  ;;  %v3644_v4 = vrot.slane %v3634_v10, %v7757_v62 }
 0x395   : > { %5222 = vmatprep.subr.bf16.mxu1 %v6749_v55  ;;  %v3628_v55 = vpack.c.bf16 %v6901_v32, %v6901_v32 }
 0x396   : > { %5182 = vmatpush1.bf16.msra.mxu0 %v6744_v34  ;;  %v3648_v34 = vrot.slane %v3638_v33, %v7757_v62 }
 0x397   : > { %5183 = vmatprep.subr.bf16.mxu0 %v6752_v6 }
 0x398   : > { %5223 = vmatpush1.bf16.msra.mxu1 %v6747_v57 }
 0x399   : > { %5224 = vmatprep.subr.bf16.mxu1 %v6755_v13 }
 0x39a   : > { %5184 = vmatpush1.bf16.msra.mxu0 %v6750_v56 }
 0x39b   : > { %5185 = vmatprep.subr.bf16.mxu0 %v6758_v37 }
 0x39c   : > { %5225 = vmatpush1.bf16.msra.mxu1 %v6753_v9 }
 0x39d   : > { %5226 = vmatprep.subr.bf16.mxu1 %v6761_v38 }
 0x39e   : > { %5186 = vmatpush1.bf16.msra.mxu0 %v6756_v39 }
 0x39f   : > { %5187 = vmatprep.subr.bf16.mxu0 %v6764_v40 }
 0x3a0   : > { %5227 = vmatpush1.bf16.msra.mxu1 %v6759_v41 }
 0x3a1   : > { %5228 = vmatprep.subr.bf16.mxu1 %v6767_v50 }
 0x3a2   : > { %5188 = vmatpush1.bf16.msra.mxu0 %v6762_v42 }
 0x3a3   : > { %5189 = vmatprep.subr.bf16.mxu0 %v6770_v45 }
 0x3a4   : > { %5229 = vmatpush1.bf16.msra.mxu1 %v6765_v15 }
 0x3a5   : > { %5230 = vmatprep.subr.bf16.mxu1 %v6773_v48 }
 0x3a6   : > { %5190 = vmatpush1.bf16.msra.mxu0 %v6768_v18 }
 0x3a7   : > { %5191 = vmatprep.subr.bf16.mxu0 %v6776_v21 }
 0x3a8   : > { %5231 = vmatpush1.bf16.msra.mxu1 %v6771_v16 }
 0x3a9   : > { %5232 = vmatprep.subr.bf16.mxu1 %v6779_v49 }
 0x3aa   : > { %5192 = vmatpush2.bf16.msra.mxu0 %v6774_v52 }
 0x3ab   : > { %5193 = vmatprep.subr.bf16.mxu0 %v6782_v51 }
 0x3ac   : > { %5233 = vmatpush2.bf16.msra.mxu1 %v6777_v53 }
 0x3ad   : > { %5234 = vmatprep.subr.bf16.mxu1 %v6785_v5 }
 0x3ae   : > { %5194 = vmatpush2.bf16.msra.mxu0 %v6780_v59  ;;  %v6822_v59 = vld [vmem:[%s7420_s18 + $0x78] sm:$0xff]  }
 0x3af   : > { %5195 = vmatprep.subr.bf16.mxu0 %v6788_v46  ;;  %v6823_v46 = vld [vmem:[%s7420_s18 + $0x38] sm:$0xff]  }
 0x3b0   : > { %5235 = vmatpush2.bf16.msra.mxu1 %v6783_v61  ;;  %v6824_v61 = vld [vmem:[%s7420_s18 + $0x70] sm:$0xff]  }
 0x3b1   : > { %5236 = vmatprep.subr.bf16.mxu1 %v6791_v30  ;;  %v6825_v30 = vld [vmem:[%s7420_s18 + $0x30] sm:$0xff]  }
 0x3b2   : > { %5196 = vmatpush2.bf16.msra.mxu0 %v6786_v0  ;;  %v6826_v0 = vld [vmem:[%s7420_s18 + $0x68] sm:$0xff]  }
 0x3b3   : > { %5197 = vmatprep.subr.bf16.mxu0 %v6794_v2  ;;  %v6827_v2 = vld [vmem:[%s7420_s18 + $0x28] sm:$0xff]  }
 0x3b4   : > { %5237 = vmatpush2.bf16.msra.mxu1 %v6789_v47 }
 0x3b5   : > { %5238 = vmatprep.subr.bf16.mxu1 %v6797_v36  ;;  %v6828_v36 = vld [vmem:[%s7420_s18 + $0x60] sm:$0xff]  }
 0x3b6   : > { %5198 = vmatpush2.bf16.msra.mxu0 %v6792_v17  ;;  %v6829_v17 = vld [vmem:[%s7420_s18 + $0x20] sm:$0xff]  }
 0x3b7   : > { %5199 = vmatprep.subr.bf16.mxu0 %v6800_v28 }
 0x3b8   : > { %5239 = vmatpush2.bf16.msra.mxu1 %v6795_v19 }
 0x3b9   : > { %5240 = vmatprep.subr.bf16.mxu1 %v6803_v22  ;;  %v6830_v22 = vld [vmem:[%s7420_s18 + $0x58] sm:$0xff]  }
 0x3ba   : > { %5200 = vmatpush2.bf16.msra.mxu0 %v6798_v54 }
 0x3bb   : > { %5201 = vmatprep.subr.bf16.mxu0 %v6806_v29 }
 0x3bc   : > { %5241 = vmatpush2.bf16.msra.mxu1 %v6801_v23  ;;  %v6831_v23 = vld [vmem:[%s7420_s18 + $0x18] sm:$0xff]  }
 0x3bd   : > { %5242 = vmatprep.subr.bf16.mxu1 %v6809_v24 }
 0x3be   : > { %5202 = vmatpush2.bf16.msra.mxu0 %v6804_v26 }
 0x3bf   : > { %5203 = vmatprep.subr.bf16.mxu0 %v6812_v60  ;;  %v6832_v60 = vld [vmem:[%s7420_s18 + $0x50] sm:$0xff]  }
 0x3c0   : > { %5243 = vmatpush2.bf16.msra.mxu1 %v6807_v43 }
 0x3c1   : > { %5244 = vmatprep.subr.bf16.mxu1 %v6815_v44  ;;  %v6833_v44 = vld [vmem:[%s7420_s18 + $0x10] sm:$0xff]  }
 0x3c2   : > { %5204 = vmatpush2.bf16.msra.mxu0 %v6810_v14  ;;  %v6834_v14 = vld [vmem:[%s7420_s18 + $0x48] sm:$0xff]  }
 0x3c3   : > { %5205 = vmatprep.subr.bf16.mxu0 %v6818_v27  ;;  %v6835_v27 = vld [vmem:[%s7420_s18 + $0x8] sm:$0xff]  }
 0x3c4   : > { %5245 = vmatpush2.bf16.msra.mxu1 %v6813_v7  ;;  %v6836_v7 = vld [vmem:[%s7420_s18 + $0x40] sm:$0xff]  }
 0x3c5   : > { %5246 = vmatprep.subr.bf16.mxu1 %v6821_v3  ;;  %v6837_v3 = vld [vmem:[%s7420_s18] sm:$0xff]  }
 0x3c6   : > { %5206 = vmatpush2.bf16.msra.mxu0 %v6816_v11 }
 0x3c7   : > { %6298 = vmatprep.subr.bf16.mxu0 %v6822_v59 }
 0x3c8   : > { %5247 = vmatpush2.bf16.msra.mxu1 %v6819_v58 }
 0x3c9   : > { %5208 = vmatmul.mubr.bf16.vlgmr.msra.gmra.mxu0 %v3626_v35  ;;  %v4963_v6 = vpop.f32.mrf.mxu0 }
 0x3ca   : > { %v4964_v57 = vadd.f32 %v4963_v6, %v3644_v4  ;;  %6299 = vmatpush3.bf16.msra.mxu0 %v6823_v46 }
 0x3cb   : > { %5249 = vmatmul.mubr.bf16.vlgmr.msra.gmra.mxu1 %v3628_v55  ;;  %v5004_v13 = vpop.f32.mrf.mxu1  ;;  %v4965_v56 = vpop.f32.mrf.mxu0  ;;  %6300 = vmatprep.subr.bf16.mxu0 %v6824_v61 }
 0x3cc   : > { %v5005_v37 = vadd.f32 %v5004_v13, %v4964_v57  ;;  %v4966_v9 = vadd.f32 %v4965_v56, %v3648_v34 }
 0x3cd   : > { %v5006_v38 = vpop.f32.mrf.mxu1  ;;  %v4967_v39 = vpop.f32.mrf.mxu0 }
 0x3ce   : > { %v5007_v63 = vadd.f32 %v5006_v38, %v4966_v9  ;;  %6301 = vmatpush3.bf16.msra.mxu0 %v6825_v30 }
 0x3cf   : > { %v5008_v40 = vpop.f32.mrf.mxu1  ;;  %v4968_v41 = vpop.f32.mrf.mxu0  ;;  %6302 = vmatprep.subr.bf16.mxu0 %v6826_v0 }
 0x3d1   : > { %v5009_v50 = vpop.f32.mrf.mxu1 }
 0x3d2   : > { %6303 = vmatpush3.bf16.msra.mxu0 %v6827_v2 }
 0x3d3   : > { %6304 = vmatprep.subr.bf16.mxu0 %v6828_v36 }
 0x3d6   : > { %6305 = vmatpush3.bf16.msra.mxu0 %v6829_v17 }
 0x3d7   : > { %6306 = vmatprep.subr.bf16.mxu0 %v6830_v22 }
 0x3da   : > { %6307 = vmatpush3.bf16.msra.mxu0 %v6831_v23 }
 0x3db   : > { %6308 = vmatprep.subr.bf16.mxu0 %v6832_v60 }
 0x3de   : > { %6309 = vmatpush3.bf16.msra.mxu0 %v6833_v44 }
 0x3df   : > { %6310 = vmatprep.subr.bf16.mxu0 %v6834_v14 }
 0x3e2   : > { %6311 = vmatpush3.bf16.msra.mxu0 %v6835_v27  ;;  %v5327_v27 = vrot.slane %v8292_v8, %v7836_v1 }
 0x3e3   : > { %6312 = vmatprep.subr.bf16.mxu0 %v6836_v7  ;;  %v5323_v7 = vrot.slane %v8292_v8, %v7843_v12 }
 0x3e6   : > { %6313 = vmatpush3.bf16.msra.mxu0 %v6837_v3 }
 0x409   : > { %v5045_v42 = vpop.f32.mrf.mxu0 }
 0x40a   : > { %v5046_v45 = vadd.f32 %v5045_v42, %v5005_v37 }
 0x40b   : > { %v5086_v15 = vpop.f32.mrf.mxu1  ;;  %v5047_v48 = vpop.f32.mrf.mxu0 }
 0x40c   : > { %v5087_v18 = vadd.f32 %v5086_v15, %v5046_v45  ;;  %v5048_v21 = vadd.f32 %v5047_v48, %v5007_v63 }
 0x40d   : > { %v5088_v16 = vpop.f32.mrf.mxu1  ;;  %v5049_v49 = vpop.f32.mrf.mxu0 }
 0x40e   : > { %v5089_v52 = vadd.f32 %v5088_v16, %v5048_v21 }
 0x40f   : > { %v5090_v51 = vpop.f32.mrf.mxu1  ;;  %v5050_v53 = vpop.f32.mrf.mxu0 }
 0x411   : > { %v5091_v5 = vpop.f32.mrf.mxu1 }
 0x449   : > { %v5127_v47 = vpop.f32.mrf.mxu0 }
 0x44a   : > { %v5128_v31 = vadd.f32 %v5127_v47, %v5087_v18 }
 0x44b   : > { %v5168_v28 = vpop.f32.mrf.mxu1  ;;  %v5129_v19 = vpop.f32.mrf.mxu0 }
 0x44c   : > { %v5130_v11 = vadd.f32 %v5129_v19, %v5089_v52  ;;  %v5169_v10 = vadd.f32 %v5168_v28, %v5128_v31 }
 0x44d   : > { %v5170_v54 = vpop.f32.mrf.mxu1  ;;  %v5131_v29 = vpop.f32.mrf.mxu0 }
 0x44e   : > { %v5171_v58 = vadd.f32 %v5170_v54, %v5130_v11 }
 0x44f   : > { %v5172_v24 = vpop.f32.mrf.mxu1  ;;  %v5132_v26 = vpop.f32.mrf.mxu0 }
 0x451   : > { %v5173_v43 = vpop.f32.mrf.mxu1 }
 0x489   : > { %v5209_v32 = vpop.f32.mrf.mxu0 }
 0x48a   : > { %v5210_v33 = vadd.f32 %v5209_v32, %v5169_v10  ;;  %v5337_v10 = vrot.slane %v5327_v27, %v7843_v12 }
 0x48b   : > { %v5250_v35 = vpop.f32.mrf.mxu1  ;;  %v5211_v4 = vpop.f32.mrf.mxu0 }
 0x48c   : > { %v5251_v55 = vadd.f32 %v5250_v35, %v5210_v33  ;;  %v5212_v34 = vadd.f32 %v5211_v4, %v5171_v58  ;;  %v5333_v58 = vrot.slane %v5323_v7, %v7843_v12 }
 0x48d   : > { %v5252_v6 = vpop.f32.mrf.mxu1  ;;  %v5213_v57 = vpop.f32.mrf.mxu0 }
 0x48e   : > { %v5257_v13 = vrot.slane %v5251_v55, 4  ;;  %v5253_v56 = vadd.f32 %v5252_v6, %v5212_v34 }
 0x48f   : > { %v5254_v37 = vpop.f32.mrf.mxu1  ;;  %v5214_v9 = vpop.f32.mrf.mxu0 }
 0x490   : > { %v5258_v38 = vadd.f32 %v5257_v13, %v5251_v55  ;;  %v5263_v39 = vrot.slane %v5253_v56, 4 }
 0x491   : > { %v5255_v63 = vpop.f32.mrf.mxu1 }
 0x492   : > { %v5259_v40 = vrot.slane %v5258_v38, 2  ;;  %v5264_v41 = vadd.f32 %v5263_v39, %v5253_v56 }
 0x494   : > { %v5260_v50 = vadd.f32 %v5259_v40, %v5258_v38  ;;  %v5265_v42 = vrot.slane %v5264_v41, 2 }
 0x496   : > { %v5261_v45 = vrot.slane %v5260_v50, 1  ;;  %v5266_v15 = vadd.f32 %v5265_v42, %v5264_v41 }
 0x498   : > { %v5262_v48 = vadd.f32 %v5261_v45, %v5260_v50  ;;  %v5267_v18 = vrot.slane %v5266_v15, 1 }
 0x49a   : > { %v5269_v21 = vmul.f32 0.125, %v5262_v48  ;;  %v5268_v16 = vadd.f32 %v5267_v18, %v5266_v15 }
 0x49c   : > { %v5271_v49 = vsub.f32 %v5251_v55, %v5269_v21  ;;  %v5270_v52 = vmul.f32 0.125, %v5268_v16 }
 0x49e   : > { %v5273_v51 = vmul.f32 %v5271_v49, %v5271_v49  ;;  %v5272_v53 = vsub.f32 %v5253_v56, %v5270_v52 }
 0x4a0   : > { %v5275_v5 = vrot.slane %v5273_v51, 4  ;;  %v5274_v59 = vmul.f32 %v5272_v53, %v5272_v53 }
 0x4a2   : > { %v5276_v46 = vadd.f32 %v5275_v5, %v5273_v51  ;;  %v5281_v61 = vrot.slane %v5274_v59, 4 }
 0x4a4   : > { %v5277_v30 = vrot.slane %v5276_v46, 2  ;;  %v5282_v0 = vadd.f32 %v5281_v61, %v5274_v59 }
 0x4a6   : > { %v5278_v2 = vadd.f32 %v5277_v30, %v5276_v46  ;;  %v5283_v47 = vrot.slane %v5282_v0, 2 }
 0x4a8   : > { %v5279_v36 = vrot.slane %v5278_v2, 1  ;;  %v5284_v17 = vadd.f32 %v5283_v47, %v5282_v0 }
 0x4aa   : > { %v5280_v28 = vadd.f32 %v5279_v36, %v5278_v2  ;;  %v5285_v19 = vrot.slane %v5284_v17, 1 }
 0x4ac   : > { %v5287_v22 = vmul.f32 0.125, %v5280_v28  ;;  %v5286_v54 = vadd.f32 %v5285_v19, %v5284_v17 }
 0x4ae   : > { %v5289_v29 = vadd.f32 1e-05, %v5287_v22  ;;  %v5288_v23 = vmul.f32 0.125, %v5286_v54 }
 0x4b0   : > { %v5290_v24 = vadd.f32 1e-05, %v5288_v23  ;;  %6902 = vrsqrt.f32 %v5289_v29 }
 0x4b2   : > { %6904 = vrsqrt.f32 %v5290_v24 }
 0x4bd   : > { %v6903_v26 = vpop.eup %6902 }
 0x4bf   : > { %v6905_v60 = vpop.eup %6904 }
 0x4c0   : > { %v5295_v43 = vcombine.low %v6903_v26, %v6905_v60 }
 0x4c2   : > { %v5296_v44 = vrot.slane %v5295_v43, 7 }
 0x4c4   : > { %v5298_v14 = vmul.f32 %v5296_v44, %v8292_v8 }
 0x4c6   : > { %v5303_v3 = vrot.slane %v5298_v14, %v7848_v20  ;;  %v5307_v31 = vrot.slane %v5298_v14, %v7853_v25  ;;  %v5374_v25 = vld [vmem:[%s7406_s26] sm:$0x7] }
 0x4c7   : > { %v5380_v13 = vrot.slane %v5374_v25, %v7757_v62  ;;  %v5544_v30 = vrot.slane %v5374_v25, %v7843_v12 }
 0x4c8   : > { %v5317_v11 = vrot.slane %v5307_v31, %v7848_v20  ;;  %v5313_v32 = vrot.slane %v5303_v3, %v7848_v20 }
 0x4ca   : > { %v5319_v33 = vmul.f32 %v5317_v11, %v5272_v53  ;;  %v5318_v35 = vmul.f32 %v5313_v32, %v5271_v49 }
 0x4cc   : > { %v5339_v4 = vadd.f32 %v5337_v10, %v5319_v33  ;;  %v5338_v1 = vadd.f32 %v5333_v58, %v5318_v35 }
 0x4ce   : > { %6906 = vtanh.f32 %v5339_v4 }
 0x4cf   : > { %6908 = vtanh.f32 %v5338_v1 }
 0x4db   : > { %v6907_v8 = vpop.eup %6906 }
 0x4dc   : > { %v6909_v55 = vpop.eup %6908  ;;  %v5376_v34 = vpack.c.bf16 %v6907_v8, %v6907_v8 }
 0x4dd   : > { %v5375_v6 = vpack.c.bf16 %v6909_v55, %v6909_v55 }
 0x4de   : > { %5509 = vmatprep.mubr.bf16.mxu0 %v5376_v34 }
 0x4df   : > { %5510 = vmatmul.mubr.bf16.vlgmr.msra.gmra.mxu0 %v5375_v6 }
 0x59f   : > { %v6314_v57 = vpop.f32.mrf.mxu0 }
 0x5a1   : > { %v6315_v56 = vpop.f32.mrf.mxu0 }
 0x5a2   : > { %v6316_v37 = vadd.f32 %v6315_v56, %v6314_v57 }
 0x5a3   : > { %v6317_v9 = vpop.f32.mrf.mxu0 }
 0x5a4   : > { %v5512_v38 = vadd.f32 %v6316_v37, %v5380_v13 }
 0x5a5   : > { %v6318_v39 = vpop.f32.mrf.mxu0 }
 0x5a6   : > { %v5517_v63 = vrot.slane %v5512_v38, 4 }
 0x5a8   : > { %v5518_v40 = vadd.f32 %v5517_v63, %v5512_v38 }
 0x5aa   : > { %v5519_v41 = vrot.slane %v5518_v40, 2 }
 0x5ac   : > { %v5520_v50 = vadd.f32 %v5519_v41, %v5518_v40 }
 0x5ae   : > { %v5521_v42 = vrot.slane %v5520_v50, 1 }
 0x5b0   : > { %v5522_v45 = vadd.f32 %v5521_v42, %v5520_v50 }
 0x5b2   : > { %v5523_v15 = vmul.f32 0.125, %v5522_v45 }
 0x5b4   : > { %v5524_v48 = vsub.f32 %v5512_v38, %v5523_v15 }
 0x5b6   : > { %v5525_v18 = vmul.f32 %v5524_v48, %v5524_v48 }
 0x5b8   : > { %v5526_v21 = vrot.slane %v5525_v18, 4 }
 0x5ba   : > { %v5527_v16 = vadd.f32 %v5526_v21, %v5525_v18 }
 0x5bc   : > { %v5528_v49 = vrot.slane %v5527_v16, 2 }
 0x5be   : > { %v5529_v52 = vadd.f32 %v5528_v49, %v5527_v16 }
 0x5c0   : > { %v5530_v62 = vrot.slane %v5529_v52, 1 }
 0x5c2   : > { %v5531_v51 = vadd.f32 %v5530_v62, %v5529_v52 }
 0x5c4   : > { %v5532_v53 = vmul.f32 0.125, %v5531_v51 }
 0x5c6   : > { %v5533_v5 = vadd.f32 1e-05, %v5532_v53 }
 0x5c8   : > { %6910 = vrsqrt.f32 %v5533_v5 }
 0x5d5   : > { %v6911_v59 = vpop.eup %6910 }
 0x5d6   : > { %v5535_v46 = vmul.f32 %v6911_v59, %v5374_v25 }
 0x5d8   : > { %v5539_v61 = vrot.slane %v5535_v46, %v7848_v20 }
 0x5da   : > { %v5540_v0 = vmul.f32 %v5539_v61, %v5524_v48 }
 0x5dc   : > { %v5545_v2 = vadd.f32 %v5544_v30, %v5540_v0 }
 0x5de   : > { %6912 = vtanh.f32 %v5545_v2 }
 0x5eb   : > { %v6913_v47 = vpop.eup %6912 }
 0x5ec   : > { %5547 = vst [vmem:[%s7411_s29] sm:$0xff] %v6913_v47 }
 0x5ed PF: > { %s28_s17 = sadd.s32 1, %s7102_s17   ;;  %s8435_s7 = sld [smem:[#allocation22_spill]] }
 0x5ee   : > { %p25_p9 = scmp.ge.s32.totalorder %s28_s17, 6   ;;  %s8436_s25 = sld [smem:[#allocation23_spill]] }
 0x5ef   : > { %s8437_s0 = sld [smem:[#allocation17_spill]]  ;;  %s8441_s30 = smov %s7066_s9 }
 0x5f0   : > { %s8438_s14 = sld [smem:[#allocation18_spill]]  ;;  %s8442_s9 = smov %s7070_s10 }
 0x5f1   : > { %s8439_s15 = sld [smem:[#allocation20_spill]]  ;;  %s8444_s11 = smov %s7078_s12 }
 0x5f2   : > { %s8440_s16 = sld [smem:[#allocation21_spill]]  ;;  %s8445_s12 = smov %s7082_s13 }
 0x5f3   : > { %s8443_s10 = smov %s8435_s7  ;;  %27 = sbr.rel (!%p25_p9) target bundleno = 22 (0x16), region = 136 }
 0x5f4   : > { %s8446_s13 = smov %s8436_s25 }
 0x5f8   :  { %5567 = vsyncpa [#allocation6], 1 }
 0x5f9   :  { %5569 = vsyncpa [#allocation6 + $0x1], 1 }
 0x5fa   :  { %5570 = vsyncpa [#allocation8], 1 }
 0x5fb   :  { %5572 = vsyncpa [#allocation8 + $0x1], 1 }

</bundles_post_ra>
